<compile_context>
chip_gen: v5e
topology: v5e:2x2
jax: 0.10.0
libtpu: 0.0.40
codegen_flags: <defaults>
</compile_context>

<pallas_src>
import functools

import jax
import jax.numpy as jnp
from jax.experimental import pallas as pl
from jax.experimental.pallas import tpu as pltpu


# Full VGG19 feature config ('E').  The smoke test below uses a reduced config
# with the same op structure (conv3x3+ReLU blocks, 2x2 maxpools, flatten,
# Linear+ReLU+Dropout+Linear).
VGG19_CFG = [64, 64, 'M', 128, 128, 'M', 256, 256, 256, 256, 'M',
             512, 512, 512, 512, 'M', 512, 512, 512, 512, 'M']

LANE = 128                       # lane width (FC weight padding only)
_VMEM_LIMIT = 32 * 1024 * 1024   # scoped VMEM cap (lifts v5e's 16 MiB default)


def _round_up(x, m):
  return (x + m - 1) // m * m


def _largest_divisor(n, candidates):
  for c in candidates:
    if n % c == 0:
      return c
  return 1


def _pad_axis(a, axis, new_size):
  if a.shape[axis] == new_size:
    return a
  widths = [(0, 0)] * a.ndim
  widths[axis] = (0, new_size - a.shape[axis])
  return jnp.pad(a, widths)


def _pick_rows(total, bytes_per_row, budget=2 * 1024 * 1024, cap=64):
  """Largest divisor of `total` (<= cap) whose per-step bytes fit `budget`."""
  best = 1
  for t in range(1, min(total, cap) + 1):
    if total % t == 0 and t * bytes_per_row <= budget:
      best = t
  return best


# --------------------------------------------------------------------------
# Pallas kernels
# --------------------------------------------------------------------------
def _conv3x3_relu_kernel(x_ref, w_ref, b_ref, o_ref, acc_ref):
  """3x3 'same' conv + bias + ReLU for `th` output rows of one image.

  x_ref  : (1, H+2, W+2, Cin) bf16 -- full spatially padded image (resident per n)
  w_ref  : (3, 3, Cin, Cout)  bf16 -- whole weight tensor (resident)
  b_ref  : (1, Cout)          f32
  o_ref  : (1, th, W, Cout)   bf16
  acc_ref: (th*W, Cout)       f32 VMEM scratch (per-step accumulator)
  """
  _, th, width, cout = o_ref.shape
  cin = x_ref.shape[-1]
  row0 = pl.program_id(1) * th

  # 9 per-tap slab matmuls (matmul M = th*W rows -> fills the MXU).
  for kh in range(3):
    for kw in range(3):
      a = x_ref[0, pl.ds(row0 + kh, th), pl.ds(kw, width), :]   # (th, W, Cin)
      a = a.reshape(th * width, cin)
      p = jnp.dot(a, w_ref[kh, kw], preferred_element_type=jnp.float32)
      if kh == 0 and kw == 0:
        acc_ref[...] = p
      else:
        acc_ref[...] += p

  out = jnp.maximum(acc_ref[...] + b_ref[...], 0.0)              # bias + ReLU
  o_ref[...] = out.reshape(1, th, width, cout).astype(o_ref.dtype)


def _maxpool2x2_kernel(x_ref, o_ref):
  """x_ref: (TH, 2, Wo, 2, C); o_ref: (TH, Wo, C)."""
  x = x_ref[...]
  m = jnp.maximum(x[:, 0], x[:, 1])     # max over the two rows  -> (TH, Wo, 2, C)
  o_ref[...] = jnp.max(m, axis=2)       # max over the two cols  -> (TH, Wo, C)


def _matmul_bias_act_kernel(a_ref, b_ref, bias_ref, o_ref, acc_ref, *, relu):
  """One (tm, tn) output tile, accumulated over the K grid axis."""
  @pl.when(pl.program_id(2) == 0)
  def _():
    acc_ref[...] = jnp.zeros_like(acc_ref)

  acc_ref[...] += jnp.dot(a_ref[...], b_ref[...],
                          preferred_element_type=jnp.float32)

  @pl.when(pl.program_id(2) == pl.num_programs(2) - 1)
  def _():
    out = acc_ref[...] + bias_ref[...]          # (tm,tn) + (1,tn) broadcast
    if relu:
      out = jnp.maximum(out, 0.0)
    o_ref[...] = out.astype(o_ref.dtype)


# --------------------------------------------------------------------------
# Pallas wrappers
# --------------------------------------------------------------------------
def conv3x3_relu(x, w, b):
  """x: (N,H,W,Cin) bf16; w: (3,3,Cin,Cout) bf16; b: (1,Cout) f32."""
  N, H, W, Cin = x.shape
  assert w.shape[:3] == (3, 3, Cin)
  Cout = w.shape[-1]
  # Rows per grid step: as many as keep the f32 accumulator within ~2 MiB,
  # so matmul M = th*W is large (MXU fill) and grid steps are few.
  th = _pick_rows(H, W * Cout * 4)
  xp = jnp.pad(x, ((0, 0), (1, 1), (1, 1), (0, 0)))    # 'same' spatial padding

  return pl.pallas_call(
      _conv3x3_relu_kernel,
      out_shape=jax.ShapeDtypeStruct((N, H, W, Cout), jnp.bfloat16),
      grid_spec=pltpu.PrefetchScalarGridSpec(
          num_scalar_prefetch=0,
          grid=(N, H // th),
          in_specs=[
              # Full padded image of one batch element; block index depends
              # only on n, so it is DMA'd only when `n` changes.
              pl.BlockSpec((1, H + 2, W + 2, Cin), lambda n, r: (n, 0, 0, 0)),
              pl.BlockSpec((3, 3, Cin, Cout), lambda n, r: (0, 0, 0, 0)),
              pl.BlockSpec((1, Cout), lambda n, r: (0, 0)),
          ],
          out_specs=pl.BlockSpec((1, th, W, Cout), lambda n, r: (n, r, 0, 0)),
          scratch_shapes=[pltpu.VMEM((th * W, Cout), jnp.float32)],
      ),
      compiler_params=pltpu.CompilerParams(
          dimension_semantics=("parallel", "parallel"),
          vmem_limit_bytes=_VMEM_LIMIT),
  )(xp, w, b)


def maxpool2x2(x):
  """x: (N,H,W,C) NHWC, kernel=2, stride=2 -> (N,H//2,W//2,C)."""
  N, H, W, C = x.shape
  assert H % 2 == 0 and W % 2 == 0, "maxpool2x2 requires even spatial dims"
  Ho, Wo = H // 2, W // 2
  xr = x.reshape(N * Ho, 2, Wo, 2, C)       # metadata-only reshape, no HBM copy
  th = _pick_rows(N * Ho, 4 * Wo * C * x.dtype.itemsize)   # many rows per step

  out = pl.pallas_call(
      _maxpool2x2_kernel,
      out_shape=jax.ShapeDtypeStruct((N * Ho, Wo, C), x.dtype),
      grid_spec=pltpu.PrefetchScalarGridSpec(
          num_scalar_prefetch=0,
          grid=((N * Ho) // th,),
          in_specs=[pl.BlockSpec((th, 2, Wo, 2, C),
                                 lambda i: (i, 0, 0, 0, 0))],
          out_specs=pl.BlockSpec((th, Wo, C), lambda i: (i, 0, 0)),
      ),
      compiler_params=pltpu.CompilerParams(
          dimension_semantics=("parallel",),
          vmem_limit_bytes=_VMEM_LIMIT),
  )(xr)
  return out.reshape(N, Ho, Wo, C)


def linear(a, w_p, bias_p, n_out, *, relu, out_dtype=jnp.float32):
  """(M,K) @ pre-padded bf16 (Kp,Np) + bias[1,Np]; returns (M, n_out)."""
  M, K = a.shape
  Kp, Np = w_p.shape
  assert K <= Kp and bias_p.shape == (1, Np)

  tm = min(128, _round_up(M, 16))           # 16-row min for bf16 sublane packing
  Mp = _round_up(M, tm)
  # Large K/N tiles -> few grid steps, so per-step overhead hides under the
  # weight-streaming DMA (e.g. tk=1792 for VGG FC1's K=25088, tn=1024).
  tk = _largest_divisor(Kp, (2048, 1792, 1536, 1024, 768, 512, 384, 256, 128))
  tn = _largest_divisor(Np, (1024, 512, 256, 128))
  a_p = _pad_axis(_pad_axis(a.astype(jnp.bfloat16), 1, Kp), 0, Mp)

  out = pl.pallas_call(
      functools.partial(_matmul_bias_act_kernel, relu=relu),
      out_shape=jax.ShapeDtypeStruct((Mp, Np), out_dtype),
      grid_spec=pltpu.PrefetchScalarGridSpec(
          num_scalar_prefetch=0,
          grid=(Mp // tm, Np // tn, Kp // tk),
          in_specs=[
              pl.BlockSpec((tm, tk), lambda i, j, k: (i, k)),
              pl.BlockSpec((tk, tn), lambda i, j, k: (k, j)),
              pl.BlockSpec((1, tn), lambda i, j, k: (0, j)),
          ],
          out_specs=pl.BlockSpec((tm, tn), lambda i, j, k: (i, j)),
          scratch_shapes=[pltpu.VMEM((tm, tn), jnp.float32)],
      ),
      compiler_params=pltpu.CompilerParams(
          dimension_semantics=("parallel", "parallel", "arbitrary"),
          vmem_limit_bytes=_VMEM_LIMIT),
  )(a_p, w_p, bias_p)
  return out[:M, :n_out]


# --------------------------------------------------------------------------
# Parameter init (deterministic, synthetic — replaces pretrained VGG19 weights)
# Conv weights keep their logical channel counts (no 128-padding); FC weights
# are padded once to 128-lane multiples, bf16.
# --------------------------------------------------------------------------
def init_params(key, cfg, in_ch, spatial, fc_hidden):
  params = {"conv": [], "fc": None, "fc_out": fc_hidden}
  cin = in_ch
  for v in cfg:
    if v == 'M':
      continue
    key, kw = jax.random.split(key)
    fan_in = 9 * cin
    w = jax.random.normal(kw, (3, 3, cin, v), jnp.float32) * jnp.sqrt(2.0 / fan_in)
    params["conv"].append((w.astype(jnp.bfloat16), jnp.zeros((1, v), jnp.float32)))
    cin = v

  # classifier[:-3] = Linear(in_feat, H), ReLU, Dropout, Linear(H, H)
  spatial_out = spatial // (2 ** cfg.count('M'))
  in_feat = cin * spatial_out * spatial_out
  key, k1, k2 = jax.random.split(key, 3)
  w1 = jax.random.normal(k1, (in_feat, fc_hidden), jnp.float32) * jnp.sqrt(2.0 / in_feat)
  w2 = jax.random.normal(k2, (fc_hidden, fc_hidden), jnp.float32) * jnp.sqrt(1.0 / fc_hidden)
  kp1, np1 = _round_up(in_feat, LANE), _round_up(fc_hidden, LANE)
  kp2 = _round_up(fc_hidden, LANE)
  w1 = _pad_axis(_pad_axis(w1, 0, kp1), 1, np1).astype(jnp.bfloat16)
  w2 = _pad_axis(_pad_axis(w2, 0, kp2), 1, np1).astype(jnp.bfloat16)
  b1 = jnp.zeros((1, np1), jnp.float32)
  b2 = jnp.zeros((1, np1), jnp.float32)
  params["fc"] = (w1, b1, w2, b2)
  return params


# --------------------------------------------------------------------------
# Forward pass (matches Encoder.forward semantics: features -> flatten -> fc)
# --------------------------------------------------------------------------
def encoder_forward(x_nchw, params, cfg):
  # NCHW (PyTorch) -> NHWC, bf16.  No channel padding (Cin=3 stays 3).
  x = jnp.transpose(x_nchw, (0, 2, 3, 1)).astype(jnp.bfloat16)

  ci = 0
  for v in cfg:
    if v == 'M':
      x = maxpool2x2(x)
    else:
      w, b = params["conv"][ci]
      ci += 1
      x = conv3x3_relu(x, w, b)

  # output.view(output.size(0), -1): torch flattens in (C, H, W) order.
  B = x.shape[0]
  feat = jnp.transpose(x, (0, 3, 1, 2)).reshape(B, -1)

  w1, b1, w2, b2 = params["fc"]
  n_h = params["fc_out"]
  h = linear(feat, w1, b1, n_h, relu=True, out_dtype=jnp.bfloat16)
  # Dropout(p=0.5) is the identity at inference time.
  # TODO(synk): training-mode dropout not implemented.
  out = linear(h, w2, b2, n_h, relu=False, out_dtype=jnp.float32)
  return out                                              # (B, fc_hidden)


if __name__ == "__main__":
  key = jax.random.PRNGKey(0)
  kparam, kx = jax.random.split(key)

  # Reduced VGG-style config + small shapes for the sandbox smoke test
  # (same op structure as VGG19 features + classifier[:-3]).  Full model:
  #   cfg = VGG19_CFG; spatial = 224; fc_hidden = 4096.
  cfg = [16, 16, 'M', 32, 32, 'M']
  batch, in_ch, spatial, fc_hidden = 2, 3, 16, 64

  params = init_params(kparam, cfg, in_ch, spatial, fc_hidden)
  x = jax.random.normal(kx, (batch, in_ch, spatial, spatial), jnp.float32)

  out = encoder_forward(x, params, cfg)
  out = jax.block_until_ready(out)

  assert out.shape == (batch, fc_hidden), out.shape
  assert jnp.all(jnp.isfinite(out)), "non-finite output"
  print("KERNEL_OK")
</pallas_src>

<mosaic_0001>
module attributes {stable_mosaic.version = 11 : i64} {
  func.func @_conv3x3_relu_kernel(%arg0: i32, %arg1: i32, %arg2: memref<1x18x18x3xbf16, #tpu.memory_space<vmem>>, %arg3: memref<3x3x3x16xbf16, #tpu.memory_space<vmem>>, %arg4: memref<1x16xf32, #tpu.memory_space<vmem>>, %arg5: memref<1x16x16x16xbf16, #tpu.memory_space<vmem>>, %arg6: memref<256x16xf32, #tpu.memory_space<vmem>>) attributes {dimension_semantics = [#tpu.dimension_semantics<parallel>, #tpu.dimension_semantics<parallel>], iteration_bounds = array<i64: 2, 1>, scalar_prefetch = 0 : i64, scratch_operands = 1 : i64, tpu.core_type = #tpu.core_type<tc>, window_params = [{transform_indices = @transform_0, window_bounds = array<i64: 1, 18, 18, 3>}, {pipeline_mode = #tpu.pipeline_mode<synchronous>, transform_indices = @transform_1, window_bounds = array<i64: 3, 3, 3, 16>}, {pipeline_mode = #tpu.pipeline_mode<synchronous>, transform_indices = @transform_2, window_bounds = array<i64: 1, 16>}, {transform_indices = @transform_3, window_bounds = array<i64: 1, 16, 16, 16>}]} {
    %c16_i32 = arith.constant 16 : i32
    %0 = arith.muli %arg1, %c16_i32 : i32
    %c0_i32 = arith.constant 0 : i32
    %1 = arith.addi %0, %c0_i32 : i32
    %c0 = arith.constant 0 : index
    %2 = arith.index_cast %1 : i32 to index
    %c0_0 = arith.constant 0 : index
    %c0_1 = arith.constant 0 : index
    %3 = vector.load %arg2[%c0, %2, %c0_0, %c0_1] : memref<1x18x18x3xbf16, #tpu.memory_space<vmem>>, vector<1x16x16x3xbf16>
    %4 = vector.shape_cast %3 : vector<1x16x16x3xbf16> to vector<16x16x3xbf16>
    %5 = vector.shape_cast %4 : vector<16x16x3xbf16> to vector<256x3xbf16>
    %c0_2 = arith.constant 0 : index
    %c0_3 = arith.constant 0 : index
    %c0_4 = arith.constant 0 : index
    %c0_5 = arith.constant 0 : index
    %6 = vector.load %arg3[%c0_2, %c0_3, %c0_4, %c0_5] : memref<3x3x3x16xbf16, #tpu.memory_space<vmem>>, vector<1x1x3x16xbf16>
    %7 = vector.shape_cast %6 : vector<1x1x3x16xbf16> to vector<3x16xbf16>
    %cst = arith.constant dense<0.000000e+00> : vector<256x16xf32>
    %8 = tpu.matmul %5, %7, %cst {dimension_numbers = #tpu.dot_dimension_numbers<[1], [0], [0], [1], [0, 0, 1, 1], [], []>} : vector<256x3xbf16>, vector<3x16xbf16>, vector<256x16xf32> -> vector<256x16xf32>
    %c0_6 = arith.constant 0 : index
    %c0_7 = arith.constant 0 : index
    %9 = vector.load %arg6[%c0_6, %c0_7] : memref<256x16xf32, #tpu.memory_space<vmem>>, vector<256x16xf32>
    tpu.vector_store %arg6[%c0_6, %c0_7], %8 {strides = array<i32>} : memref<256x16xf32, #tpu.memory_space<vmem>>, vector<256x16xf32>,
    %c0_i32_8 = arith.constant 0 : i32
    %10 = arith.addi %0, %c0_i32_8 : i32
    %c0_9 = arith.constant 0 : index
    %11 = arith.index_cast %10 : i32 to index
    %c1 = arith.constant 1 : index
    %c0_10 = arith.constant 0 : index
    %12 = vector.load %arg2[%c0_9, %11, %c1, %c0_10] : memref<1x18x18x3xbf16, #tpu.memory_space<vmem>>, vector<1x16x16x3xbf16>
    %13 = vector.shape_cast %12 : vector<1x16x16x3xbf16> to vector<16x16x3xbf16>
    %14 = vector.shape_cast %13 : vector<16x16x3xbf16> to vector<256x3xbf16>
    %c0_11 = arith.constant 0 : index
    %c1_12 = arith.constant 1 : index
    %c0_13 = arith.constant 0 : index
    %c0_14 = arith.constant 0 : index
    %15 = vector.load %arg3[%c0_11, %c1_12, %c0_13, %c0_14] : memref<3x3x3x16xbf16, #tpu.memory_space<vmem>>, vector<1x1x3x16xbf16>
    %16 = vector.shape_cast %15 : vector<1x1x3x16xbf16> to vector<3x16xbf16>
    %cst_15 = arith.constant dense<0.000000e+00> : vector<256x16xf32>
    %17 = tpu.matmul %14, %16, %cst_15 {dimension_numbers = #tpu.dot_dimension_numbers<[1], [0], [0], [1], [0, 0, 1, 1], [], []>} : vector<256x3xbf16>, vector<3x16xbf16>, vector<256x16xf32> -> vector<256x16xf32>
    %c0_16 = arith.constant 0 : index
    %c0_17 = arith.constant 0 : index
    %18 = vector.load %arg6[%c0_16, %c0_17] : memref<256x16xf32, #tpu.memory_space<vmem>>, vector<256x16xf32>
    %19 = arith.addf %18, %17 : vector<256x16xf32>
    %c0_18 = arith.constant 0 : index
    %c0_19 = arith.constant 0 : index
    %20 = vector.load %arg6[%c0_18, %c0_19] : memref<256x16xf32, #tpu.memory_space<vmem>>, vector<256x16xf32>
    tpu.vector_store %arg6[%c0_18, %c0_19], %19 {strides = array<i32>} : memref<256x16xf32, #tpu.memory_space<vmem>>, vector<256x16xf32>,
    %c0_i32_20 = arith.constant 0 : i32
    %21 = arith.addi %0, %c0_i32_20 : i32
    %c0_21 = arith.constant 0 : index
    %22 = arith.index_cast %21 : i32 to index
    %c2 = arith.constant 2 : index
    %c0_22 = arith.constant 0 : index
    %23 = vector.load %arg2[%c0_21, %22, %c2, %c0_22] : memref<1x18x18x3xbf16, #tpu.memory_space<vmem>>, vector<1x16x16x3xbf16>
    %24 = vector.shape_cast %23 : vector<1x16x16x3xbf16> to vector<16x16x3xbf16>
    %25 = vector.shape_cast %24 : vector<16x16x3xbf16> to vector<256x3xbf16>
    %c0_23 = arith.constant 0 : index
    %c2_24 = arith.constant 2 : index
    %c0_25 = arith.constant 0 : index
    %c0_26 = arith.constant 0 : index
    %26 = vector.load %arg3[%c0_23, %c2_24, %c0_25, %c0_26] : memref<3x3x3x16xbf16, #tpu.memory_space<vmem>>, vector<1x1x3x16xbf16>
    %27 = vector.shape_cast %26 : vector<1x1x3x16xbf16> to vector<3x16xbf16>
    %cst_27 = arith.constant dense<0.000000e+00> : vector<256x16xf32>
    %28 = tpu.matmul %25, %27, %cst_27 {dimension_numbers = #tpu.dot_dimension_numbers<[1], [0], [0], [1], [0, 0, 1, 1], [], []>} : vector<256x3xbf16>, vector<3x16xbf16>, vector<256x16xf32> -> vector<256x16xf32>
    %c0_28 = arith.constant 0 : index
    %c0_29 = arith.constant 0 : index
    %29 = vector.load %arg6[%c0_28, %c0_29] : memref<256x16xf32, #tpu.memory_space<vmem>>, vector<256x16xf32>
    %30 = arith.addf %29, %28 : vector<256x16xf32>
    %c0_30 = arith.constant 0 : index
    %c0_31 = arith.constant 0 : index
    %31 = vector.load %arg6[%c0_30, %c0_31] : memref<256x16xf32, #tpu.memory_space<vmem>>, vector<256x16xf32>
    tpu.vector_store %arg6[%c0_30, %c0_31], %30 {strides = array<i32>} : memref<256x16xf32, #tpu.memory_space<vmem>>, vector<256x16xf32>,
    %c1_i32 = arith.constant 1 : i32
    %32 = arith.addi %0, %c1_i32 : i32
    %c0_32 = arith.constant 0 : index
    %33 = arith.index_cast %32 : i32 to index
    %c0_33 = arith.constant 0 : index
    %c0_34 = arith.constant 0 : index
    %34 = vector.load %arg2[%c0_32, %33, %c0_33, %c0_34] : memref<1x18x18x3xbf16, #tpu.memory_space<vmem>>, vector<1x16x16x3xbf16>
    %35 = vector.shape_cast %34 : vector<1x16x16x3xbf16> to vector<16x16x3xbf16>
    %36 = vector.shape_cast %35 : vector<16x16x3xbf16> to vector<256x3xbf16>
    %c1_35 = arith.constant 1 : index
    %c0_36 = arith.constant 0 : index
    %c0_37 = arith.constant 0 : index
    %c0_38 = arith.constant 0 : index
    %37 = vector.load %arg3[%c1_35, %c0_36, %c0_37, %c0_38] : memref<3x3x3x16xbf16, #tpu.memory_space<vmem>>, vector<1x1x3x16xbf16>
    %38 = vector.shape_cast %37 : vector<1x1x3x16xbf16> to vector<3x16xbf16>
    %cst_39 = arith.constant dense<0.000000e+00> : vector<256x16xf32>
    %39 = tpu.matmul %36, %38, %cst_39 {dimension_numbers = #tpu.dot_dimension_numbers<[1], [0], [0], [1], [0, 0, 1, 1], [], []>} : vector<256x3xbf16>, vector<3x16xbf16>, vector<256x16xf32> -> vector<256x16xf32>
    %c0_40 = arith.constant 0 : index
    %c0_41 = arith.constant 0 : index
    %40 = vector.load %arg6[%c0_40, %c0_41] : memref<256x16xf32, #tpu.memory_space<vmem>>, vector<256x16xf32>
    %41 = arith.addf %40, %39 : vector<256x16xf32>
    %c0_42 = arith.constant 0 : index
    %c0_43 = arith.constant 0 : index
    %42 = vector.load %arg6[%c0_42, %c0_43] : memref<256x16xf32, #tpu.memory_space<vmem>>, vector<256x16xf32>
    tpu.vector_store %arg6[%c0_42, %c0_43], %41 {strides = array<i32>} : memref<256x16xf32, #tpu.memory_space<vmem>>, vector<256x16xf32>,
    %c1_i32_44 = arith.constant 1 : i32
    %43 = arith.addi %0, %c1_i32_44 : i32
    %c0_45 = arith.constant 0 : index
    %44 = arith.index_cast %43 : i32 to index
    %c1_46 = arith.constant 1 : index
    %c0_47 = arith.constant 0 : index
    %45 = vector.load %arg2[%c0_45, %44, %c1_46, %c0_47] : memref<1x18x18x3xbf16, #tpu.memory_space<vmem>>, vector<1x16x16x3xbf16>
    %46 = vector.shape_cast %45 : vector<1x16x16x3xbf16> to vector<16x16x3xbf16>
    %47 = vector.shape_cast %46 : vector<16x16x3xbf16> to vector<256x3xbf16>
    %c1_48 = arith.constant 1 : index
    %c1_49 = arith.constant 1 : index
    %c0_50 = arith.constant 0 : index
    %c0_51 = arith.constant 0 : index
    %48 = vector.load %arg3[%c1_48, %c1_49, %c0_50, %c0_51] : memref<3x3x3x16xbf16, #tpu.memory_space<vmem>>, vector<1x1x3x16xbf16>
    %49 = vector.shape_cast %48 : vector<1x1x3x16xbf16> to vector<3x16xbf16>
    %cst_52 = arith.constant dense<0.000000e+00> : vector<256x16xf32>
    %50 = tpu.matmul %47, %49, %cst_52 {dimension_numbers = #tpu.dot_dimension_numbers<[1], [0], [0], [1], [0, 0, 1, 1], [], []>} : vector<256x3xbf16>, vector<3x16xbf16>, vector<256x16xf32> -> vector<256x16xf32>
    %c0_53 = arith.constant 0 : index
    %c0_54 = arith.constant 0 : index
    %51 = vector.load %arg6[%c0_53, %c0_54] : memref<256x16xf32, #tpu.memory_space<vmem>>, vector<256x16xf32>
    %52 = arith.addf %51, %50 : vector<256x16xf32>
    %c0_55 = arith.constant 0 : index
    %c0_56 = arith.constant 0 : index
    %53 = vector.load %arg6[%c0_55, %c0_56] : memref<256x16xf32, #tpu.memory_space<vmem>>, vector<256x16xf32>
    tpu.vector_store %arg6[%c0_55, %c0_56], %52 {strides = array<i32>} : memref<256x16xf32, #tpu.memory_space<vmem>>, vector<256x16xf32>,
    %c1_i32_57 = arith.constant 1 : i32
    %54 = arith.addi %0, %c1_i32_57 : i32
    %c0_58 = arith.constant 0 : index
    %55 = arith.index_cast %54 : i32 to index
    %c2_59 = arith.constant 2 : index
    %c0_60 = arith.constant 0 : index
    %56 = vector.load %arg2[%c0_58, %55, %c2_59, %c0_60] : memref<1x18x18x3xbf16, #tpu.memory_space<vmem>>, vector<1x16x16x3xbf16>
    %57 = vector.shape_cast %56 : vector<1x16x16x3xbf16> to vector<16x16x3xbf16>
    %58 = vector.shape_cast %57 : vector<16x16x3xbf16> to vector<256x3xbf16>
    %c1_61 = arith.constant 1 : index
    %c2_62 = arith.constant 2 : index
    %c0_63 = arith.constant 0 : index
    %c0_64 = arith.constant 0 : index
    %59 = vector.load %arg3[%c1_61, %c2_62, %c0_63, %c0_64] : memref<3x3x3x16xbf16, #tpu.memory_space<vmem>>, vector<1x1x3x16xbf16>
    %60 = vector.shape_cast %59 : vector<1x1x3x16xbf16> to vector<3x16xbf16>
    %cst_65 = arith.constant dense<0.000000e+00> : vector<256x16xf32>
    %61 = tpu.matmul %58, %60, %cst_65 {dimension_numbers = #tpu.dot_dimension_numbers<[1], [0], [0], [1], [0, 0, 1, 1], [], []>} : vector<256x3xbf16>, vector<3x16xbf16>, vector<256x16xf32> -> vector<256x16xf32>
    %c0_66 = arith.constant 0 : index
    %c0_67 = arith.constant 0 : index
    %62 = vector.load %arg6[%c0_66, %c0_67] : memref<256x16xf32, #tpu.memory_space<vmem>>, vector<256x16xf32>
    %63 = arith.addf %62, %61 : vector<256x16xf32>
    %c0_68 = arith.constant 0 : index
    %c0_69 = arith.constant 0 : index
    %64 = vector.load %arg6[%c0_68, %c0_69] : memref<256x16xf32, #tpu.memory_space<vmem>>, vector<256x16xf32>
    tpu.vector_store %arg6[%c0_68, %c0_69], %63 {strides = array<i32>} : memref<256x16xf32, #tpu.memory_space<vmem>>, vector<256x16xf32>,
    %c2_i32 = arith.constant 2 : i32
    %65 = arith.addi %0, %c2_i32 : i32
    %c0_70 = arith.constant 0 : index
    %66 = arith.index_cast %65 : i32 to index
    %c0_71 = arith.constant 0 : index
    %c0_72 = arith.constant 0 : index
    %67 = vector.load %arg2[%c0_70, %66, %c0_71, %c0_72] : memref<1x18x18x3xbf16, #tpu.memory_space<vmem>>, vector<1x16x16x3xbf16>
    %68 = vector.shape_cast %67 : vector<1x16x16x3xbf16> to vector<16x16x3xbf16>
    %69 = vector.shape_cast %68 : vector<16x16x3xbf16> to vector<256x3xbf16>
    %c2_73 = arith.constant 2 : index
    %c0_74 = arith.constant 0 : index
    %c0_75 = arith.constant 0 : index
    %c0_76 = arith.constant 0 : index
    %70 = vector.load %arg3[%c2_73, %c0_74, %c0_75, %c0_76] : memref<3x3x3x16xbf16, #tpu.memory_space<vmem>>, vector<1x1x3x16xbf16>
    %71 = vector.shape_cast %70 : vector<1x1x3x16xbf16> to vector<3x16xbf16>
    %cst_77 = arith.constant dense<0.000000e+00> : vector<256x16xf32>
    %72 = tpu.matmul %69, %71, %cst_77 {dimension_numbers = #tpu.dot_dimension_numbers<[1], [0], [0], [1], [0, 0, 1, 1], [], []>} : vector<256x3xbf16>, vector<3x16xbf16>, vector<256x16xf32> -> vector<256x16xf32>
    %c0_78 = arith.constant 0 : index
    %c0_79 = arith.constant 0 : index
    %73 = vector.load %arg6[%c0_78, %c0_79] : memref<256x16xf32, #tpu.memory_space<vmem>>, vector<256x16xf32>
    %74 = arith.addf %73, %72 : vector<256x16xf32>
    %c0_80 = arith.constant 0 : index
    %c0_81 = arith.constant 0 : index
    %75 = vector.load %arg6[%c0_80, %c0_81] : memref<256x16xf32, #tpu.memory_space<vmem>>, vector<256x16xf32>
    tpu.vector_store %arg6[%c0_80, %c0_81], %74 {strides = array<i32>} : memref<256x16xf32, #tpu.memory_space<vmem>>, vector<256x16xf32>,
    %c2_i32_82 = arith.constant 2 : i32
    %76 = arith.addi %0, %c2_i32_82 : i32
    %c0_83 = arith.constant 0 : index
    %77 = arith.index_cast %76 : i32 to index
    %c1_84 = arith.constant 1 : index
    %c0_85 = arith.constant 0 : index
    %78 = vector.load %arg2[%c0_83, %77, %c1_84, %c0_85] : memref<1x18x18x3xbf16, #tpu.memory_space<vmem>>, vector<1x16x16x3xbf16>
    %79 = vector.shape_cast %78 : vector<1x16x16x3xbf16> to vector<16x16x3xbf16>
    %80 = vector.shape_cast %79 : vector<16x16x3xbf16> to vector<256x3xbf16>
    %c2_86 = arith.constant 2 : index
    %c1_87 = arith.constant 1 : index
    %c0_88 = arith.constant 0 : index
    %c0_89 = arith.constant 0 : index
    %81 = vector.load %arg3[%c2_86, %c1_87, %c0_88, %c0_89] : memref<3x3x3x16xbf16, #tpu.memory_space<vmem>>, vector<1x1x3x16xbf16>
    %82 = vector.shape_cast %81 : vector<1x1x3x16xbf16> to vector<3x16xbf16>
    %cst_90 = arith.constant dense<0.000000e+00> : vector<256x16xf32>
    %83 = tpu.matmul %80, %82, %cst_90 {dimension_numbers = #tpu.dot_dimension_numbers<[1], [0], [0], [1], [0, 0, 1, 1], [], []>} : vector<256x3xbf16>, vector<3x16xbf16>, vector<256x16xf32> -> vector<256x16xf32>
    %c0_91 = arith.constant 0 : index
    %c0_92 = arith.constant 0 : index
    %84 = vector.load %arg6[%c0_91, %c0_92] : memref<256x16xf32, #tpu.memory_space<vmem>>, vector<256x16xf32>
    %85 = arith.addf %84, %83 : vector<256x16xf32>
    %c0_93 = arith.constant 0 : index
    %c0_94 = arith.constant 0 : index
    %86 = vector.load %arg6[%c0_93, %c0_94] : memref<256x16xf32, #tpu.memory_space<vmem>>, vector<256x16xf32>
    tpu.vector_store %arg6[%c0_93, %c0_94], %85 {strides = array<i32>} : memref<256x16xf32, #tpu.memory_space<vmem>>, vector<256x16xf32>,
    %c2_i32_95 = arith.constant 2 : i32
    %87 = arith.addi %0, %c2_i32_95 : i32
    %c0_96 = arith.constant 0 : index
    %88 = arith.index_cast %87 : i32 to index
    %c2_97 = arith.constant 2 : index
    %c0_98 = arith.constant 0 : index
    %89 = vector.load %arg2[%c0_96, %88, %c2_97, %c0_98] : memref<1x18x18x3xbf16, #tpu.memory_space<vmem>>, vector<1x16x16x3xbf16>
    %90 = vector.shape_cast %89 : vector<1x16x16x3xbf16> to vector<16x16x3xbf16>
    %91 = vector.shape_cast %90 : vector<16x16x3xbf16> to vector<256x3xbf16>
    %c2_99 = arith.constant 2 : index
    %c2_100 = arith.constant 2 : index
    %c0_101 = arith.constant 0 : index
    %c0_102 = arith.constant 0 : index
    %92 = vector.load %arg3[%c2_99, %c2_100, %c0_101, %c0_102] : memref<3x3x3x16xbf16, #tpu.memory_space<vmem>>, vector<1x1x3x16xbf16>
    %93 = vector.shape_cast %92 : vector<1x1x3x16xbf16> to vector<3x16xbf16>
    %cst_103 = arith.constant dense<0.000000e+00> : vector<256x16xf32>
    %94 = tpu.matmul %91, %93, %cst_103 {dimension_numbers = #tpu.dot_dimension_numbers<[1], [0], [0], [1], [0, 0, 1, 1], [], []>} : vector<256x3xbf16>, vector<3x16xbf16>, vector<256x16xf32> -> vector<256x16xf32>
    %c0_104 = arith.constant 0 : index
    %c0_105 = arith.constant 0 : index
    %95 = vector.load %arg6[%c0_104, %c0_105] : memref<256x16xf32, #tpu.memory_space<vmem>>, vector<256x16xf32>
    %96 = arith.addf %95, %94 : vector<256x16xf32>
    %c0_106 = arith.constant 0 : index
    %c0_107 = arith.constant 0 : index
    %97 = vector.load %arg6[%c0_106, %c0_107] : memref<256x16xf32, #tpu.memory_space<vmem>>, vector<256x16xf32>
    tpu.vector_store %arg6[%c0_106, %c0_107], %96 {strides = array<i32>} : memref<256x16xf32, #tpu.memory_space<vmem>>, vector<256x16xf32>,
    %c0_108 = arith.constant 0 : index
    %c0_109 = arith.constant 0 : index
    %98 = vector.load %arg6[%c0_108, %c0_109] : memref<256x16xf32, #tpu.memory_space<vmem>>, vector<256x16xf32>
    %c0_110 = arith.constant 0 : index
    %c0_111 = arith.constant 0 : index
    %99 = vector.load %arg4[%c0_110, %c0_111] : memref<1x16xf32, #tpu.memory_space<vmem>>, vector<1x16xf32>
    %100 = vector.broadcast %99 : vector<1x16xf32> to vector<256x16xf32>
    %101 = arith.addf %98, %100 : vector<256x16xf32>
    %cst_112 = arith.constant 0.000000e+00 : f32
    %102 = vector.broadcast %cst_112 : f32 to vector<256x16xf32>
    %103 = arith.maximumf %101, %102 : vector<256x16xf32>
    %104 = vector.shape_cast %103 : vector<256x16xf32> to vector<1x16x16x16xf32>
    %105 = arith.truncf %104 : vector<1x16x16x16xf32> to vector<1x16x16x16xbf16>
    %c0_113 = arith.constant 0 : index
    %c0_114 = arith.constant 0 : index
    %c0_115 = arith.constant 0 : index
    %c0_116 = arith.constant 0 : index
    %106 = vector.load %arg5[%c0_113, %c0_114, %c0_115, %c0_116] : memref<1x16x16x16xbf16, #tpu.memory_space<vmem>>, vector<1x16x16x16xbf16>
    tpu.vector_store %arg5[%c0_113, %c0_114, %c0_115, %c0_116], %105 {strides = array<i32>} : memref<1x16x16x16xbf16, #tpu.memory_space<vmem>>, vector<1x16x16x16xbf16>,
    return
  }
  func.func @transform_0(%arg0: i32, %arg1: i32) -> (i32, i32, i32, i32) {
    %c0_i32 = arith.constant 0 : i32
    %c0_i32_0 = arith.constant 0 : i32
    %c0_i32_1 = arith.constant 0 : i32
    %c0_i32_2 = arith.constant 0 : i32
    return %arg0, %c0_i32, %c0_i32_0, %c0_i32_1 : i32, i32, i32, i32
  }
  func.func @transform_1(%arg0: i32, %arg1: i32) -> (i32, i32, i32, i32) {
    %c0_i32 = arith.constant 0 : i32
    %c0_i32_0 = arith.constant 0 : i32
    %c0_i32_1 = arith.constant 0 : i32
    %c0_i32_2 = arith.constant 0 : i32
    %c0_i32_3 = arith.constant 0 : i32
    return %c0_i32, %c0_i32_0, %c0_i32_1, %c0_i32_2 : i32, i32, i32, i32
  }
  func.func @transform_2(%arg0: i32, %arg1: i32) -> (i32, i32) {
    %c0_i32 = arith.constant 0 : i32
    %c0_i32_0 = arith.constant 0 : i32
    %c0_i32_1 = arith.constant 0 : i32
    return %c0_i32, %c0_i32_0 : i32, i32
  }
  func.func @transform_3(%arg0: i32, %arg1: i32) -> (i32, i32, i32, i32) {
    %c0_i32 = arith.constant 0 : i32
    %c0_i32_0 = arith.constant 0 : i32
    %c0_i32_1 = arith.constant 0 : i32
    return %arg0, %arg1, %c0_i32, %c0_i32_0 : i32, i32, i32, i32
  }
}

</mosaic_0001>

<bundles_post_ra>
// kernel: tpu_custom_call.1
= control target key start
LH: loop header
LB: loop body
LE: loop exit
PB: predicated region body
PF: predicated region fallthrough
CT: control target
= control target key end

     0   :  { %8 = vsyncpa [#allocation4], 0  ;;  %s7854_s0 = inlined_call_operand.vmem [shape: bf16[2,18,18,3], index: 0, kind: input, shape index: {}]   ;;  %s7855_s1 = inlined_call_operand.vmem [shape: bf16[3,3,3,16], index: 1, kind: input, shape index: {}]   ;;  %s7856_s2 = inlined_call_operand.vmem [shape: f32[1,16], index: 2, kind: input, shape index: {}]   ;;  %s7857_s3 = inlined_call_operand.hbm [shape: bf16[2,16,16,16], index: 3, kind: output, shape index: {}]  }
   0x1   :  { %10 = vsyncpa [#allocation4 + $0x1], 0  ;;  %s5973_s12 = smov 0   ;;  %s5975_s13 = smov 0  }
   0x2   :  { %s5977_s14 = smov 0   ;;  %s5979_s15 = smov 0  }
   0x3   :  { %s5981_s16 = smov 0   ;;  %s5983_s17 = smov 0  }
   0x4 LB: > { %s5097_s18 = sadd.s32 4294967295, %s5948_s17   ;;  %s5098_s19 = sadd.s32 4294967294, %s5948_s17   ;;  %s5948_s17 = sphi %s5983_s17, %s16_s17   ;;  %s5944_s16 = sphi %s5981_s16, %s7868_s16   ;;  %s5940_s15 = sphi %s5979_s15, %s7867_s15   ;;  %s5936_s14 = sphi %s5977_s14, %s7866_s14   ;;  %s5932_s13 = sphi %s5975_s13, %s7865_s13   ;;  %s5928_s12 = sphi %s5973_s12, %s7864_s12  }
   0x5   : > { %s28_s20 = sadd.s32 1, %s5944_s16  ;;  %s105_s21 = sadd.s32 1, %s5936_s14 }
   0x6   : > { %p30_p0 = scmp.ge.s32.totalorder %s28_s20, 2  ;;  %p115_p1 = scmp.ne.s32.totalorder %s5936_s14, %s5932_s13 }
   0x7   : > { %p116_p2 = scmp.eq.s32.totalorder %s5097_s18, 1  ;;  %p121_p3 = scmp.ne.s32.totalorder %s5932_s13, %s5928_s12 }
   0x8   : > { %s7870_s20 = smov (%p30_p0, %s28_s20), 0  ;;  %p122_p5 = scmp.eq.s32.totalorder %s5098_s19, 1 }
   0x9   : > { %p6013_p4 = por %p116_p2, %p115_p1  ;;  %s100_s23 = ssub.s32 %s5944_s16, %s7870_s20 }
   0xa   : > { %p5101_p6 = scmp.ge.s32.totalorder %s5948_s17, 1  ;;  %p103_p7 = scmp.eq.s32.totalorder %s100_s23, 0 }
   0xb   : > { %p6020_p8 = por %p122_p5, %p121_p3  ;;  %p154_p9 = scmp.lt.s32.totalorder %s5948_s17, 3 }
   0xc   : > { %s6026_s25 = scalar_select %p103_p7, %s5936_s14, %s105_s21  }
   0xd   : > { %p155_p10 = pnand %p5101_p6, %p154_p9 }
   0xe   : > { %p178_p11 = scmp.lt.s32.totalorder (!%p155_p10), %s5940_s15, 1  ;;  %s175_s7 = sand.u32 (!%p155_p10), 1, %s5932_s13  }
   0xf   : > { %158 = sbr.rel (%p155_p10) target bundleno = 772 (0x304), region = 32  ;;  %s7387_s8 = sshll.u32 (!%p155_p10), %s175_s7, 7 }
  0x10   : > { %s7410_s9 = scalar_lea.vmem (!%p155_p10), [#allocation3], %s7387_s8  ;;  %s5805_s18 = sshll.u32 (!%p155_p10), %s5940_s15, 7 }
  0x11   : > { %s5010_s23 = scalar_lea.hbm (!%p155_p10), %s7857_s3, %s5805_s18  ;;  %s5011_s26 = sshll.u32 (!%p155_p10), %s7410_s9, 4  ;;  %s5012_s26 = int_to_ptr.vmem [resolvable:$true] %s5011_s26 }
  0x12   : > { %s5013_s27 = sshll.u32 (!%p155_p10), %s5010_s23, 4  ;;  %s5014_s27 = int_to_ptr.hbm [resolvable:$true] %s5013_s27 }
  0x13   : > { %s5884_s28 = sshra.s32 (!%p155_p10), %s5014_s27, 4  ;;  %s5885_s28 = int_to_ptr.hbm [resolvable:$true] %s5884_s28 }
  0x14   : > { %v221_v0 = vld [vmem:[%s7855_s1] sm:$0x3]  ;;  %vm351_vm0 = vcmask 1040384   ;;  %vm352_vm1 = vcmask 1041408   ;;  %v5950_v1 = vmov 65535   ;;  %s179_s5 = scalar_select %p178_p11, %s5940_s15, 1 }
  0x15   : > { %v353_v2 = vsel %vm351_vm0, 4294967295, %v5950_v1  ;;  %v5184_v3 = vld [vmem:[%s7855_s1 + $0x2] sm:$0x3]  ;;  %v5217_v4 = vld [vmem:[%s7855_s1 + $0x4] sm:$0x3]  ;;  %vm302_vm2 = vcmask 23552   ;;  %p5891_p1 = scmp.lt.s32.totalorder %s5885_s28, %s7857_s3 }
  0x16   : > { %v6038_v5 = vsel %vm352_vm1, %v353_v2, 0  ;;  %v5266_v6 = vld [vmem:[%s7855_s1 + $0x6] sm:$0x3]  ;;  %v5395_v11 = vld [vmem:[%s7855_s1 + $0x8] sm:$0x3]  ;;  %s5809_s10 = smul.u32 216, %s179_s5 }
  0x17   : > { %v356_v7 = vand.u32 %v6038_v5, %v221_v0  ;;  %v1014_v8 = vand.u32 %v5184_v3, %v6038_v5  ;;  %v1511_v9 = vand.u32 %v5217_v4, %v6038_v5  ;;  %v1865_v10 = vand.u32 %v5266_v6, %v6038_v5  ;;  %v5476_v27 = vld [vmem:[%s7855_s1 + $0xa] sm:$0x3]  ;;  %v5525_v28 = vld [vmem:[%s7855_s1 + $0xc] sm:$0x3]  ;;  %v5654_v33 = vld [vmem:[%s7855_s1 + $0xe] sm:$0x3] }
  0x18   : > { %s6054_s19 = scalar_lea.vmem %s7854_s0, %s5809_s10  ;;  %v2583_v12 = vand.u32 %v5395_v11, %v6038_v5  ;;  %v3077_v31 = vand.u32 %v5476_v27, %v6038_v5  ;;  %v3431_v32 = vand.u32 %v5525_v28, %v6038_v5  ;;  %v4149_v36 = vand.u32 %v5654_v33, %v6038_v5  ;;  %s4996_s15 = scalar_lea.sflag [#allocation4], %s175_s7 }
  0x19   : > { %5806 = vmatpush.bf16.msra.mxu1 %v356_v7  ;;  %5807 = vmatpush.bf16.msra.mxu2 %v356_v7  ;;  %v5761_v13 = vld [vmem:[%s6054_s19 + $0x30] sm:$0xff]  ;;  %v5765_v14 = vld [vmem:[%s6054_s19 + $0x60] sm:$0xff]  ;;  %v5763_v21 = vld [vmem:[%s6054_s19 + $0x48] sm:$0xff]  ;;  %vm528_vm3 = vsmask.f32 3328  ;;  %vm1297_vm5 = vcmask 1042432  }
  0x1a   : > { %5808 = vmatpush.bf16.msra.mxu3 %v356_v7  ;;  %v5769_v15 = vld [vmem:[%s6054_s19 + $0x90] sm:$0xff]  ;;  %365 = vmatpush.bf16.msra.mxu0 %v356_v7  ;;  %v5757_v16 = vld [vmem:[%s6054_s19] sm:$0xff]  ;;  %v5767_v22 = vld [vmem:[%s6054_s19 + $0x78] sm:$0xff]  ;;  %vm529_vm4 = vsmask.f32 7440  ;;  %vm1298_vm6 = vcmask 1046532  }
  0x1b   : > { %v5762_v17 = vld [vmem:[%s6054_s19 + $0x3c] sm:$0xff]  ;;  %v5766_v18 = vld [vmem:[%s6054_s19 + $0x6c] sm:$0xff]  ;;  %v481_v26 = vld [vmem:[%s6054_s19 + $0x4] sm:$0xf]  ;;  %vm447_vm9 = vcmask 130048   ;;  %vm4962_vm10 = vcmask 125952  }
  0x1c   : > { %5172 = vmatmul.msk.bf16.vlgmr.msra.gmra.mxu1 %vm302_vm2, %v5761_v13  ;;  %5176 = vmatmul.msk.bf16.vlgmr.msra.gmra.mxu2 %vm302_vm2, %v5765_v14  ;;  %v5770_v19 = vld [vmem:[%s6054_s19 + $0x9c] sm:$0xff]  ;;  %v5758_v20 = vld [vmem:[%s6054_s19 + $0xc] sm:$0xff]  ;;  %v541_v34 = vshll.u32 %v481_v26, 16  ;;  %v545_v35 = vshrl.u32 %v481_v26, 16  ;;  %v482_v37 = vld [vmem:[%s6054_s19 + $0x8] sm:$0x1] }
  0x1d   : > { %1023 = vmatpush.bf16.msrb.mxu1 %v1014_v8  ;;  %1520 = vmatpush.bf16.msrb.mxu2 %v1511_v9  ;;  %v5771_v23 = vld [vmem:[%s6054_s19 + $0xa8] sm:$0xff]  ;;  %v5759_v24 = vld [vmem:[%s6054_s19 + $0x18] sm:$0xff]  ;;  %v480_v25 = vld [vmem:[%s6054_s19] sm:$0xf]  ;;  %v551_v42 = vshll.u32 %v482_v37, 16  ;;  %s5886_s29 = scalar_lea.hbm %s5885_s28, 128 }
  0x1e   : > { %1874 = vmatpush.bf16.msrb.mxu3 %v1865_v10  ;;  %2592 = vmatpush.bf16.msrb.mxu0 %v2583_v12  ;;  %v532_v29 = vshrl.u32 %v480_v25, 16  ;;  %v535_v30 = vshll.u32 %v480_v25, 16  ;;  %v6096_v40 = vrot.slane %v541_v34, 5  ;;  %v547_v41 = vrot.slane %v545_v35, 4  ;;  %v1202_v44 = vld [vmem:[%s6054_s19 + $0x4] sm:$0xf]  ;;  %vm6115_vm7 = vmor %vm528_vm3, %vm529_vm4  ;;  %p5887_p12 = scmp.ne.s32.totalorder %s5885_s28, %s5886_s29 }
  0x1f   : > { %5180 = vmatmul.msk.bf16.vlgmr.msra.gmra.mxu3 %vm302_vm2, %v5769_v15  ;;  %5168 = vmatmul.msk.bf16.vlgmr.msra.gmra.mxu0 %vm302_vm2, %v5757_v16  ;;  %v5347_v45 = vld [vmem:[%s6054_s19 + $0xc] sm:$0xf]  ;;  %v5764_v46 = vld [vmem:[%s6054_s19 + $0x54] sm:$0xff]  ;;  %v5768_v47 = vld [vmem:[%s6054_s19 + $0x84] sm:$0xff]  ;;  %v553_v53 = vrot.slane %v551_v42, 5  ;;  %v1302_v56 = vrot.slane %v1202_v44, 5 }
  0x20   : > { %v534_v38 = vrot.slane %v532_v29, 4  ;;  %v537_v39 = vrot.slane %v535_v30, 5  ;;  %v548_v48 = vor.u32 %v547_v41, %v6096_v40  ;;  %v5348_v49 = vld [vmem:[%s6054_s19 + $0x10] sm:$0xf]  ;;  %v2101_v50 = vshrl.u32 %v5347_v45, 16  ;;  %v5772_v52 = vld [vmem:[%s6054_s19 + $0xb4] sm:$0xff]  ;;  %vm6122_vm8 = vmor %vm1297_vm5, %vm1298_vm6  ;;  %p5888_p13 = pnand %p5887_p12, %p6013_p4 }
  0x21   : > { %3086 = vmatpush.bf16.msra.mxu1 %v3077_v31  ;;  %3440 = vmatpush.bf16.msra.mxu2 %v3431_v32  ;;  %v2104_v51 = vshll.u32 %v5347_v45, 16  ;;  %v1201_v54 = vld [vmem:[%s6054_s19] sm:$0xe]  ;;  %v1203_v55 = vld [vmem:[%s6054_s19 + $0x8] sm:$0x1]  ;;  %v2110_v62 = vshll.u32 %v5348_v49, 16 }
  0x22   : > { %4158 = vmatpush.bf16.msra.mxu3 %v4149_v36  ;;  %v538_v43 = vor.u32 %v537_v39, %v534_v38  ;;  %v5349_v57 = vld [vmem:[%s6054_s19 + $0x14] sm:$0x1]  ;;  %v2103_v58 = vrot.slane %v2101_v50, 4  ;;  %v483_v60 = vld [vmem:[%s6054_s19 + $0xc] sm:$0xf]  ;;  %v2114_v63 = vshrl.u32 %v5348_v49, 16  ;;  %p5889_p0 = pneg %p5888_p13 }
  0x23   : > { %v2106_v61 = vrot.slane %v2104_v51, 5  ;;  %v549_v0 = vrot.slane %v548_v48, 4  ;;  %v5760_v1 = vld [vmem:[%s6054_s19 + $0x24] sm:$0xff]  ;;  %v484_v2 = vld [vmem:[%s6054_s19 + $0x10] sm:$0xf]  ;;  %v2112_v4 = vrot.slane %v2110_v62, 5 }
  0x24   : > { %v539_v59 = vrot.slane %v538_v43, 4  ;;  %v2116_v6 = vrot.slane %v2114_v63, 4  ;;  %v2120_v7 = vshll.u32 %v5349_v57, 16  ;;  %v5201_v9 = vrot.slane %v1201_v54, 9  ;;  %v485_v30 = vld [vmem:[%s6054_s19 + $0x14] sm:$0x1] }
  0x25   : > { %v2107_v3 = vor.u32 %v2106_v61, %v2103_v58  ;;  %v1304_v10 = vrot.slane %v1302_v56, 4  ;;  %v1305_v11 = vrot.slane %v1203_v55, 5  ;;  %v556_v12 = vshrl.u32 %v483_v60, 16  ;;  %v5350_v41 = vld [vmem:[%s6054_s19 + $0x18] sm:$0xf]  ;;  %s5890_s5 = scalar_lea.hbm %s7857_s3, 256 }
  0x26   : > { %v559_v14 = vshll.u32 %v483_v60, 16  ;;  %v565_v15 = vshll.u32 %v484_v2, 16  ;;  %v569_v16 = vshrl.u32 %v484_v2, 16  ;;  %v1303_v25 = vsel %vm6122_vm8, %v5201_v9, %v1302_v56  ;;  %v5351_v44 = vld [vmem:[%s6054_s19 + $0x1c] sm:$0xf]  ;;  %p5892_p2 = scmp.lt.s32.totalorder %s5890_s5, %s5886_s29 }
  0x27   : > { %v1306_v26 = vsel %vm6122_vm8, %v1304_v10, %v1305_v11  ;;  %v1414_v35 = vunpack.c.l.b16 %v1303_v25  ;;  %v575_v39 = vshll.u32 %v485_v30, 16  ;;  %v2125_v45 = vshrl.u32 %v5350_v41, 16  ;;  %v1204_v50 = vld [vmem:[%s6054_s19 + $0xc] sm:$0xe]  ;;  %v486_v55 = vld [vmem:[%s6054_s19 + $0x18] sm:$0xf] }
  0x28   : > { %v561_v27 = vrot.slane %v559_v14, 5  ;;  %v6140_v28 = vrot.slane %v565_v15, 5  ;;  %v571_v29 = vrot.slane %v569_v16, 4  ;;  %v1415_v36 = vunpack.c.l.b16 %v1306_v26  ;;  %v1206_v61 = vld [vmem:[%s6054_s19 + $0x14] sm:$0x1]  ;;  %p5893_p3 = por %p5892_p2, %p5891_p1 }
  0x29   : > { %v577_v54 = vrot.slane %v575_v39, 5  ;;  %v2134_v57 = vshll.u32 %v5351_v44, 16  ;;  %v2138_v58 = vshrl.u32 %v5351_v44, 16  ;;  %v487_v63 = vld [vmem:[%s6054_s19 + $0x1c] sm:$0xf]  ;;  %v583_v9 = vshll.u32 %v486_v55, 16 }
  0x2a   : > { %v572_v38 = vor.u32 %v571_v29, %v6140_v28  ;;  %v1446_v49 = vpack.c.b16 %v1415_v36, %v1414_v35  ;;  %v1312_v10 = vrot.slane %v1206_v61, 5  ;;  %v589_v11 = vshll.u32 %v487_v63, 16  ;;  %v1207_v44 = vld [vmem:[%s6054_s19 + $0x18] sm:$0xe]  ;;  %p5894_p5 = pnand %p5893_p3, %p5889_p0 }
  0x2b   : > { %v2140_v2 = vrot.slane %v2138_v58, 4 }
  0x2c   : > { %5173 = vmatmul.msk.bf16.gmra.mxu1 %vm302_vm2, %v5762_v17  ;;  %5177 = vmatmul.msk.bf16.gmra.mxu2 %vm302_vm2, %v5766_v18  ;;  %v2117_v17 = vor.u32 %v2116_v6, %v2112_v4  ;;  %v5735_v18 = vld [vmem:[%s7855_s1 + $0x10] sm:$0x3]  ;;  %v573_v60 = vrot.slane %v572_v38, 4  ;;  %v591_v25 = vrot.slane %v589_v11, 5 }
  0x2f   : > { %5181 = vmatmul.msk.bf16.gmra.mxu3 %vm302_vm2, %v5770_v19  ;;  %5169 = vmatmul.msk.bf16.gmra.mxu0 %vm302_vm2, %v5758_v20  ;;  %v4643_v19 = vand.u32 %v5735_v18, %v6038_v5  ;;  %v2108_v20 = vrot.slane %v2107_v3, 4  ;;  %v558_v5 = vrot.slane %v556_v12, 4  ;;  %v593_v12 = vshrl.u32 %v487_v63, 16 }
  0x31   : > { %4652 = vmatpush.bf16.msra.mxu0 %v4643_v19  ;;  %v2113_v31 = vsel %vm6115_vm7, %v2108_v20, %v2112_v4  ;;  %v562_v37 = vor.u32 %v561_v27, %v558_v5  ;;  %v5202_v4 = vrot.slane %v1204_v50, 9  ;;  %v578_v19 = vsel %vm6115_vm7, %v573_v60, %v577_v54  ;;  %v1208_v5 = vld [vmem:[%s6054_s19 + $0x1c] sm:$0xf] }
  0x32   : > { %v2486_v42 = vunpack.c.l.b16 %v2113_v31  ;;  %v595_v26 = vrot.slane %v593_v12, 4  ;;  %v920_v29 = vunpack.c.l.b16 %v578_v19  ;;  %v1316_v36 = vrot.slane %v1208_v5, 5 }
  0x34   : > { %v596_v35 = vor.u32 %v595_v26, %v591_v25 }
  0x3c   : > { %5174 = vmatmul.msk.bf16.gmra.mxu1 %vm302_vm2, %v5763_v21  ;;  %5178 = vmatmul.msk.bf16.gmra.mxu2 %vm302_vm2, %v5767_v22  ;;  %v2118_v21 = vrot.slane %v2117_v17, 4  ;;  %v2122_v22 = vrot.slane %v2120_v7, 5  ;;  %v580_v7 = vshrl.u32 %v486_v55, 16 }
  0x3e   : > { %v2123_v32 = vsel %vm6115_vm7, %v2118_v21, %v2122_v22  ;;  %v582_v20 = vrot.slane %v580_v7, 4  ;;  %v585_v21 = vrot.slane %v583_v9, 5 }
  0x3f   : > { %5182 = vmatmul.msk.bf16.gmra.mxu3 %vm302_vm2, %v5771_v23  ;;  %5170 = vmatmul.msk.bf16.gmra.mxu0 %vm302_vm2, %v5759_v24  ;;  %v544_v23 = vsel %vm6115_vm7, %v539_v59, %v6096_v40  ;;  %v554_v24 = vsel %vm6115_vm7, %v549_v0, %v553_v53  ;;  %v1205_v40 = vld [vmem:[%s6054_s19 + $0x10] sm:$0xf]  ;;  %v2487_v43 = vunpack.c.l.b16 %v2123_v32  ;;  %v2127_v53 = vrot.slane %v2125_v45, 4  ;;  %v1209_v45 = vld [vmem:[%s6054_s19 + $0x20] sm:$0x1] }
  0x40   : > { %v917_v33 = vunpack.c.l.b16 %v544_v23  ;;  %v918_v34 = vunpack.c.l.b16 %v554_v24  ;;  %v1309_v51 = vrot.slane %v1205_v40, 5  ;;  %v563_v59 = vrot.slane %v562_v37, 4  ;;  %v488_v24 = vld [vmem:[%s6054_s19 + $0x20] sm:$0x1]  ;;  %v5353_v37 = vld [vmem:[%s6054_s19 + $0x24] sm:$0xf] }
  0x41   : > { %v2518_v62 = vpack.c.b16 %v2487_v43, %v2486_v42  ;;  %v5354_v40 = vld [vmem:[%s6054_s19 + $0x28] sm:$0xf]  ;;  %v2152_v42 = vshll.u32 %v5353_v37, 16  ;;  %v1319_v58 = vrot.slane %v1209_v45, 5 }
  0x42   : > { %v949_v48 = vpack.c.b16 %v918_v34, %v917_v33  ;;  %v1311_v6 = vrot.slane %v1309_v51, 4  ;;  %v568_v18 = vsel %vm6115_vm7, %v563_v59, %v6140_v28  ;;  %v1310_v22 = vsel %vm6122_vm8, %v5202_v4, %v1309_v51  ;;  %v5774_v51 = vld [vmem:[%s6054_s19 + $0x18] sm:$0xff] }
  0x43   : > { %v919_v27 = vunpack.c.l.b16 %v568_v18  ;;  %v1416_v31 = vunpack.c.l.b16 %v1310_v22  ;;  %v586_v33 = vor.u32 %v585_v21, %v582_v20  ;;  %v599_v34 = vshll.u32 %v488_v24, 16  ;;  %v491_v21 = vld [vmem:[%s6054_s19 + $0x2c] sm:$0x1] }
  0x44   : > { %v1313_v23 = vsel %vm6122_vm8, %v1311_v6, %v1312_v10  ;;  %v2158_v54 = vshll.u32 %v5354_v40, 16  ;;  %v2162_v55 = vshrl.u32 %v5354_v40, 16 }
  0x45   : > { %v1417_v32 = vunpack.c.l.b16 %v1313_v23  ;;  %v950_v43 = vpack.c.b16 %v920_v29, %v919_v27  ;;  %v5356_v27 = vld [vmem:[%s6054_s19 + $0x30] sm:$0xf]  ;;  %v5357_v29 = vld [vmem:[%s6054_s19 + $0x34] sm:$0xf] }
  0x46   : > { %v2160_v61 = vrot.slane %v2158_v54, 5 }
  0x4c   : > { %5175 = vmatmul.msk.bf16.gmra.mxu1 %vm302_vm2, %v5764_v46  ;;  %5179 = vmatmul.msk.bf16.gmra.mxu2 %vm302_vm2, %v5768_v47  ;;  %v2128_v46 = vshll.u32 %v5350_v41, 16  ;;  %v5773_v47 = vld [vmem:[%s6054_s19 + $0xc] sm:$0xff]  ;;  %v2149_v41 = vshrl.u32 %v5353_v37, 16 }
  0x4e   : > { %v2130_v56 = vrot.slane %v2128_v46, 5  ;;  %v1447_v46 = vpack.c.b16 %v1417_v32, %v1416_v31  ;;  %v2151_v50 = vrot.slane %v2149_v41, 4  ;;  %v2173_v32 = vshrl.u32 %v5356_v27, 16  ;;  %v5358_v41 = vld [vmem:[%s6054_s19 + $0x38] sm:$0x1] }
  0x4f   : > { %5183 = vmatmul.msk.bf16.gmra.mxu3 %vm302_vm2, %v5772_v52  ;;  %5171 = vmatmul.msk.bf16.gmra.mxu0 %vm302_vm2, %v5760_v1  ;;  %v5352_v52 = vld [vmem:[%s6054_s19 + $0x20] sm:$0x1]  ;;  %v2136_v1 = vrot.slane %v2134_v57, 5  ;;  %v1318_v57 = vrot.slane %v1316_v36, 4 }
  0x50   : > { %v2131_v0 = vor.u32 %v2130_v56, %v2127_v53  ;;  %v2144_v3 = vshll.u32 %v5352_v52, 16  ;;  %v597_v52 = vrot.slane %v596_v35, 4  ;;  %v2154_v53 = vrot.slane %v2152_v42, 5  ;;  %v5775_v42 = vld [vmem:[%s6054_s19 + $0x24] sm:$0xff] }
  0x51   : > { %v2141_v14 = vor.u32 %v2140_v2, %v2136_v1  ;;  %v5203_v56 = vrot.slane %v1207_v44, 9  ;;  %v1320_v7 = vsel %vm6122_vm8, %v1318_v57, %v1319_v58  ;;  %v2182_v35 = vshll.u32 %v5357_v29, 16 }
  0x52   : > { %v2132_v15 = vrot.slane %v2131_v0, 4  ;;  %v2146_v17 = vrot.slane %v2144_v3, 5  ;;  %v2155_v60 = vor.u32 %v2154_v53, %v2151_v50  ;;  %v489_v0 = vld [vmem:[%s6054_s19 + $0x24] sm:$0xf]  ;;  %v1419_v20 = vunpack.c.l.b16 %v1320_v7 }
  0x53   : > { %v2142_v16 = vrot.slane %v2141_v14, 4  ;;  %v1317_v6 = vsel %vm6122_vm8, %v5203_v56, %v1316_v36  ;;  %v604_v12 = vshrl.u32 %v489_v0, 16  ;;  %v607_v14 = vshll.u32 %v489_v0, 16 }
  0x54   : > { %v2137_v28 = vsel %vm6115_vm7, %v2132_v15, %v2136_v1  ;;  %v490_v1 = vld [vmem:[%s6054_s19 + $0x28] sm:$0xf]  ;;  %v2156_v9 = vrot.slane %v2155_v60, 4  ;;  %v1418_v19 = vunpack.c.l.b16 %v1317_v6  ;;  %v2186_v36 = vshrl.u32 %v5357_v29, 16  ;;  %v492_v60 = vld [vmem:[%s6054_s19 + $0x30] sm:$0xf] }
  0x55   : > { %v2147_v30 = vsel %vm6115_vm7, %v2142_v16, %v2146_v17  ;;  %v2488_v38 = vunpack.c.l.b16 %v2137_v28  ;;  %v613_v15 = vshll.u32 %v490_v1, 16  ;;  %v617_v16 = vshrl.u32 %v490_v1, 16  ;;  %v1211_v28 = vld [vmem:[%s6054_s19 + $0x28] sm:$0xf] }
  0x56   : > { %v2489_v39 = vunpack.c.l.b16 %v2147_v30  ;;  %v2161_v22 = vsel %vm6115_vm7, %v2156_v9, %v2160_v61  ;;  %v606_v24 = vrot.slane %v604_v12, 4  ;;  %v1323_v44 = vrot.slane %v1211_v28, 5 }
  0x57   : > { %v615_v26 = vrot.slane %v613_v15, 5  ;;  %v619_v5 = vrot.slane %v617_v16, 4  ;;  %v2490_v30 = vunpack.c.l.b16 %v2161_v22  ;;  %v2175_v45 = vrot.slane %v2173_v32, 4 }
  0x58   : > { %v2519_v59 = vpack.c.b16 %v2489_v39, %v2488_v38  ;;  %v1448_v38 = vpack.c.b16 %v1419_v20, %v1418_v19  ;;  %v2188_v50 = vrot.slane %v2186_v36, 4  ;;  %v1325_v58 = vrot.slane %v1323_v44, 4  ;;  %v5359_v20 = vld [vmem:[%s6054_s19 + $0x3c] sm:$0xf]  ;;  %v5776_v36 = vld [vmem:[%s6054_s19 + $0x30] sm:$0xff] }
  0x59   : > { %v620_v40 = vor.u32 %v619_v5, %v615_v26  ;;  %v2200_v29 = vshll.u32 %v5359_v20, 16 }
  0x5b   : > { %v621_v54 = vrot.slane %v620_v40, 4 }
  0x5c   : > { %5185 = vmatmul.msk.bf16.vlgmr.msrb.gmra.mxu1 %vm302_vm2, %v949_v48  ;;  %5218 = vmatmul.msk.bf16.vlgmr.msrb.gmra.mxu2 %vm302_vm2, %v1446_v49  ;;  %v601_v48 = vrot.slane %v599_v34, 5  ;;  %v5355_v49 = vld [vmem:[%s6054_s19 + $0x2c] sm:$0x1]  ;;  %v623_v34 = vshll.u32 %v491_v21, 16  ;;  %v494_v21 = vld [vmem:[%s6054_s19 + $0x38] sm:$0x1] }
  0x5d   : > { %v2168_v63 = vshll.u32 %v5355_v49, 16  ;;  %v2184_v49 = vrot.slane %v2182_v35, 5  ;;  %v5361_v35 = vld [vmem:[%s6054_s19 + $0x44] sm:$0x1] }
  0x5e   : > { %v602_v4 = vsel %vm6115_vm7, %v597_v52, %v601_v48  ;;  %v2192_v52 = vshll.u32 %v5358_v41, 16  ;;  %v2202_v41 = vrot.slane %v2200_v29, 5 }
  0x5f   : > { %5331 = vmatmul.msk.bf16.vlgmr.msrb.gmra.mxu3 %vm302_vm2, %v5773_v47  ;;  %5396 = vmatmul.msk.bf16.vlgmr.msrb.gmra.mxu0 %vm302_vm2, %v2518_v62  ;;  %v587_v47 = vrot.slane %v586_v33, 4  ;;  %v2164_v62 = vrot.slane %v2162_v55, 4  ;;  %v2170_v11 = vrot.slane %v2168_v63, 5  ;;  %v922_v18 = vunpack.c.l.b16 %v602_v4 }
  0x60   : > { %v2176_v33 = vshll.u32 %v5356_v27, 16  ;;  %v2189_v56 = vor.u32 %v2188_v50, %v2184_v49  ;;  %v2194_v0 = vrot.slane %v2192_v52, 5  ;;  %v631_v4 = vshll.u32 %v492_v60, 16 }
  0x61   : > { %v2165_v2 = vor.u32 %v2164_v62, %v2160_v61  ;;  %v592_v3 = vsel %vm6115_vm7, %v587_v47, %v591_v25  ;;  %v609_v25 = vrot.slane %v607_v14, 5  ;;  %v493_v61 = vld [vmem:[%s6054_s19 + $0x34] sm:$0xf]  ;;  %v2197_v27 = vshrl.u32 %v5359_v20, 16  ;;  %v1217_v20 = vld [vmem:[%s6054_s19 + $0x40] sm:$0xf] }
  0x62   : > { %v921_v17 = vunpack.c.l.b16 %v592_v3  ;;  %v2178_v48 = vrot.slane %v2176_v33, 5  ;;  %v2190_v63 = vrot.slane %v2189_v56, 4  ;;  %v628_v3 = vshrl.u32 %v492_v60, 16  ;;  %v496_v56 = vld [vmem:[%s6054_s19 + $0x40] sm:$0xf] }
  0x63   : > { %v2166_v10 = vrot.slane %v2165_v2, 4  ;;  %v610_v39 = vor.u32 %v609_v25, %v606_v24  ;;  %v637_v9 = vshll.u32 %v493_v61, 16  ;;  %v633_v19 = vrot.slane %v631_v4, 5  ;;  %v5360_v24 = vld [vmem:[%s6054_s19 + $0x40] sm:$0xf] }
  0x64   : > { %v951_v37 = vpack.c.b16 %v922_v18, %v921_v17  ;;  %v2179_v55 = vor.u32 %v2178_v48, %v2175_v45  ;;  %v2195_v15 = vsel %vm6115_vm7, %v2190_v63, %v2194_v0  ;;  %v630_v18 = vrot.slane %v628_v3, 4  ;;  %v1214_v25 = vld [vmem:[%s6054_s19 + $0x34] sm:$0xf] }
  0x65   : > { %v2171_v23 = vsel %vm6115_vm7, %v2166_v10, %v2170_v11  ;;  %v611_v53 = vrot.slane %v610_v39, 4  ;;  %v641_v10 = vshrl.u32 %v493_v61, 16  ;;  %v639_v22 = vrot.slane %v637_v9, 5 }
  0x66   : > { %v2491_v31 = vunpack.c.l.b16 %v2171_v23  ;;  %v2180_v62 = vrot.slane %v2179_v55, 4  ;;  %v2493_v5 = vunpack.c.l.b16 %v2195_v15  ;;  %v2206_v28 = vshll.u32 %v5360_v24, 16  ;;  %v495_v55 = vld [vmem:[%s6054_s19 + $0x3c] sm:$0xf]  ;;  %v5362_v15 = vld [vmem:[%s6054_s19 + $0x48] sm:$0xf] }
  0x67   : > { %v616_v1 = vsel %vm6115_vm7, %v611_v53, %v615_v26  ;;  %v643_v23 = vrot.slane %v641_v10, 4  ;;  %v634_v33 = vor.u32 %v633_v19, %v630_v18  ;;  %v1330_v39 = vrot.slane %v1214_v25, 5  ;;  %v5363_v19 = vld [vmem:[%s6054_s19 + $0x4c] sm:$0xf] }
  0x68   : > { %v2520_v47 = vpack.c.b16 %v2491_v31, %v2490_v30  ;;  %v923_v11 = vunpack.c.l.b16 %v616_v1  ;;  %v2185_v14 = vsel %vm6115_vm7, %v2180_v62, %v2184_v49  ;;  %v2210_v30 = vshrl.u32 %v5360_v24, 16 }
  0x69   : > { %v2492_v26 = vunpack.c.l.b16 %v2185_v14  ;;  %v2199_v40 = vrot.slane %v2197_v27, 4  ;;  %v635_v48 = vrot.slane %v634_v33, 4  ;;  %v1332_v53 = vrot.slane %v1330_v39, 4 }
  0x6a   : > { %v2212_v45 = vrot.slane %v2210_v30, 4  ;;  %v652_v62 = vshrl.u32 %v495_v55, 16  ;;  %v655_v63 = vshll.u32 %v495_v55, 16  ;;  %v665_v3 = vshrl.u32 %v496_v56, 16  ;;  %v5364_v30 = vld [vmem:[%s6054_s19 + $0x50] sm:$0x1] }
  0x6b   : > { %v640_v60 = vsel %vm6115_vm7, %v635_v48, %v639_v22  ;;  %v2224_v24 = vshll.u32 %v5362_v15, 16  ;;  %v2230_v25 = vshll.u32 %v5363_v19, 16 }
  0x6c   : > { %5186 = vmatmul.msk.bf16.gmra.mxu1 %vm302_vm2, %v950_v43  ;;  %5219 = vmatmul.msk.bf16.gmra.mxu2 %vm302_vm2, %v1447_v46  ;;  %v1210_v43 = vld [vmem:[%s6054_s19 + $0x24] sm:$0xe]  ;;  %v1212_v46 = vld [vmem:[%s6054_s19 + $0x2c] sm:$0x1]  ;;  %v925_v4 = vunpack.c.l.b16 %v640_v60  ;;  %v657_v14 = vrot.slane %v655_v63, 5  ;;  %v667_v18 = vrot.slane %v665_v3, 4 }
  0x6d   : > { %v5204_v57 = vrot.slane %v1210_v43, 9  ;;  %v2521_v43 = vpack.c.b16 %v2493_v5, %v2492_v26  ;;  %v2234_v26 = vshrl.u32 %v5363_v19, 16  ;;  %v5365_v19 = vld [vmem:[%s6054_s19 + $0x54] sm:$0xf] }
  0x6f   : > { %5332 = vmatmul.msk.bf16.gmra.mxu3 %vm302_vm2, %v5774_v51  ;;  %5397 = vmatmul.msk.bf16.gmra.mxu0 %vm302_vm2, %v2519_v59  ;;  %v625_v51 = vrot.slane %v623_v34, 5  ;;  %v1326_v59 = vrot.slane %v1212_v46, 5  ;;  %v1324_v6 = vsel %vm6122_vm8, %v5204_v57, %v1323_v44  ;;  %v647_v34 = vshll.u32 %v494_v21, 16 }
  0x70   : > { %v1420_v16 = vunpack.c.l.b16 %v1324_v6  ;;  %v2208_v44 = vrot.slane %v2206_v28, 5  ;;  %v2203_v46 = vor.u32 %v2202_v41, %v2199_v40  ;;  %v2232_v40 = vrot.slane %v2230_v25, 5 }
  0x71   : > { %v626_v2 = vsel %vm6115_vm7, %v621_v54, %v625_v51  ;;  %v1327_v7 = vsel %vm6122_vm8, %v1325_v58, %v1326_v59  ;;  %v649_v52 = vrot.slane %v647_v34, 5  ;;  %v1216_v34 = vld [vmem:[%s6054_s19 + $0x3c] sm:$0xe]  ;;  %v2236_v41 = vrot.slane %v2234_v26, 4 }
  0x72   : > { %v924_v12 = vunpack.c.l.b16 %v626_v2  ;;  %v1421_v17 = vunpack.c.l.b16 %v1327_v7  ;;  %v2213_v50 = vor.u32 %v2212_v45, %v2208_v44  ;;  %v2204_v57 = vrot.slane %v2203_v46, 4 }
  0x73   : > { %v661_v2 = vshll.u32 %v496_v56, 16  ;;  %v5206_v46 = vrot.slane %v1216_v34, 9  ;;  %v2248_v25 = vshll.u32 %v5365_v19, 16  ;;  %v5367_v34 = vld [vmem:[%s6054_s19 + $0x5c] sm:$0x1] }
  0x74   : > { %v952_v31 = vpack.c.b16 %v924_v12, %v923_v11  ;;  %v1449_v32 = vpack.c.b16 %v1421_v17, %v1420_v16  ;;  %v2214_v58 = vrot.slane %v2213_v50, 4  ;;  %v2209_v7 = vsel %vm6115_vm7, %v2204_v57, %v2208_v44  ;;  %v497_v16 = vld [vmem:[%s6054_s19 + $0x44] sm:$0x1] }
  0x75   : > { %v654_v12 = vrot.slane %v652_v62, 4  ;;  %v663_v17 = vrot.slane %v661_v2, 5  ;;  %v2494_v21 = vunpack.c.l.b16 %v2209_v7  ;;  %v671_v28 = vshll.u32 %v497_v16, 16  ;;  %v500_v16 = vld [vmem:[%s6054_s19 + $0x50] sm:$0x1] }
  0x76   : > { %v2240_v44 = vshll.u32 %v5364_v30, 16 }
  0x77   : > { %v658_v29 = vor.u32 %v657_v14, %v654_v12  ;;  %v668_v33 = vor.u32 %v667_v18, %v663_v17 }
  0x78   : > { %v2242_v57 = vrot.slane %v2240_v44, 5 }
  0x79   : > { %v659_v45 = vrot.slane %v658_v29, 4  ;;  %v669_v48 = vrot.slane %v668_v33, 4  ;;  %v695_v33 = vshll.u32 %v500_v16, 16 }
  0x7c   : > { %5187 = vmatmul.msk.bf16.gmra.mxu1 %vm302_vm2, %v951_v37  ;;  %5220 = vmatmul.msk.bf16.gmra.mxu2 %vm302_vm2, %v1448_v38  ;;  %v644_v37 = vor.u32 %v643_v23, %v639_v22  ;;  %v1213_v38 = vld [vmem:[%s6054_s19 + $0x30] sm:$0xe]  ;;  %v2221_v23 = vshrl.u32 %v5362_v15, 16 }
  0x7d   : > { %v5205_v49 = vrot.slane %v1213_v38, 9  ;;  %v1218_v38 = vld [vmem:[%s6054_s19 + $0x44] sm:$0x1] }
  0x7e   : > { %v645_v51 = vrot.slane %v644_v37, 4  ;;  %v2226_v37 = vrot.slane %v2224_v24, 5  ;;  %v2245_v24 = vshrl.u32 %v5365_v19, 16  ;;  %v503_v19 = vld [vmem:[%s6054_s19 + $0x5c] sm:$0x1] }
  0x7f   : > { %5333 = vmatmul.msk.bf16.gmra.mxu3 %vm302_vm2, %v5775_v42  ;;  %5398 = vmatmul.msk.bf16.gmra.mxu0 %vm302_vm2, %v2520_v47  ;;  %v1215_v42 = vld [vmem:[%s6054_s19 + $0x38] sm:$0x1]  ;;  %v2216_v47 = vshll.u32 %v5361_v35, 16  ;;  %v1331_v61 = vsel %vm6122_vm8, %v5205_v49, %v1330_v39  ;;  %v1337_v35 = vrot.slane %v1217_v20, 5  ;;  %v673_v49 = vrot.slane %v671_v28, 5 }
  0x80   : > { %v1333_v54 = vrot.slane %v1215_v42, 5  ;;  %v650_v0 = vsel %vm6115_vm7, %v645_v51, %v649_v52  ;;  %v1422_v6 = vunpack.c.l.b16 %v1331_v61  ;;  %v1340_v51 = vrot.slane %v1218_v38, 5  ;;  %v498_v52 = vld [vmem:[%s6054_s19 + $0x48] sm:$0xf]  ;;  %v1220_v20 = vld [vmem:[%s6054_s19 + $0x4c] sm:$0xf] }
  0x81   : > { %v2218_v59 = vrot.slane %v2216_v47, 5  ;;  %v926_v10 = vunpack.c.l.b16 %v650_v0  ;;  %v2237_v47 = vor.u32 %v2236_v41, %v2232_v40  ;;  %v1339_v50 = vrot.slane %v1337_v35, 4  ;;  %v1221_v41 = vld [vmem:[%s6054_s19 + $0x50] sm:$0x1] }
  0x82   : > { %v1334_v1 = vsel %vm6122_vm8, %v1332_v53, %v1333_v54  ;;  %v499_v53 = vld [vmem:[%s6054_s19 + $0x4c] sm:$0xf]  ;;  %v1338_v60 = vsel %vm6122_vm8, %v5206_v46, %v1337_v35  ;;  %v676_v61 = vshrl.u32 %v498_v52, 16  ;;  %v679_v62 = vshll.u32 %v498_v52, 16 }
  0x83   : > { %v2219_v9 = vsel %vm6115_vm7, %v2214_v58, %v2218_v59  ;;  %v1423_v11 = vunpack.c.l.b16 %v1334_v1  ;;  %v953_v5 = vpack.c.b16 %v926_v10, %v925_v4  ;;  %v2238_v56 = vrot.slane %v2237_v47, 4 }
  0x84   : > { %v2495_v22 = vunpack.c.l.b16 %v2219_v9  ;;  %v664_v59 = vsel %vm6115_vm7, %v659_v45, %v663_v17  ;;  %v674_v0 = vsel %vm6115_vm7, %v669_v48, %v673_v49  ;;  %v1341_v1 = vsel %vm6122_vm8, %v1339_v50, %v1340_v51 }
  0x85   : > { %v1450_v27 = vpack.c.b16 %v1423_v11, %v1422_v6  ;;  %v685_v2 = vshll.u32 %v499_v53, 16  ;;  %v689_v3 = vshrl.u32 %v499_v53, 16  ;;  %v927_v4 = vunpack.c.l.b16 %v664_v59 }
  0x86   : > { %v2522_v39 = vpack.c.b16 %v2495_v22, %v2494_v21  ;;  %v1424_v6 = vunpack.c.l.b16 %v1338_v60  ;;  %v2243_v10 = vsel %vm6115_vm7, %v2238_v56, %v2242_v57  ;;  %v928_v11 = vunpack.c.l.b16 %v674_v0  ;;  %v502_v56 = vld [vmem:[%s6054_s19 + $0x58] sm:$0xf] }
  0x87   : > { %v1425_v12 = vunpack.c.l.b16 %v1341_v1  ;;  %v678_v14 = vrot.slane %v676_v61, 4  ;;  %v681_v15 = vrot.slane %v679_v62, 5  ;;  %v6285_v17 = vrot.slane %v685_v2, 5 }
  0x88   : > { %v691_v18 = vrot.slane %v689_v3, 4  ;;  %v2497_v22 = vunpack.c.l.b16 %v2243_v10  ;;  %v954_v29 = vpack.c.b16 %v928_v11, %v927_v4  ;;  %v1344_v38 = vrot.slane %v1220_v20, 5 }
  0x89   : > { %v1451_v28 = vpack.c.b16 %v1425_v12, %v1424_v6  ;;  %v2264_v47 = vshll.u32 %v5367_v34, 16  ;;  %v697_v52 = vrot.slane %v695_v33, 5  ;;  %v709_v6 = vshll.u32 %v502_v56, 16  ;;  %v5779_v34 = vld [vmem:[%s6054_s19 + $0x54] sm:$0xff] }
  0x8a   : > { %v1346_v53 = vrot.slane %v1344_v38, 4 }
  0x8b   : > { %v2266_v60 = vrot.slane %v2264_v47, 5  ;;  %v6323_v20 = vrot.slane %v709_v6, 5 }
  0x8c   : > { %5188 = vmatmul.msk.bf16.gmra.mxu1 %vm302_vm2, %v952_v31  ;;  %5221 = vmatmul.msk.bf16.gmra.mxu2 %vm302_vm2, %v1449_v32  ;;  %v5777_v32 = vld [vmem:[%s6054_s19 + $0x3c] sm:$0xff] }
  0x8f   : > { %5334 = vmatmul.msk.bf16.gmra.mxu3 %vm302_vm2, %v5776_v36  ;;  %5399 = vmatmul.msk.bf16.gmra.mxu0 %vm302_vm2, %v2521_v43  ;;  %v2223_v36 = vrot.slane %v2221_v23, 4  ;;  %v5366_v23 = vld [vmem:[%s6054_s19 + $0x58] sm:$0xf] }
  0x91   : > { %v2227_v43 = vor.u32 %v2226_v37, %v2223_v36  ;;  %v692_v36 = vor.u32 %v691_v18, %v6285_v17  ;;  %v1219_v37 = vld [vmem:[%s6054_s19 + $0x48] sm:$0xe] }
  0x92   : > { %v5207_v49 = vrot.slane %v1219_v37, 9  ;;  %v5370_v37 = vld [vmem:[%s6054_s19 + $0x68] sm:$0x1] }
  0x93   : > { %v2228_v55 = vrot.slane %v2227_v43, 4  ;;  %v693_v51 = vrot.slane %v692_v36, 4  ;;  %v719_v36 = vshll.u32 %v503_v19, 16 }
  0x95   : > { %v2233_v9 = vsel %vm6115_vm7, %v2228_v55, %v2232_v40  ;;  %v2250_v40 = vrot.slane %v2248_v25, 5  ;;  %v501_v55 = vld [vmem:[%s6054_s19 + $0x54] sm:$0xf]  ;;  %v698_v3 = vsel %vm6115_vm7, %v693_v51, %v697_v52 }
  0x96   : > { %v2496_v21 = vunpack.c.l.b16 %v2233_v9  ;;  %v700_v0 = vshrl.u32 %v501_v55, 16  ;;  %v703_v1 = vshll.u32 %v501_v55, 16  ;;  %v721_v55 = vrot.slane %v719_v36, 5 }
  0x98   : > { %v705_v18 = vrot.slane %v703_v1, 5 }
  0x99   : > { %v387_v31 = vpop.f32.mrf.mxu1 }
  0x9a   : > { %456 = vst.msk [vmem:[#allocation2 + $0x40] sm:$0xff] %vm447_vm9, %v387_v31  ;;  %v5778_v31 = vld [vmem:[%s6054_s19 + $0x48] sm:$0xff] }
  0x9c   : > { %v367_v42 = vpop.f32.mrf.mxu0  ;;  %5189 = vmatmul.msk.bf16.gmra.mxu1 %vm302_vm2, %v953_v5  ;;  %5222 = vmatmul.msk.bf16.gmra.mxu2 %vm302_vm2, %v1450_v27  ;;  %v2254_v5 = vshll.u32 %v5366_v23, 16  ;;  %v2258_v27 = vshrl.u32 %v5366_v23, 16  ;;  %v1223_v23 = vld [vmem:[%s6054_s19 + $0x58] sm:$0xf] }
  0x9d   : > { %448 = vst.msk [vmem:[#allocation2] sm:$0xff] %vm447_vm9, %v367_v42  ;;  %v2523_v42 = vpack.c.b16 %v2497_v22, %v2496_v21  ;;  %v5368_v22 = vld [vmem:[%s6054_s19 + $0x60] sm:$0xf] }
  0x9e   : > { %v2256_v43 = vrot.slane %v2254_v5, 5  ;;  %v2260_v44 = vrot.slane %v2258_v27, 4  ;;  %v2269_v5 = vshrl.u32 %v5368_v22, 16  ;;  %v2272_v27 = vshll.u32 %v5368_v22, 16  ;;  %v506_v22 = vld [vmem:[%s6054_s19 + $0x68] sm:$0x1] }
  0x9f   : > { %5335 = vmatmul.msk.bf16.gmra.mxu3 %vm302_vm2, %v5777_v32  ;;  %5400 = vmatmul.msk.bf16.gmra.mxu0 %vm302_vm2, %v2522_v39  ;;  %v407_v54 = vpop.f32.mrf.mxu2  ;;  %v682_v32 = vor.u32 %v681_v15, %v678_v14  ;;  %v2247_v39 = vrot.slane %v2245_v24, 4  ;;  %v930_v15 = vunpack.c.l.b16 %v698_v3 }
  0xa0   : > { %464 = vst.msk [vmem:[#allocation2 + $0x80] sm:$0xff] %vm447_vm9, %v407_v54  ;;  %v2261_v50 = vor.u32 %v2260_v44, %v2256_v43  ;;  %v1347_v54 = vrot.slane %v1221_v41, 5  ;;  %v1351_v41 = vrot.slane %v1223_v23, 5  ;;  %v1224_v44 = vld [vmem:[%s6054_s19 + $0x5c] sm:$0x1] }
  0xa1   : > { %v389_v63 = vpop.f32.mrf.mxu1  ;;  %v2251_v46 = vor.u32 %v2250_v40, %v2247_v39  ;;  %v683_v48 = vrot.slane %v682_v32, 4  ;;  %v1222_v40 = vld [vmem:[%s6054_s19 + $0x54] sm:$0xe] }
  0xa2   : > { %v427_v58 = vpop.f32.mrf.mxu3  ;;  %457 = vst.msk [vmem:[#allocation2 + $0x48] sm:$0xff] %vm447_vm9, %v389_v63  ;;  %v2262_v59 = vrot.slane %v2261_v50, 4  ;;  %v1345_v63 = vsel %vm6122_vm8, %v5207_v49, %v1344_v38  ;;  %v1348_v4 = vsel %vm6122_vm8, %v1346_v53, %v1347_v54  ;;  %v2288_v50 = vshll.u32 %v5370_v37, 16  ;;  %v5780_v37 = vld [vmem:[%s6054_s19 + $0x60] sm:$0xff] }
  0xa3   : > { %472 = vst.msk [vmem:[#allocation2 + $0xc0] sm:$0xff] %vm447_vm9, %v427_v58  ;;  %v2252_v58 = vrot.slane %v2251_v46, 4  ;;  %v688_v62 = vsel %vm6115_vm7, %v683_v48, %v6285_v17  ;;  %v1426_v10 = vunpack.c.l.b16 %v1345_v63  ;;  %v1427_v16 = vunpack.c.l.b16 %v1348_v4 }
  0xa4   : > { %v369_v7 = vpop.f32.mrf.mxu0  ;;  %v929_v9 = vunpack.c.l.b16 %v688_v62  ;;  %v2267_v14 = vsel %vm6115_vm7, %v2262_v59, %v2266_v60  ;;  %v702_v17 = vrot.slane %v700_v0, 4  ;;  %v5208_v52 = vrot.slane %v1222_v40, 9  ;;  %v505_v59 = vld [vmem:[%s6054_s19 + $0x64] sm:$0xf]  ;;  %v5373_v40 = vld [vmem:[%s6054_s19 + $0x74] sm:$0x1] }
  0xa5   : > { %449 = vst.msk [vmem:[#allocation2 + $0x8] sm:$0xff] %vm447_vm9, %v369_v7  ;;  %v713_v7 = vshrl.u32 %v502_v56, 16  ;;  %v2257_v12 = vsel %vm6115_vm7, %v2252_v58, %v2256_v43  ;;  %v2499_v25 = vunpack.c.l.b16 %v2267_v14  ;;  %v1452_v32 = vpack.c.b16 %v1427_v16, %v1426_v10  ;;  %v504_v58 = vld [vmem:[%s6054_s19 + $0x60] sm:$0xf] }
  0xa6   : > { %v2498_v24 = vunpack.c.l.b16 %v2257_v12  ;;  %v2274_v43 = vrot.slane %v2272_v27, 5  ;;  %v1353_v56 = vrot.slane %v1351_v41, 4  ;;  %v2290_v63 = vrot.slane %v2288_v50, 5 }
  0xa7   : > { %v409_v26 = vpop.f32.mrf.mxu2  ;;  %v715_v21 = vrot.slane %v713_v7, 4  ;;  %v724_v3 = vshrl.u32 %v504_v58, 16  ;;  %v727_v4 = vshll.u32 %v504_v58, 16  ;;  %v733_v10 = vshll.u32 %v505_v59, 16 }
  0xa8   : > { %465 = vst.msk [vmem:[#allocation2 + $0x88] sm:$0xff] %vm447_vm9, %v409_v26  ;;  %v5369_v26 = vld [vmem:[%s6054_s19 + $0x64] sm:$0xf] }
  0xa9   : > { %v392_v35 = vpop.f32.mrf.mxu1  ;;  %v716_v39 = vor.u32 %v715_v21, %v6323_v20  ;;  %v729_v21 = vrot.slane %v727_v4, 5  ;;  %v6361_v23 = vrot.slane %v733_v10, 5 }
  0xaa   : > { %v429_v30 = vpop.f32.mrf.mxu3  ;;  %458 = vst.msk [vmem:[#allocation2 + $0x50] sm:$0xff] %vm447_vm9, %v392_v35  ;;  %v706_v35 = vor.u32 %v705_v18, %v702_v17 }
  0xab   : > { %473 = vst.msk [vmem:[#allocation2 + $0xc8] sm:$0xff] %vm447_vm9, %v429_v30  ;;  %v2282_v30 = vshrl.u32 %v5369_v26, 16  ;;  %v717_v54 = vrot.slane %v716_v39, 4  ;;  %v743_v39 = vshll.u32 %v506_v22, 16 }
  0xac   : > { %v372_v45 = vpop.f32.mrf.mxu0  ;;  %5190 = vmatmul.msk.bf16.gmra.mxu1 %vm302_vm2, %v954_v29  ;;  %5223 = vmatmul.msk.bf16.gmra.mxu2 %vm302_vm2, %v1451_v28  ;;  %v2278_v28 = vshll.u32 %v5369_v26, 16  ;;  %v707_v51 = vrot.slane %v706_v35, 4  ;;  %v1226_v26 = vld [vmem:[%s6054_s19 + $0x64] sm:$0xf] }
  0xad   : > { %450 = vst.msk [vmem:[#allocation2 + $0x10] sm:$0xff] %vm447_vm9, %v372_v45  ;;  %v2524_v45 = vpack.c.b16 %v2499_v25, %v2498_v24  ;;  %v2284_v47 = vrot.slane %v2282_v30, 4  ;;  %v722_v7 = vsel %vm6115_vm7, %v717_v54, %v721_v55  ;;  %v5371_v25 = vld [vmem:[%s6054_s19 + $0x6c] sm:$0xf] }
  0xae   : > { %v2280_v46 = vrot.slane %v2278_v28, 5  ;;  %v712_v1 = vsel %vm6115_vm7, %v707_v51, %v6323_v20  ;;  %v932_v18 = vunpack.c.l.b16 %v722_v7  ;;  %v726_v20 = vrot.slane %v724_v3, 4 }
  0xaf   : > { %5336 = vmatmul.msk.bf16.gmra.mxu3 %vm302_vm2, %v5778_v31  ;;  %5401 = vmatmul.msk.bf16.gmra.mxu0 %vm302_vm2, %v2523_v42  ;;  %v412_v57 = vpop.f32.mrf.mxu2  ;;  %v955_v31 = vpack.c.b16 %v930_v15, %v929_v9  ;;  %v2271_v42 = vrot.slane %v2269_v5, 4  ;;  %v931_v12 = vunpack.c.l.b16 %v712_v1  ;;  %v2293_v28 = vshrl.u32 %v5371_v25, 16 }
  0xb0   : > { %466 = vst.msk [vmem:[#allocation2 + $0x90] sm:$0xff] %vm447_vm9, %v412_v57  ;;  %v2285_v53 = vor.u32 %v2284_v47, %v2280_v46  ;;  %v1354_v57 = vrot.slane %v1224_v44, 5  ;;  %v2296_v30 = vshll.u32 %v5371_v25, 16  ;;  %v1358_v44 = vrot.slane %v1226_v26, 5  ;;  %v1227_v47 = vld [vmem:[%s6054_s19 + $0x68] sm:$0x1] }
  0xb1   : > { %v394_v2 = vpop.f32.mrf.mxu1  ;;  %v2275_v49 = vor.u32 %v2274_v43, %v2271_v42  ;;  %v1225_v43 = vld [vmem:[%s6054_s19 + $0x60] sm:$0xe]  ;;  %v2312_v51 = vshll.u32 %v5373_v40, 16 }
  0xb2   : > { %v432_v61 = vpop.f32.mrf.mxu3  ;;  %459 = vst.msk [vmem:[#allocation2 + $0x58] sm:$0xff] %vm447_vm9, %v394_v2  ;;  %v2286_v62 = vrot.slane %v2285_v53, 4  ;;  %v1352_v2 = vsel %vm6122_vm8, %v5208_v52, %v1351_v41  ;;  %v1355_v9 = vsel %vm6122_vm8, %v1353_v56, %v1354_v57  ;;  %v5209_v55 = vrot.slane %v1225_v43, 9  ;;  %v507_v56 = vld [vmem:[%s6054_s19 + $0x6c] sm:$0xf] }
  0xb3   : > { %474 = vst.msk [vmem:[#allocation2 + $0xd0] sm:$0xff] %vm447_vm9, %v432_v61  ;;  %v2276_v61 = vrot.slane %v2275_v49, 4  ;;  %v1428_v14 = vunpack.c.l.b16 %v1352_v2  ;;  %v1429_v19 = vunpack.c.l.b16 %v1355_v9  ;;  %v2314_v1 = vrot.slane %v2312_v51, 5 }
  0xb4   : > { %v374_v11 = vpop.f32.mrf.mxu0  ;;  %v2291_v17 = vsel %vm6115_vm7, %v2286_v62, %v2290_v63  ;;  %v508_v62 = vld [vmem:[%s6054_s19 + $0x70] sm:$0xf]  ;;  %v748_v3 = vshrl.u32 %v507_v56, 16  ;;  %v751_v4 = vshll.u32 %v507_v56, 16  ;;  %v1359_v9 = vsel %vm6122_vm8, %v5209_v55, %v1358_v44 }
  0xb5   : > { %451 = vst.msk [vmem:[#allocation2 + $0x18] sm:$0xff] %vm447_vm9, %v374_v11  ;;  %v737_v11 = vshrl.u32 %v505_v59, 16  ;;  %v2281_v16 = vsel %vm6115_vm7, %v2276_v61, %v2280_v46  ;;  %v2501_v27 = vunpack.c.l.b16 %v2291_v17  ;;  %v1453_v35 = vpack.c.b16 %v1429_v19, %v1428_v14 }
  0xb6   : > { %v2500_v5 = vunpack.c.l.b16 %v2281_v16  ;;  %v2298_v46 = vrot.slane %v2296_v30, 5  ;;  %v745_v59 = vrot.slane %v743_v39, 5  ;;  %v1361_v61 = vrot.slane %v1227_v47, 5  ;;  %v1229_v30 = vld [vmem:[%s6054_s19 + $0x70] sm:$0xf] }
  0xb7   : > { %v414_v29 = vpop.f32.mrf.mxu2  ;;  %v739_v24 = vrot.slane %v737_v11, 4  ;;  %v757_v10 = vshll.u32 %v508_v62, 16  ;;  %v761_v11 = vshrl.u32 %v508_v62, 16  ;;  %v1430_v19 = vunpack.c.l.b16 %v1359_v9  ;;  %v1228_v47 = vld [vmem:[%s6054_s19 + $0x6c] sm:$0xe] }
  0xb8   : > { %467 = vst.msk [vmem:[#allocation2 + $0x98] sm:$0xff] %vm447_vm9, %v414_v29  ;;  %v5372_v29 = vld [vmem:[%s6054_s19 + $0x70] sm:$0xf]  ;;  %v753_v22 = vrot.slane %v751_v4, 5  ;;  %v5210_v62 = vrot.slane %v1228_v47, 9 }
  0xb9   : > { %v397_v38 = vpop.f32.mrf.mxu1  ;;  %v740_v42 = vor.u32 %v739_v24, %v6361_v23  ;;  %v6398_v25 = vrot.slane %v757_v10, 5  ;;  %v763_v26 = vrot.slane %v761_v11, 4 }
  0xba   : > { %v434_v33 = vpop.f32.mrf.mxu3  ;;  %460 = vst.msk [vmem:[#allocation2 + $0x60] sm:$0xff] %vm447_vm9, %v397_v38  ;;  %v730_v38 = vor.u32 %v729_v21, %v726_v20  ;;  %v750_v21 = vrot.slane %v748_v3, 4  ;;  %v511_v3 = vld [vmem:[%s6054_s19 + $0x7c] sm:$0xf] }
  0xbb   : > { %475 = vst.msk [vmem:[#allocation2 + $0xd8] sm:$0xff] %vm447_vm9, %v434_v33  ;;  %v2306_v33 = vshrl.u32 %v5372_v29, 16  ;;  %v741_v58 = vrot.slane %v740_v42, 4  ;;  %v5781_v42 = vld [vmem:[%s6054_s19 + $0x6c] sm:$0xff]  ;;  %v764_v43 = vor.u32 %v763_v26, %v6398_v25 }
  0xbc   : > { %v377_v48 = vpop.f32.mrf.mxu0  ;;  %5191 = vmatmul.msk.bf16.gmra.mxu1 %vm302_vm2, %v955_v31  ;;  %5224 = vmatmul.msk.bf16.gmra.mxu2 %vm302_vm2, %v1452_v32  ;;  %v2302_v32 = vshll.u32 %v5372_v29, 16  ;;  %v731_v54 = vrot.slane %v730_v38, 4  ;;  %v1105_v38 = vld [vmem:[#allocation2] sm:$0xff] }
  0xbd   : > { %452 = vst.msk [vmem:[#allocation2 + $0x20] sm:$0xff] %vm447_vm9, %v377_v48  ;;  %v2525_v48 = vpack.c.b16 %v2501_v27, %v2500_v5  ;;  %v2308_v50 = vrot.slane %v2306_v33, 4  ;;  %v746_v14 = vsel %vm6115_vm7, %v741_v58, %v745_v59  ;;  %v509_v5 = vld [vmem:[%s6054_s19 + $0x74] sm:$0x1] }
  0xbe   : > { %v2304_v49 = vrot.slane %v2302_v32, 5  ;;  %v736_v7 = vsel %vm6115_vm7, %v731_v54, %v6361_v23  ;;  %v934_v23 = vunpack.c.l.b16 %v746_v14 }
  0xbf   : > { %5337 = vmatmul.msk.bf16.gmra.mxu3 %vm302_vm2, %v5779_v34  ;;  %5402 = vmatmul.msk.bf16.gmra.mxu0 %vm302_vm2, %v2524_v45  ;;  %v417_v60 = vpop.f32.mrf.mxu2  ;;  %v956_v34 = vpack.c.b16 %v932_v18, %v931_v12  ;;  %v2295_v45 = vrot.slane %v2293_v28, 4  ;;  %v933_v18 = vunpack.c.l.b16 %v736_v7  ;;  %v5374_v28 = vld [vmem:[%s6054_s19 + $0x78] sm:$0xf] }
  0xc0   : > { %468 = vst.msk [vmem:[#allocation2 + $0xa0] sm:$0xff] %vm447_vm9, %v417_v60  ;;  %v2309_v57 = vor.u32 %v2308_v50, %v2304_v49  ;;  %v1360_v60 = vrot.slane %v1358_v44, 4  ;;  %v2317_v32 = vshrl.u32 %v5374_v28, 16  ;;  %v2320_v33 = vshll.u32 %v5374_v28, 16 }
  0xc1   : > { %v399_v6 = vpop.f32.mrf.mxu1  ;;  %v2299_v53 = vor.u32 %v2298_v46, %v2295_v45  ;;  %v957_v39 = vpack.c.b16 %v934_v23, %v933_v18  ;;  %v767_v44 = vshll.u32 %v509_v5, 16  ;;  %v5376_v45 = vld [vmem:[%s6054_s19 + $0x80] sm:$0x1]  ;;  %v785_v18 = vshrl.u32 %v511_v3, 16 }
  0xc2   : > { %v437_v0 = vpop.f32.mrf.mxu3  ;;  %461 = vst.msk [vmem:[#allocation2 + $0x68] sm:$0xff] %vm447_vm9, %v399_v6  ;;  %v2319_v50 = vrot.slane %v2317_v32, 4  ;;  %v2322_v51 = vrot.slane %v2320_v33, 5  ;;  %v2336_v56 = vshll.u32 %v5376_v45, 16  ;;  %v512_v33 = vld [vmem:[%s6054_s19 + $0x80] sm:$0x1] }
  0xc3   : > { %476 = vst.msk [vmem:[#allocation2 + $0xe0] sm:$0xff] %vm447_vm9, %v437_v0  ;;  %v2300_v63 = vrot.slane %v2299_v53, 4  ;;  %v2310_v0 = vrot.slane %v2309_v57, 4  ;;  %v1230_v53 = vld [vmem:[%s6054_s19 + $0x74] sm:$0x1] }
  0xc4   : > { %v379_v15 = vpop.f32.mrf.mxu0  ;;  %v2323_v59 = vor.u32 %v2322_v51, %v2319_v50  ;;  %v2338_v7 = vrot.slane %v2336_v56, 5  ;;  %v1231_v51 = vld [vmem:[%s6054_s19 + $0x78] sm:$0xe] }
  0xc5   : > { %453 = vst.msk [vmem:[#allocation2 + $0x28] sm:$0xff] %vm447_vm9, %v379_v15  ;;  %v1362_v15 = vsel %vm6122_vm8, %v1360_v60, %v1361_v61  ;;  %v2305_v16 = vsel %vm6115_vm7, %v2300_v63, %v2304_v49  ;;  %v2315_v17 = vsel %vm6115_vm7, %v2310_v0, %v2314_v1  ;;  %v765_v60 = vrot.slane %v764_v43, 4  ;;  %v510_v63 = vld [vmem:[%s6054_s19 + $0x78] sm:$0xf] }
  0xc6   : > { %v1431_v24 = vunpack.c.l.b16 %v1362_v15  ;;  %v2502_v27 = vunpack.c.l.b16 %v2305_v16  ;;  %v2503_v29 = vunpack.c.l.b16 %v2315_v17  ;;  %v769_v61 = vrot.slane %v767_v44, 5  ;;  %v5782_v56 = vld [vmem:[%s6054_s19 + $0x78] sm:$0xff] }
  0xc7   : > { %v419_v31 = vpop.f32.mrf.mxu2  ;;  %v2324_v4 = vrot.slane %v2323_v59, 4  ;;  %v772_v11 = vshrl.u32 %v510_v63, 16  ;;  %v781_v17 = vshll.u32 %v511_v3, 16  ;;  %v791_v44 = vshll.u32 %v512_v33, 16  ;;  %v1108_v33 = vld [vmem:[#allocation2 + $0x18] sm:$0xff] }
  0xc8   : > { %469 = vst.msk [vmem:[#allocation2 + $0xa8] sm:$0xff] %vm447_vm9, %v419_v31  ;;  %v5375_v31 = vld [vmem:[%s6054_s19 + $0x7c] sm:$0xf]  ;;  %v1454_v40 = vpack.c.b16 %v1431_v24, %v1430_v19  ;;  %v2526_v49 = vpack.c.b16 %v2503_v29, %v2502_v27  ;;  %v770_v15 = vsel %vm6115_vm7, %v765_v60, %v769_v61 }
  0xc9   : > { %v402_v41 = vpop.f32.mrf.mxu1  ;;  %v936_v5 = vunpack.c.l.b16 %v770_v15  ;;  %v774_v28 = vrot.slane %v772_v11, 4 }
  0xca   : > { %v439_v36 = vpop.f32.mrf.mxu3  ;;  %462 = vst.msk [vmem:[#allocation2 + $0x70] sm:$0xff] %vm447_vm9, %v402_v41 }
  0xcb   : > { %477 = vst.msk [vmem:[#allocation2 + $0xe8] sm:$0xff] %vm447_vm9, %v439_v36  ;;  %v2326_v36 = vshll.u32 %v5375_v31, 16 }
  0xcc   : > { %v382_v52 = vpop.f32.mrf.mxu0  ;;  %5192 = vmatmul.msk.bf16.gmra.mxu1 %vm302_vm2, %v956_v34  ;;  %5225 = vmatmul.msk.bf16.gmra.mxu2 %vm302_vm2, %v1453_v35  ;;  %v754_v35 = vor.u32 %v753_v22, %v750_v21 }
  0xcd   : > { %454 = vst.msk [vmem:[#allocation2 + $0x30] sm:$0xff] %vm447_vm9, %v382_v52  ;;  %v2328_v54 = vrot.slane %v2326_v36, 5  ;;  %v6442_v36 = vld [vmem:[%s6054_s19 + $0x7c] sm:$0xf] }
  0xce   : > { %v755_v57 = vrot.slane %v754_v35, 4  ;;  %v787_v35 = vrot.slane %v785_v18, 4 }
  0xcf   : > { %5338 = vmatmul.msk.bf16.gmra.mxu3 %vm302_vm2, %v5780_v37  ;;  %5403 = vmatmul.msk.bf16.gmra.mxu0 %vm302_vm2, %v2525_v48  ;;  %v422_v2 = vpop.f32.mrf.mxu2  ;;  %v2330_v37 = vshrl.u32 %v5375_v31, 16  ;;  %v1365_v48 = vrot.slane %v1229_v30, 5  ;;  %v2329_v24 = vsel %vm6115_vm7, %v2324_v4, %v2328_v54 }
  0xd0   : > { %470 = vst.msk [vmem:[#allocation2 + $0xb0] sm:$0xff] %vm447_vm9, %v422_v2  ;;  %v1368_v2 = vrot.slane %v1230_v53, 5  ;;  %v760_v10 = vsel %vm6115_vm7, %v755_v57, %v6398_v25  ;;  %v5379_v53 = vld [vmem:[%s6054_s19 + $0x8c] sm:$0x1]  ;;  %v1233_v57 = vld [vmem:[%s6054_s19 + $0x80] sm:$0x1] }
  0xd1   : > { %v404_v12 = vpop.f32.mrf.mxu1  ;;  %v2332_v55 = vrot.slane %v2330_v37, 4  ;;  %v1367_v1 = vrot.slane %v1365_v48, 4  ;;  %v1366_v16 = vsel %vm6122_vm8, %v5210_v62, %v1365_v48  ;;  %v935_v23 = vunpack.c.l.b16 %v760_v10 }
  0xd2   : > { %v442_v6 = vpop.f32.mrf.mxu3  ;;  %463 = vst.msk [vmem:[#allocation2 + $0x78] sm:$0xff] %vm447_vm9, %v404_v12  ;;  %v775_v12 = vshll.u32 %v510_v63, 16  ;;  %v1432_v27 = vunpack.c.l.b16 %v1366_v16  ;;  %v2504_v37 = vunpack.c.l.b16 %v2329_v24  ;;  %v513_v63 = vld [vmem:[%s6054_s19 + $0x84] sm:$0xf]  ;;  %v1375_v18 = vrot.slane %v1233_v57, 5 }
  0xd3   : > { %478 = vst.msk [vmem:[#allocation2 + $0xf0] sm:$0xff] %vm447_vm9, %v442_v6  ;;  %v2333_v0 = vor.u32 %v2332_v55, %v2328_v54  ;;  %v1369_v21 = vsel %vm6122_vm8, %v1367_v1, %v1368_v2  ;;  %v958_v47 = vpack.c.b16 %v936_v5, %v935_v23  ;;  %v1107_v55 = vld [vmem:[#allocation2 + $0x10] sm:$0xff]  ;;  %v2360_v2 = vshll.u32 %v5379_v53, 16 }
  0xd4   : > { %v384_v20 = vpop.f32.mrf.mxu0  ;;  %v777_v30 = vrot.slane %v775_v12, 5  ;;  %v1433_v32 = vunpack.c.l.b16 %v1369_v21  ;;  %v799_v21 = vshll.u32 %v513_v63, 16  ;;  %v5380_v57 = vld [vmem:[%s6054_s19 + $0x90] sm:$0xf] }
  0xd5   : > { %455 = vst.msk [vmem:[#allocation2 + $0x38] sm:$0xff] %vm447_vm9, %v384_v20  ;;  %v2334_v6 = vrot.slane %v2333_v0, 4  ;;  %v1106_v20 = vld [vmem:[#allocation2 + $0x8] sm:$0xff] }
  0xd6   : > { %v778_v43 = vor.u32 %v777_v30, %v774_v28  ;;  %v1455_v48 = vpack.c.b16 %v1433_v32, %v1432_v27 }
  0xd7   : > { %v424_v34 = vpop.f32.mrf.mxu2  ;;  %v2339_v25 = vsel %vm6115_vm7, %v2334_v6, %v2338_v7  ;;  %v793_v6 = vrot.slane %v791_v44, 5  ;;  %v5211_v7 = vrot.slane %v1231_v51, 9  ;;  %v6489_v51 = vld [vmem:[%s6054_s19 + $0x88] sm:$0xf] }
  0xd8   : > { %471 = vst.msk [vmem:[#allocation2 + $0xb8] sm:$0xff] %vm447_vm9, %v424_v34  ;;  %v6439_v34 = vrot.slane %v781_v17, 5  ;;  %v779_v4 = vrot.slane %v778_v43, 4 }
  0xd9   : > { %v1025_v46 = vpop.f32.mrf.mxu1 }
  0xda   : > { %v444_v41 = vpop.f32.mrf.mxu3  ;;  %v1137_v52 = vadd.f32 %v1105_v38, %v1025_v46  ;;  %v2505_v38 = vunpack.c.l.b16 %v2339_v25  ;;  %v788_v50 = vor.u32 %v787_v35, %v6439_v34  ;;  %v2362_v25 = vrot.slane %v2360_v2, 5 }
  0xdb   : > { %479 = vst.msk [vmem:[#allocation2 + $0xf8] sm:$0xff] %vm447_vm9, %v444_v41  ;;  %v784_v5 = vsel %vm6115_vm7, %v779_v4, %v6439_v34  ;;  %v801_v34 = vrot.slane %v799_v21, 5  ;;  %v2368_v2 = vshll.u32 %v5380_v57, 16  ;;  %v516_v21 = vld [vmem:[%s6054_s19 + $0x90] sm:$0xf] }
  0xdc   : > { %v6411_v58 = vpop.f32.mrf.mxu0  ;;  %1169 = vst.msk [vmem:[#allocation2] sm:$0xff] %vm447_vm9, %v1137_v52  ;;  %5193 = vmatmul.msk.bf16.gmra.mxu1 %vm302_vm2, %v957_v39  ;;  %5226 = vmatmul.msk.bf16.gmra.mxu2 %vm302_vm2, %v1454_v40  ;;  %v5377_v39 = vld [vmem:[%s6054_s19 + $0x84] sm:$0xf]  ;;  %v5378_v40 = vld [vmem:[%s6054_s19 + $0x88] sm:$0xf]  ;;  %v1372_v52 = vrot.slane %v6442_v36, 5  ;;  %v2527_v59 = vpack.c.b16 %v2505_v38, %v2504_v37 }
  0xdd   : > { %v2341_v41 = vshrl.u32 %v5377_v39, 16  ;;  %v2344_v45 = vshll.u32 %v5377_v39, 16  ;;  %v2350_v46 = vshll.u32 %v5378_v40, 16  ;;  %v2354_v1 = vshrl.u32 %v5378_v40, 16 }
  0xde   : > { %v789_v12 = vrot.slane %v788_v50, 4  ;;  %v1374_v15 = vrot.slane %v1372_v52, 4 }
  0xdf   : > { %5339 = vmatmul.msk.bf16.gmra.mxu3 %vm302_vm2, %v5781_v42  ;;  %5404 = vmatmul.msk.bf16.gmra.mxu0 %vm302_vm2, %v2526_v49  ;;  %v1522_v9 = vpop.f32.mrf.mxu2  ;;  %v2343_v60 = vrot.slane %v2341_v41, 4  ;;  %v2346_v61 = vrot.slane %v2344_v45, 5  ;;  %v2352_v0 = vrot.slane %v2350_v46, 5  ;;  %v2356_v16 = vrot.slane %v2354_v1, 4  ;;  %v515_v45 = vld [vmem:[%s6054_s19 + $0x8c] sm:$0x1] }
  0xe0   : > { %v794_v28 = vsel %vm6115_vm7, %v789_v12, %v793_v6  ;;  %v1376_v35 = vsel %vm6122_vm8, %v1374_v15, %v1375_v18  ;;  %v2365_v1 = vshrl.u32 %v5380_v57, 16  ;;  %v1109_v12 = vld [vmem:[#allocation2 + $0x20] sm:$0xff]  ;;  %v1236_v18 = vld [vmem:[%s6054_s19 + $0x8c] sm:$0x1] }
  0xe1   : > { %v1027_v19 = vpop.f32.mrf.mxu1  ;;  %v2347_v10 = vor.u32 %v2346_v61, %v2343_v60  ;;  %v2357_v24 = vor.u32 %v2356_v16, %v2352_v0  ;;  %v815_v60 = vshll.u32 %v515_v45, 16  ;;  %v5783_v15 = vld [vmem:[%s6054_s19 + $0x84] sm:$0xff] }
  0xe2   : > { %v6423_v14 = vpop.f32.mrf.mxu3  ;;  %v1138_v22 = vadd.f32 %v1106_v20, %v1027_v19  ;;  %v514_v19 = vld [vmem:[%s6054_s19 + $0x88] sm:$0xf]  ;;  %v796_v20 = vshrl.u32 %v513_v63, 16  ;;  %v1379_v63 = vrot.slane %v6489_v51, 5 }
  0xe3   : > { %v1602_v26 = vld [vmem:[#allocation2] sm:$0xff]  ;;  %v2348_v23 = vrot.slane %v2347_v10, 4  ;;  %v805_v30 = vshll.u32 %v514_v19, 16  ;;  %v809_v37 = vshrl.u32 %v514_v19, 16  ;;  %v5382_v10 = vld [vmem:[%s6054_s19 + $0x98] sm:$0x1] }
  0xe4   : > { %v6435_v29 = vpop.f32.mrf.mxu0  ;;  %v1634_v31 = vadd.f32 %v1602_v26, %v1522_v9  ;;  %1170 = vst.msk [vmem:[#allocation2 + $0x8] sm:$0xff] %vm447_vm9, %v1138_v22  ;;  %v798_v36 = vrot.slane %v796_v20, 4  ;;  %v2367_v20 = vrot.slane %v2365_v1, 4  ;;  %v1110_v57 = vld [vmem:[#allocation2 + $0x28] sm:$0xff] }
  0xe5   : > { %v2353_v39 = vsel %vm6115_vm7, %v2348_v23, %v2352_v0  ;;  %v6486_v50 = vrot.slane %v805_v30, 5  ;;  %v5381_v0 = vld [vmem:[%s6054_s19 + $0x94] sm:$0xf]  ;;  %v2384_v30 = vshll.u32 %v5382_v10, 16 }
  0xe6   : > { %1666 = vst.msk [vmem:[#allocation2] sm:$0xff] %vm447_vm9, %v1634_v31  ;;  %v2358_v31 = vrot.slane %v2357_v24, 4  ;;  %v802_v53 = vor.u32 %v801_v34, %v798_v36  ;;  %v2374_v23 = vshll.u32 %v5381_v0, 16  ;;  %v2378_v24 = vshrl.u32 %v5381_v0, 16  ;;  %v518_v0 = vld [vmem:[%s6054_s19 + $0x98] sm:$0x1] }
  0xe7   : > { %v1524_v42 = vpop.f32.mrf.mxu2  ;;  %v2386_v45 = vrot.slane %v2384_v30, 5 }
  0xe8   : > { %v2363_v40 = vsel %vm6115_vm7, %v2358_v31, %v2362_v25  ;;  %v803_v16 = vrot.slane %v802_v53, 4  ;;  %v2380_v36 = vrot.slane %v2378_v24, 4  ;;  %v1111_v24 = vld [vmem:[#allocation2 + $0x30] sm:$0xff] }
  0xe9   : > { %v1030_v54 = vpop.f32.mrf.mxu1 }
  0xea   : > { %v6447_v49 = vpop.f32.mrf.mxu3  ;;  %v1139_v62 = vadd.f32 %v1107_v55, %v1030_v54  ;;  %v811_v54 = vrot.slane %v809_v37, 4  ;;  %v2506_v55 = vunpack.c.l.b16 %v2353_v39  ;;  %v820_v39 = vshrl.u32 %v516_v21, 16 }
  0xeb   : > { %v1603_v3 = vld [vmem:[#allocation2 + $0x8] sm:$0xff] }
  0xec   : > { %v6456_v9 = vpop.f32.mrf.mxu0  ;;  %v1635_v11 = vadd.f32 %v1603_v3, %v1524_v42  ;;  %1171 = vst.msk [vmem:[#allocation2 + $0x10] sm:$0xff] %vm447_vm9, %v1139_v62  ;;  %5194 = vmatmul.msk.bf16.gmra.mxu1 %vm302_vm2, %v958_v47  ;;  %5227 = vmatmul.msk.bf16.gmra.mxu2 %vm302_vm2, %v1455_v48  ;;  %v937_v42 = vunpack.c.l.b16 %v784_v5  ;;  %v938_v47 = vunpack.c.l.b16 %v794_v28  ;;  %v1435_v48 = vunpack.c.l.b16 %v1376_v35 }
  0xed   : > { %v1956_v17 = vld [vmem:[#allocation2] sm:$0xff]  ;;  %v1381_v28 = vrot.slane %v1379_v63, 4  ;;  %v2376_v35 = vrot.slane %v2374_v23, 5 }
  0xee   : > { %v1988_v22 = vadd.f32 %v1956_v17, %v6423_v14  ;;  %1667 = vst.msk [vmem:[#allocation2 + $0x8] sm:$0xff] %vm447_vm9, %v1635_v11  ;;  %v1373_v14 = vsel %vm6122_vm8, %v5211_v7, %v1372_v52  ;;  %v959_v4 = vpack.c.b16 %v938_v47, %v937_v42  ;;  %v1234_v7 = vld [vmem:[%s6054_s19 + $0x84] sm:$0xe]  ;;  %v812_v17 = vor.u32 %v811_v54, %v6486_v50 }
  0xef   : > { %5340 = vmatmul.msk.bf16.gmra.mxu3 %vm302_vm2, %v5782_v56  ;;  %5405 = vmatmul.msk.bf16.gmra.mxu0 %vm302_vm2, %v2527_v59  ;;  %v1527_v26 = vpop.f32.mrf.mxu2  ;;  %v1434_v43 = vunpack.c.l.b16 %v1373_v14  ;;  %v2507_v56 = vunpack.c.l.b16 %v2363_v40  ;;  %v5212_v5 = vrot.slane %v1234_v7, 9  ;;  %v823_v40 = vshll.u32 %v516_v21, 16 }
  0xf0   : > { %2020 = vst.msk [vmem:[#allocation2] sm:$0xff] %vm447_vm9, %v1988_v22  ;;  %v2370_v22 = vrot.slane %v2368_v2, 5  ;;  %v813_v37 = vrot.slane %v812_v17, 4  ;;  %v839_v17 = vshll.u32 %v518_v0, 16 }
  0xf1   : > { %v1032_v32 = vpop.f32.mrf.mxu1  ;;  %v1456_v6 = vpack.c.b16 %v1435_v48, %v1434_v43  ;;  %v2528_v19 = vpack.c.b16 %v2507_v56, %v2506_v55  ;;  %v2381_v43 = vor.u32 %v2380_v36, %v2376_v35  ;;  %v1380_v54 = vsel %vm6122_vm8, %v5212_v5, %v1379_v63  ;;  %v5385_v36 = vld [vmem:[%s6054_s19 + $0xa4] sm:$0x1] }
  0xf2   : > { %v6470_v27 = vpop.f32.mrf.mxu3  ;;  %v1140_v38 = vadd.f32 %v1108_v33, %v1032_v32  ;;  %v517_v32 = vld [vmem:[%s6054_s19 + $0x94] sm:$0xf]  ;;  %v2371_v33 = vor.u32 %v2370_v22, %v2367_v20 }
  0xf3   : > { %v1604_v41 = vld [vmem:[#allocation2 + $0x10] sm:$0xff]  ;;  %v829_v48 = vshll.u32 %v517_v32, 16  ;;  %v833_v51 = vshrl.u32 %v517_v32, 16  ;;  %v2382_v55 = vrot.slane %v2381_v43, 4  ;;  %v1239_v43 = vld [vmem:[%s6054_s19 + $0x98] sm:$0x1] }
  0xf4   : > { %v6482_v44 = vpop.f32.mrf.mxu0  ;;  %v1636_v46 = vadd.f32 %v1604_v41, %v1527_v26  ;;  %1172 = vst.msk [vmem:[#allocation2 + $0x18] sm:$0xff] %vm447_vm9, %v1140_v38  ;;  %v817_v26 = vrot.slane %v815_v60, 5  ;;  %v1382_v38 = vrot.slane %v1236_v18, 5  ;;  %v2372_v42 = vrot.slane %v2371_v33, 4  ;;  %v6542_v18 = vld [vmem:[%s6054_s19 + $0x94] sm:$0xf] }
  0xf5   : > { %v1957_v52 = vld [vmem:[#allocation2 + $0x8] sm:$0xff]  ;;  %v2387_v63 = vsel %vm6115_vm7, %v2382_v55, %v2386_v45  ;;  %v1386_v33 = vrot.slane %v6542_v18, 5  ;;  %v2408_v55 = vshll.u32 %v5385_v36, 16 }
  0xf6   : > { %v1989_v59 = vadd.f32 %v1957_v52, %v6447_v49  ;;  %1668 = vst.msk [vmem:[#allocation2 + $0x10] sm:$0xff] %vm447_vm9, %v1636_v46  ;;  %v1383_v60 = vsel %vm6122_vm8, %v1381_v28, %v1382_v38  ;;  %v2509_v20 = vunpack.c.l.b16 %v2387_v63 }
  0xf7   : > { %v2674_v61 = vld [vmem:[#allocation2] sm:$0xff]  ;;  %v1529_v62 = vpop.f32.mrf.mxu2  ;;  %v1388_v0 = vrot.slane %v1386_v33, 4 }
  0xf8   : > { %2021 = vst.msk [vmem:[#allocation2 + $0x8] sm:$0xff] %vm447_vm9, %v1989_v59  ;;  %v2706_v3 = vadd.f32 %v2674_v61, %v6411_v58  ;;  %v818_v59 = vsel %vm6115_vm7, %v813_v37, %v817_v26  ;;  %v822_v61 = vrot.slane %v820_v39, 4  ;;  %v5384_v26 = vld [vmem:[%s6054_s19 + $0xa0] sm:$0xf]  ;;  %v5784_v37 = vld [vmem:[%s6054_s19 + $0x90] sm:$0xff]  ;;  %v841_v39 = vrot.slane %v839_v17, 5 }
  0xf9   : > { %v1035_v11 = vpop.f32.mrf.mxu1  ;;  %v940_v10 = vunpack.c.l.b16 %v818_v59 }
  0xfa   : > { %v6498_v49 = vpop.f32.mrf.mxu3  ;;  %2738 = vst.msk [vmem:[#allocation2] sm:$0xff] %vm447_vm9, %v2706_v3  ;;  %v1141_v58 = vadd.f32 %v1109_v12, %v1035_v11  ;;  %v1436_v11 = vunpack.c.l.b16 %v1380_v54  ;;  %v1437_v12 = vunpack.c.l.b16 %v1383_v60 }
  0xfb   : > { %v1605_v25 = vld [vmem:[#allocation2 + $0x18] sm:$0xff] }
  0xfc   : > { %v6507_v14 = vpop.f32.mrf.mxu0  ;;  %v1637_v31 = vadd.f32 %v1605_v25, %v1529_v62  ;;  %1173 = vst.msk [vmem:[#allocation2 + $0x20] sm:$0xff] %vm447_vm9, %v1141_v58  ;;  %5195 = vmatmul.msk.bf16.gmra.mxu1 %vm302_vm2, %v959_v4  ;;  %5228 = vmatmul.msk.bf16.gmra.mxu2 %vm302_vm2, %v1456_v6  ;;  %v6538_v4 = vrot.slane %v829_v48, 5  ;;  %v835_v6 = vrot.slane %v833_v51, 4  ;;  %v5383_v58 = vld [vmem:[%s6054_s19 + $0x9c] sm:$0xf] }
  0xfd   : > { %v1958_v34 = vld [vmem:[#allocation2 + $0x10] sm:$0xff]  ;;  %v2389_v5 = vshrl.u32 %v5383_v58, 16  ;;  %v2392_v28 = vshll.u32 %v5383_v58, 16 }
  0xfe   : > { %v1990_v41 = vadd.f32 %v1958_v34, %v6470_v27  ;;  %1669 = vst.msk [vmem:[#allocation2 + $0x18] sm:$0xff] %vm447_vm9, %v1637_v31  ;;  %v808_v27 = vsel %vm6115_vm7, %v803_v16, %v6486_v50  ;;  %v2377_v50 = vsel %vm6115_vm7, %v2372_v42, %v2376_v35  ;;  %v836_v25 = vor.u32 %v835_v6, %v6538_v4  ;;  %v519_v35 = vld [vmem:[%s6054_s19 + $0x9c] sm:$0xf] }
  0xff   : > { %5341 = vmatmul.msk.bf16.gmra.mxu3 %vm302_vm2, %v5783_v15  ;;  %5406 = vmatmul.msk.bf16.gmra.mxu0 %vm302_vm2, %v2528_v19  ;;  %v2675_v46 = vld [vmem:[#allocation2 + $0x8] sm:$0xff]  ;;  %v1532_v47 = vpop.f32.mrf.mxu2  ;;  %v939_v2 = vunpack.c.l.b16 %v808_v27  ;;  %v2508_v19 = vunpack.c.l.b16 %v2377_v50  ;;  %v2391_v42 = vrot.slane %v2389_v5, 4  ;;  %v2394_v45 = vrot.slane %v2392_v28, 5 }
 0x100   : > { %2022 = vst.msk [vmem:[#allocation2 + $0x10] sm:$0xff] %vm447_vm9, %v1990_v41  ;;  %v2707_v52 = vadd.f32 %v2675_v46, %v6435_v29  ;;  %v825_v29 = vrot.slane %v823_v40, 5  ;;  %v1237_v40 = vld [vmem:[%s6054_s19 + $0x90] sm:$0xe]  ;;  %v2398_v46 = vshll.u32 %v5384_v26, 16  ;;  %v837_v51 = vrot.slane %v836_v25, 4 }
 0x101   : > { %v1037_v56 = vpop.f32.mrf.mxu1  ;;  %v960_v31 = vpack.c.b16 %v940_v10, %v939_v2  ;;  %v2529_v41 = vpack.c.b16 %v2509_v20, %v2508_v19  ;;  %v844_v27 = vshrl.u32 %v519_v35, 16  ;;  %v847_v54 = vshll.u32 %v519_v35, 16 }
 0x102   : > { %v6519_v53 = vpop.f32.mrf.mxu3  ;;  %2739 = vst.msk [vmem:[#allocation2 + $0x8] sm:$0xff] %vm447_vm9, %v2707_v52  ;;  %v1142_v62 = vadd.f32 %v1110_v57, %v1037_v56  ;;  %v826_v16 = vor.u32 %v825_v29, %v822_v61  ;;  %v520_v57 = vld [vmem:[%s6054_s19 + $0xa0] sm:$0xf]  ;;  %v2395_v59 = vor.u32 %v2394_v45, %v2391_v42  ;;  %v2400_v60 = vrot.slane %v2398_v46, 5  ;;  %v5386_v42 = vld [vmem:[%s6054_s19 + $0xa8] sm:$0xf] }
 0x103   : > { %v1606_v1 = vld [vmem:[#allocation2 + $0x20] sm:$0xff]  ;;  %v1389_v50 = vrot.slane %v1239_v43, 5  ;;  %v2410_v6 = vrot.slane %v2408_v55, 5  ;;  %v846_v18 = vrot.slane %v844_v27, 4  ;;  %v849_v19 = vrot.slane %v847_v54, 5 }
 0x104   : > { %v6536_v3 = vpop.f32.mrf.mxu0  ;;  %v1638_v7 = vadd.f32 %v1606_v1, %v1532_v47  ;;  %1174 = vst.msk [vmem:[#allocation2 + $0x28] sm:$0xff] %vm447_vm9, %v1142_v62  ;;  %v827_v38 = vrot.slane %v826_v16, 4  ;;  %v2402_v47 = vshrl.u32 %v5384_v26, 16  ;;  %v5213_v62 = vrot.slane %v1237_v40, 9  ;;  %v1240_v43 = vld [vmem:[%s6054_s19 + $0x9c] sm:$0xe] }
 0x105   : > { %v1959_v15 = vld [vmem:[#allocation2 + $0x18] sm:$0xff]  ;;  %v2396_v1 = vrot.slane %v2395_v59, 4  ;;  %v857_v16 = vshrl.u32 %v520_v57, 16  ;;  %v5387_v27 = vld [vmem:[%s6054_s19 + $0xac] sm:$0xf]  ;;  %v2413_v54 = vshrl.u32 %v5386_v42, 16 }
 0x106   : > { %v1991_v21 = vadd.f32 %v1959_v15, %v6498_v49  ;;  %1670 = vst.msk [vmem:[#allocation2 + $0x20] sm:$0xff] %vm447_vm9, %v1638_v7  ;;  %v1457_v49 = vpack.c.b16 %v1437_v12, %v1436_v11  ;;  %v2404_v61 = vrot.slane %v2402_v47, 4  ;;  %v832_v11 = vsel %vm6115_vm7, %v827_v38, %v6538_v4  ;;  %v1113_v47 = vld [vmem:[#allocation2 + $0x40] sm:$0xff] }
 0x107   : > { %v2676_v22 = vld [vmem:[#allocation2 + $0x10] sm:$0xff]  ;;  %v1534_v23 = vpop.f32.mrf.mxu2  ;;  %v842_v12 = vsel %vm6115_vm7, %v837_v51, %v841_v39  ;;  %v853_v15 = vshll.u32 %v520_v57, 16  ;;  %v1387_v4 = vsel %vm6122_vm8, %v5213_v62, %v1386_v33  ;;  %v941_v5 = vunpack.c.l.b16 %v832_v11 }
 0x108   : > { %2023 = vst.msk [vmem:[#allocation2 + $0x18] sm:$0xff] %vm447_vm9, %v1991_v21  ;;  %v2708_v30 = vadd.f32 %v2676_v22, %v6456_v9  ;;  %v2405_v2 = vor.u32 %v2404_v61, %v2400_v60  ;;  %v1112_v21 = vld [vmem:[#allocation2 + $0x38] sm:$0xff]  ;;  %v1390_v22 = vsel %vm6122_vm8, %v1388_v0, %v1389_v50  ;;  %v942_v28 = vunpack.c.l.b16 %v842_v12  ;;  %v522_v61 = vld [vmem:[%s6054_s19 + $0xa8] sm:$0xf] }
 0x109   : > { %v1040_v34 = vpop.f32.mrf.mxu1  ;;  %v1438_v35 = vunpack.c.l.b16 %v1387_v4  ;;  %v1439_v36 = vunpack.c.l.b16 %v1390_v22  ;;  %v2416_v55 = vshll.u32 %v5386_v42, 16  ;;  %v5785_v0 = vld [vmem:[%s6054_s19 + $0x9c] sm:$0xff]  ;;  %v2422_v11 = vshll.u32 %v5387_v27, 16 }
 0x10a   : > { %v6551_v32 = vpop.f32.mrf.mxu3  ;;  %2740 = vst.msk [vmem:[#allocation2 + $0x10] sm:$0xff] %vm447_vm9, %v2708_v30  ;;  %v1143_v9 = vadd.f32 %v1111_v24, %v1040_v34  ;;  %v2406_v20 = vrot.slane %v2405_v2, 4  ;;  %v521_v24 = vld [vmem:[%s6054_s19 + $0xa4] sm:$0x1]  ;;  %v850_v34 = vor.u32 %v849_v19, %v846_v18  ;;  %v2426_v12 = vshrl.u32 %v5387_v27, 16 }
 0x10b   : > { %v1607_v48 = vld [vmem:[#allocation2 + $0x28] sm:$0xff]  ;;  %v863_v39 = vshll.u32 %v521_v24, 16  ;;  %v1458_v57 = vpack.c.b16 %v1439_v36, %v1438_v35  ;;  %v868_v18 = vshrl.u32 %v522_v61, 16  ;;  %v871_v19 = vshll.u32 %v522_v61, 16 }
 0x10c   : > { %v6560_v52 = vpop.f32.mrf.mxu0  ;;  %v1639_v56 = vadd.f32 %v1607_v48, %v1534_v23  ;;  %1175 = vst.msk [vmem:[#allocation2 + $0x30] sm:$0xff] %vm447_vm9, %v1143_v9  ;;  %5196 = vmatmul.msk.bf16.gmra.mxu1 %vm302_vm2, %v960_v31  ;;  %5229 = vmatmul.msk.bf16.gmra.mxu2 %vm302_vm2, %v1457_v49  ;;  %v2411_v25 = vsel %vm6115_vm7, %v2406_v20, %v2410_v6  ;;  %v6591_v31 = vrot.slane %v853_v15, 5  ;;  %v859_v49 = vrot.slane %v857_v16, 4 }
 0x10d   : > { %v1960_v29 = vld [vmem:[#allocation2 + $0x20] sm:$0xff]  ;;  %v865_v50 = vrot.slane %v863_v39, 5  ;;  %v2415_v6 = vrot.slane %v2413_v54, 4  ;;  %v2424_v4 = vrot.slane %v2422_v11, 5  ;;  %v2428_v22 = vrot.slane %v2426_v12, 4 }
 0x10e   : > { %v1992_v63 = vadd.f32 %v1960_v29, %v6519_v53  ;;  %1671 = vst.msk [vmem:[#allocation2 + $0x28] sm:$0xff] %vm447_vm9, %v1639_v56  ;;  %v860_v48 = vor.u32 %v859_v49, %v6591_v31  ;;  %v961_v56 = vpack.c.b16 %v942_v28, %v941_v5  ;;  %v5388_v29 = vld [vmem:[%s6054_s19 + $0xb0] sm:$0x1] }
 0x10f   : > { %5342 = vmatmul.msk.bf16.gmra.mxu3 %vm302_vm2, %v5784_v37  ;;  %5407 = vmatmul.msk.bf16.gmra.mxu0 %vm302_vm2, %v2529_v41  ;;  %v2677_v7 = vld [vmem:[#allocation2 + $0x18] sm:$0xff]  ;;  %v1537_v10 = vpop.f32.mrf.mxu2  ;;  %v6595_v37 = vld [vmem:[%s6054_s19 + $0xa0] sm:$0xf]  ;;  %v2511_v41 = vunpack.c.l.b16 %v2411_v25  ;;  %v2432_v20 = vshll.u32 %v5388_v29, 16  ;;  %v2429_v49 = vor.u32 %v2428_v22, %v2424_v4 }
 0x110   : > { %2024 = vst.msk [vmem:[#allocation2 + $0x20] sm:$0xff] %vm447_vm9, %v1992_v63  ;;  %v2709_v53 = vadd.f32 %v2677_v7, %v6482_v44  ;;  %v2401_v44 = vsel %vm6115_vm7, %v2396_v1, %v2400_v60  ;;  %v1393_v51 = vrot.slane %v6595_v37, 5  ;;  %v6608_v60 = vrot.slane %v850_v34, 4  ;;  %v1242_v63 = vld [vmem:[%s6054_s19 + $0xa4] sm:$0x1] }
 0x111   : > { %v1042_v58 = vpop.f32.mrf.mxu1  ;;  %v2510_v40 = vunpack.c.l.b16 %v2401_v44  ;;  %v5214_v1 = vrot.slane %v1240_v43, 9  ;;  %v861_v16 = vrot.slane %v860_v48, 4  ;;  %v1396_v44 = vrot.slane %v1242_v63, 5  ;;  %v1114_v43 = vld [vmem:[#allocation2 + $0x48] sm:$0xff]  ;;  %v5391_v22 = vld [vmem:[%s6054_s19 + $0xbc] sm:$0x1] }
 0x112   : > { %v6577_v17 = vpop.f32.mrf.mxu3  ;;  %2741 = vst.msk [vmem:[#allocation2 + $0x18] sm:$0xff] %vm447_vm9, %v2709_v53  ;;  %v1144_v23 = vadd.f32 %v1112_v21, %v1042_v58  ;;  %v1395_v24 = vrot.slane %v1393_v51, 4  ;;  %v856_v34 = vsel %vm6115_vm7, %v6608_v60, %v6591_v31  ;;  %v2430_v42 = vrot.slane %v2429_v49, 4 }
 0x113   : > { %v1608_v26 = vld [vmem:[#allocation2 + $0x30] sm:$0xff]  ;;  %v2530_v2 = vpack.c.b16 %v2511_v41, %v2510_v40  ;;  %v866_v37 = vsel %vm6115_vm7, %v861_v16, %v865_v50  ;;  %v870_v40 = vrot.slane %v868_v18, 4  ;;  %v873_v41 = vrot.slane %v871_v19, 5  ;;  %v5390_v16 = vld [vmem:[%s6054_s19 + $0xb8] sm:$0xf] }
 0x114   : > { %v6589_v30 = vpop.f32.mrf.mxu0  ;;  %v1640_v33 = vadd.f32 %v1608_v26, %v1537_v10  ;;  %1176 = vst.msk [vmem:[#allocation2 + $0x38] sm:$0xff] %vm447_vm9, %v1144_v23  ;;  %v2418_v10 = vrot.slane %v2416_v55, 5  ;;  %v1397_v31 = vsel %vm6122_vm8, %v1395_v24, %v1396_v44  ;;  %v943_v54 = vunpack.c.l.b16 %v856_v34  ;;  %v1115_v24 = vld [vmem:[#allocation2 + $0x50] sm:$0xff]  ;;  %v5786_v44 = vld [vmem:[%s6054_s19 + $0xa8] sm:$0xff] }
 0x115   : > { %v1961_v38 = vld [vmem:[#allocation2 + $0x28] sm:$0xff]  ;;  %v944_v55 = vunpack.c.l.b16 %v866_v37  ;;  %v1441_v60 = vunpack.c.l.b16 %v1397_v31  ;;  %v874_v61 = vor.u32 %v873_v41, %v870_v40  ;;  %v525_v41 = vld [vmem:[%s6054_s19 + $0xb4] sm:$0xf] }
 0x116   : > { %v1993_v9 = vadd.f32 %v1961_v38, %v6551_v32  ;;  %1672 = vst.msk [vmem:[#allocation2 + $0x30] sm:$0xff] %vm447_vm9, %v1640_v33  ;;  %v2419_v21 = vor.u32 %v2418_v10, %v2415_v6  ;;  %v2434_v33 = vrot.slane %v2432_v20, 5 }
 0x117   : > { %v2678_v45 = vld [vmem:[#allocation2 + $0x20] sm:$0xff]  ;;  %v1539_v46 = vpop.f32.mrf.mxu2  ;;  %v962_v12 = vpack.c.b16 %v944_v55, %v943_v54 }
 0x118   : > { %2025 = vst.msk [vmem:[#allocation2 + $0x28] sm:$0xff] %vm447_vm9, %v1993_v9  ;;  %v2710_v32 = vadd.f32 %v2678_v45, %v6507_v14  ;;  %v523_v14 = vld [vmem:[%s6054_s19 + $0xac] sm:$0xf]  ;;  %v2420_v28 = vrot.slane %v2419_v21, 4  ;;  %v524_v45 = vld [vmem:[%s6054_s19 + $0xb0] sm:$0x1] }
 0x119   : > { %v1045_v62 = vpop.f32.mrf.mxu1  ;;  %v877_v25 = vshll.u32 %v523_v14, 16  ;;  %v881_v26 = vshrl.u32 %v523_v14, 16  ;;  %v887_v29 = vshll.u32 %v524_v45, 16  ;;  %v1245_v14 = vld [vmem:[%s6054_s19 + $0xb0] sm:$0x1] }
 0x11a   : > { %v6606_v59 = vpop.f32.mrf.mxu3  ;;  %2742 = vst.msk [vmem:[#allocation2 + $0x20] sm:$0xff] %vm447_vm9, %v2710_v32  ;;  %v1145_v7 = vadd.f32 %v1113_v47, %v1045_v62  ;;  %v1244_v62 = vld [vmem:[%s6054_s19 + $0xac] sm:$0xf]  ;;  %v1403_v37 = vrot.slane %v1245_v14, 5 }
 0x11b   : > { %v1609_v15 = vld [vmem:[#allocation2 + $0x38] sm:$0xff]  ;;  %v883_v47 = vrot.slane %v881_v26, 4 }
 0x11c   : > { %v6616_v53 = vpop.f32.mrf.mxu0  ;;  %v1641_v58 = vadd.f32 %v1609_v15, %v1539_v46  ;;  %1177 = vst.msk [vmem:[#allocation2 + $0x40] sm:$0xff] %vm447_vm9, %v1145_v7  ;;  %5197 = vmatmul.msk.bf16.gmra.mxu1 %vm302_vm2, %v961_v56  ;;  %5230 = vmatmul.msk.bf16.gmra.mxu2 %vm302_vm2, %v1458_v57  ;;  %v6640_v46 = vrot.slane %v877_v25, 5  ;;  %v1243_v7 = vld [vmem:[%s6054_s19 + $0xa8] sm:$0xe]  ;;  %v1400_v15 = vrot.slane %v1244_v62, 5 }
 0x11d   : > { %v1962_v23 = vld [vmem:[#allocation2 + $0x30] sm:$0xff]  ;;  %v5215_v26 = vrot.slane %v1243_v7, 9 }
 0x11e   : > { %v1994_v5 = vadd.f32 %v1962_v23, %v6577_v17  ;;  %1673 = vst.msk [vmem:[#allocation2 + $0x38] sm:$0xff] %vm447_vm9, %v1641_v58  ;;  %v1394_v17 = vsel %vm6122_vm8, %v5214_v1, %v1393_v51  ;;  %v2435_v51 = vsel %vm6115_vm7, %v2430_v42, %v2434_v33  ;;  %v884_v50 = vor.u32 %v883_v47, %v6640_v46 }
 0x11f   : > { %5343 = vmatmul.msk.bf16.gmra.mxu3 %vm302_vm2, %v5785_v0  ;;  %5408 = vmatmul.msk.bf16.gmra.mxu0 %vm302_vm2, %v2530_v2  ;;  %v2679_v35 = vld [vmem:[#allocation2 + $0x28] sm:$0xff]  ;;  %v1542_v36 = vpop.f32.mrf.mxu2  ;;  %v1440_v32 = vunpack.c.l.b16 %v1394_v17  ;;  %v2513_v1 = vunpack.c.l.b16 %v2435_v51  ;;  %v5389_v2 = vld [vmem:[%s6054_s19 + $0xb4] sm:$0xf]  ;;  %v1402_v34 = vrot.slane %v1400_v15, 4  ;;  %v1401_v47 = vsel %vm6122_vm8, %v5215_v26, %v1400_v15 }
 0x120   : > { %2026 = vst.msk [vmem:[#allocation2 + $0x30] sm:$0xff] %vm447_vm9, %v1994_v5  ;;  %v2711_v38 = vadd.f32 %v2679_v35, %v6536_v3  ;;  %v2425_v3 = vsel %vm6115_vm7, %v2420_v28, %v2424_v4  ;;  %v2437_v18 = vshrl.u32 %v5389_v2, 16  ;;  %v2440_v19 = vshll.u32 %v5389_v2, 16 }
 0x121   : > { %v1047_v9 = vpop.f32.mrf.mxu1  ;;  %v2512_v63 = vunpack.c.l.b16 %v2425_v3  ;;  %v1459_v58 = vpack.c.b16 %v1441_v60, %v1440_v32  ;;  %v889_v4 = vrot.slane %v887_v29, 5  ;;  %v885_v25 = vrot.slane %v884_v50, 4 }
 0x122   : > { %v6635_v39 = vpop.f32.mrf.mxu3  ;;  %2743 = vst.msk [vmem:[#allocation2 + $0x28] sm:$0xff] %vm447_vm9, %v2711_v38  ;;  %v1146_v48 = vadd.f32 %v1114_v43, %v1047_v9  ;;  %v2439_v28 = vrot.slane %v2437_v18, 4  ;;  %v2442_v33 = vrot.slane %v2440_v19, 5  ;;  %v2446_v35 = vshll.u32 %v5390_v16, 16 }
 0x123   : > { %v1610_v27 = vld [vmem:[#allocation2 + $0x40] sm:$0xff]  ;;  %v2531_v5 = vpack.c.b16 %v2513_v1, %v2512_v63  ;;  %v2456_v38 = vshll.u32 %v5391_v22, 16  ;;  %v890_v51 = vsel %vm6115_vm7, %v885_v25, %v889_v4  ;;  %v895_v60 = vshll.u32 %v525_v41, 16  ;;  %v1116_v1 = vld [vmem:[#allocation2 + $0x58] sm:$0xff] }
 0x124   : > { %v6647_v56 = vpop.f32.mrf.mxu0  ;;  %v1642_v57 = vadd.f32 %v1610_v27, %v1542_v36  ;;  %1178 = vst.msk [vmem:[#allocation2 + $0x48] sm:$0xff] %vm447_vm9, %v1146_v48  ;;  %v2443_v42 = vor.u32 %v2442_v33, %v2439_v28  ;;  %v2448_v9 = vrot.slane %v2446_v35, 5  ;;  %v526_v48 = vld [vmem:[%s6054_s19 + $0xb8] sm:$0xf]  ;;  %v1442_v14 = vunpack.c.l.b16 %v1401_v47  ;;  %v1246_v47 = vld [vmem:[%s6054_s19 + $0xb4] sm:$0xe] }
 0x125   : > { %v1963_v0 = vld [vmem:[#allocation2 + $0x38] sm:$0xff]  ;;  %v901_v62 = vshll.u32 %v526_v48, 16 }
 0x126   : > { %v1995_v6 = vadd.f32 %v1963_v0, %v6606_v59  ;;  %1674 = vst.msk [vmem:[#allocation2 + $0x40] sm:$0xff] %vm447_vm9, %v1642_v57  ;;  %v875_v59 = vrot.slane %v874_v61, 4  ;;  %v2444_v27 = vrot.slane %v2443_v42, 4  ;;  %v892_v57 = vshrl.u32 %v525_v41, 16  ;;  %v5787_v41 = vld [vmem:[%s6054_s19 + $0xb4] sm:$0xff] }
 0x127   : > { %v2680_v10 = vld [vmem:[#allocation2 + $0x30] sm:$0xff]  ;;  %v1544_v11 = vpop.f32.mrf.mxu2  ;;  %v2458_v61 = vrot.slane %v2456_v38, 5  ;;  %v905_v0 = vshrl.u32 %v526_v48, 16 }
 0x128   : > { %2027 = vst.msk [vmem:[#allocation2 + $0x38] sm:$0xff] %vm447_vm9, %v1995_v6  ;;  %v2712_v20 = vadd.f32 %v2680_v10, %v6560_v52  ;;  %v2450_v52 = vshrl.u32 %v5390_v16, 16  ;;  %v880_v45 = vsel %vm6115_vm7, %v875_v59, %v6640_v46  ;;  %v1404_v46 = vsel %vm6122_vm8, %v1402_v34, %v1403_v37 }
 0x129   : > { %v1050_v23 = vpop.f32.mrf.mxu1  ;;  %v945_v2 = vunpack.c.l.b16 %v880_v45  ;;  %v946_v6 = vunpack.c.l.b16 %v890_v51  ;;  %v2449_v10 = vsel %vm6115_vm7, %v2444_v27, %v2448_v9  ;;  %v894_v15 = vrot.slane %v892_v57, 4 }
 0x12a   : > { %v6660_v21 = vpop.f32.mrf.mxu3  ;;  %2744 = vst.msk [vmem:[#allocation2 + $0x30] sm:$0xff] %vm447_vm9, %v2712_v20  ;;  %v1147_v49 = vadd.f32 %v1115_v24, %v1050_v23  ;;  %v2452_v43 = vrot.slane %v2450_v52, 4  ;;  %v897_v16 = vrot.slane %v895_v60, 5  ;;  %v527_v20 = vld [vmem:[%s6054_s19 + $0xbc] sm:$0x1]  ;;  %v907_v59 = vrot.slane %v905_v0, 4 }
 0x12b   : > { %v1611_v36 = vld [vmem:[#allocation2 + $0x48] sm:$0xff]  ;;  %v963_v22 = vpack.c.b16 %v946_v6, %v945_v2  ;;  %v6701_v23 = vld [vmem:[%s6054_s19 + $0xb8] sm:$0xf]  ;;  %v2514_v24 = vunpack.c.l.b16 %v2449_v10  ;;  %v1117_v52 = vld [vmem:[#allocation2 + $0x60] sm:$0xff] }
 0x12c   : > { %v6665_v17 = vpop.f32.mrf.mxu0  ;;  %v1643_v40 = vadd.f32 %v1611_v36, %v1544_v11  ;;  %1179 = vst.msk [vmem:[#allocation2 + $0x50] sm:$0xff] %vm447_vm9, %v1147_v49  ;;  %5198 = vmatmul.msk.bf16.gmra.mxu1 %vm302_vm2, %v962_v12  ;;  %5231 = vmatmul.msk.bf16.gmra.mxu2 %vm302_vm2, %v1459_v58  ;;  %v2453_v54 = vor.u32 %v2452_v43, %v2448_v9  ;;  %v1443_v11 = vunpack.c.l.b16 %v1404_v46  ;;  %v6698_v58 = vrot.slane %v901_v62, 5  ;;  %v5394_v43 = vld [vmem:[%s6054_s19 + $0xc8] sm:$0x1]  ;;  %v5607_v10 = vld [vmem:[%s6054_s19 + $0x1c] sm:$0xf] }
 0x12d   : > { %v1964_v31 = vld [vmem:[#allocation2 + $0x40] sm:$0xff]  ;;  %v898_v34 = vor.u32 %v897_v16, %v894_v15  ;;  %v911_v9 = vshll.u32 %v527_v20, 16  ;;  %v1407_v48 = vrot.slane %v6701_v23, 5  ;;  %v1118_v23 = vld [vmem:[#allocation2 + $0x68] sm:$0xff] }
 0x12e   : > { %v1996_v3 = vadd.f32 %v1964_v31, %v6635_v39  ;;  %1675 = vst.msk [vmem:[#allocation2 + $0x48] sm:$0xff] %vm447_vm9, %v1643_v40  ;;  %v2454_v50 = vrot.slane %v2453_v54, 4  ;;  %v1460_v36 = vpack.c.b16 %v1443_v11, %v1442_v14  ;;  %v908_v42 = vor.u32 %v907_v59, %v6698_v58  ;;  %v5606_v14 = vld [vmem:[%s6054_s19 + $0x18] sm:$0xf] }
 0x12f   : > { %5344 = vmatmul.msk.bf16.gmra.mxu3 %vm302_vm2, %v5786_v44  ;;  %5409 = vmatmul.msk.bf16.gmra.mxu0 %vm302_vm2, %v2531_v5  ;;  %v2681_v55 = vld [vmem:[#allocation2 + $0x38] sm:$0xff]  ;;  %v1547_v32 = vpop.f32.mrf.mxu2  ;;  %v5392_v44 = vld [vmem:[%s6054_s19 + $0xc0] sm:$0xf]  ;;  %v5393_v5 = vld [vmem:[%s6054_s19 + $0xc4] sm:$0xf]  ;;  %v899_v46 = vrot.slane %v898_v34, 4 }
 0x130   : > { %2028 = vst.msk [vmem:[#allocation2 + $0x40] sm:$0xff] %vm447_vm9, %v1996_v3  ;;  %v2713_v39 = vadd.f32 %v2681_v55, %v6589_v30  ;;  %v2459_v18 = vsel %vm6115_vm7, %v2454_v50, %v2458_v61  ;;  %v2461_v28 = vshrl.u32 %v5392_v44, 16  ;;  %v2464_v49 = vshll.u32 %v5392_v44, 16 }
 0x131   : > { %v1052_v63 = vpop.f32.mrf.mxu1  ;;  %v2515_v26 = vunpack.c.l.b16 %v2459_v18  ;;  %v2470_v37 = vshll.u32 %v5393_v5, 16  ;;  %v2474_v38 = vshrl.u32 %v5393_v5, 16  ;;  %v909_v0 = vrot.slane %v908_v42, 4 }
 0x132   : > { %v6687_v29 = vpop.f32.mrf.mxu3  ;;  %2745 = vst.msk [vmem:[#allocation2 + $0x38] sm:$0xff] %vm447_vm9, %v2713_v39  ;;  %v1148_v7 = vadd.f32 %v1116_v1, %v1052_v63  ;;  %v2463_v31 = vrot.slane %v2461_v28, 4  ;;  %v2466_v3 = vrot.slane %v2464_v49, 5  ;;  %v2480_v39 = vshll.u32 %v5394_v43, 16 }
 0x133   : > { %v1612_v30 = vld [vmem:[#allocation2 + $0x50] sm:$0xff]  ;;  %v6716_v51 = vrot.slane %v2470_v37, 5  ;;  %v2476_v27 = vrot.slane %v2474_v38, 4  ;;  %v2532_v55 = vpack.c.b16 %v2515_v26, %v2514_v24  ;;  %v913_v50 = vrot.slane %v911_v9, 5 }
 0x134   : > { %v6692_v12 = vpop.f32.mrf.mxu0  ;;  %v1644_v19 = vadd.f32 %v1612_v30, %v1547_v32  ;;  %1180 = vst.msk [vmem:[#allocation2 + $0x58] sm:$0xff] %vm447_vm9, %v1148_v7  ;;  %v2467_v60 = vor.u32 %v2466_v3, %v2463_v31  ;;  %v5216_v63 = vrot.slane %v1246_v47, 9  ;;  %v1409_v2 = vrot.slane %v1407_v48, 4  ;;  %v6755_v38 = vld [vmem:[%s6054_s19 + $0x10] sm:$0xf] }
 0x135   : > { %v1965_v4 = vld [vmem:[#allocation2 + $0x48] sm:$0xff]  ;;  %v2477_v61 = vor.u32 %v2476_v27, %v6716_v51  ;;  %v2482_v18 = vrot.slane %v2480_v39, 5  ;;  %v914_v59 = vsel %vm6115_vm7, %v909_v0, %v913_v50  ;;  %v3667_v44 = vshrl.u32 %v5606_v14, 16  ;;  %v5608_v47 = vld [vmem:[%s6054_s19 + $0x20] sm:$0x1] }
 0x136   : > { %v1997_v25 = vadd.f32 %v1965_v4, %v6660_v21  ;;  %1676 = vst.msk [vmem:[#allocation2 + $0x50] sm:$0xff] %vm447_vm9, %v1644_v19  ;;  %v2468_v15 = vrot.slane %v2467_v60, 4  ;;  %v1408_v4 = vsel %vm6122_vm8, %v5216_v63, %v1407_v48  ;;  %v3680_v5 = vshrl.u32 %v5607_v10, 16  ;;  %v5788_v39 = vld [vmem:[%s6054_s19 + $0xc0] sm:$0xff] }
 0x137   : > { %v2682_v33 = vld [vmem:[#allocation2 + $0x40] sm:$0xff]  ;;  %v1549_v35 = vpop.f32.mrf.mxu2  ;;  %v2478_v16 = vrot.slane %v2477_v61, 4  ;;  %v1444_v34 = vunpack.c.l.b16 %v1408_v4  ;;  %v2868_v27 = vrot.slane %v6755_v38, 5  ;;  %v1119_v61 = vld [vmem:[#allocation2 + $0x70] sm:$0xff]  ;;  %v3686_v50 = vshll.u32 %v5608_v47, 16 }
 0x138   : > { %2029 = vst.msk [vmem:[#allocation2 + $0x48] sm:$0xff] %vm447_vm9, %v1997_v25  ;;  %v2714_v21 = vadd.f32 %v2682_v33, %v6616_v53  ;;  %v1248_v53 = vld [vmem:[%s6054_s19 + $0xbc] sm:$0x1]  ;;  %v3676_v25 = vshll.u32 %v5607_v10, 16  ;;  %v2473_v33 = vsel %vm6115_vm7, %v2468_v15, %v6716_v51  ;;  %v3682_v48 = vrot.slane %v3680_v5, 4 }
 0x139   : > { %v1055_v45 = vpop.f32.mrf.mxu1  ;;  %v1410_v6 = vrot.slane %v1248_v53, 5  ;;  %v2516_v31 = vunpack.c.l.b16 %v2473_v33  ;;  %v5671_v15 = vld [vmem:[%s6054_s19 + $0x18] sm:$0xe] }
 0x13a   : > { %v6709_v40 = vpop.f32.mrf.mxu3  ;;  %2746 = vst.msk [vmem:[#allocation2 + $0x40] sm:$0xff] %vm447_vm9, %v2714_v21  ;;  %v1149_v54 = vadd.f32 %v1117_v52, %v1055_v45  ;;  %v6757_v9 = vrot.slane %v3676_v25, 5 }
 0x13b   : > { %v1613_v32 = vld [vmem:[#allocation2 + $0x58] sm:$0xff]  ;;  %v1411_v24 = vsel %vm6122_vm8, %v1409_v2, %v1410_v6 }
 0x13c   : > { %v6720_v57 = vpop.f32.mrf.mxu0  ;;  %v1645_v62 = vadd.f32 %v1613_v32, %v1549_v35  ;;  %1181 = vst.msk [vmem:[#allocation2 + $0x60] sm:$0xff] %vm447_vm9, %v1149_v54  ;;  %5199 = vmatmul.msk.bf16.gmra.mxu1 %vm302_vm2, %v963_v22  ;;  %5232 = vmatmul.msk.bf16.gmra.mxu2 %vm302_vm2, %v1460_v36  ;;  %v2483_v35 = vsel %vm6115_vm7, %v2478_v16, %v2482_v18  ;;  %v948_v36 = vunpack.c.l.b16 %v914_v59  ;;  %v1445_v37 = vunpack.c.l.b16 %v1411_v24  ;;  %v5673_v16 = vld [vmem:[%s6054_s19 + $0x20] sm:$0x1] }
 0x13d   : > { %v1966_v1 = vld [vmem:[#allocation2 + $0x50] sm:$0xff]  ;;  %v2517_v45 = vunpack.c.l.b16 %v2483_v35  ;;  %v1120_v35 = vld [vmem:[#allocation2 + $0x78] sm:$0xff] }
 0x13e   : > { %v1998_v7 = vadd.f32 %v1966_v1, %v6687_v29  ;;  %1677 = vst.msk [vmem:[#allocation2 + $0x58] sm:$0xff] %vm447_vm9, %v1645_v62  ;;  %v904_v29 = vsel %vm6115_vm7, %v899_v46, %v6698_v58  ;;  %v5672_v46 = vld [vmem:[%s6054_s19 + $0x1c] sm:$0xf]  ;;  %v5414_v62 = vld [vmem:[%s6054_s19 + $0x14] sm:$0x1] }
 0x13f   : > { %5345 = vmatmul.msk.bf16.gmra.mxu3 %vm302_vm2, %v5787_v41  ;;  %5410 = vmatmul.msk.bf16.gmra.mxu0 %vm302_vm2, %v2532_v55  ;;  %v2683_v30 = vld [vmem:[#allocation2 + $0x48] sm:$0xff]  ;;  %v1552_v11 = vpop.f32.mrf.mxu2  ;;  %v947_v28 = vunpack.c.l.b16 %v904_v29  ;;  %v3669_v41 = vrot.slane %v3667_v44, 4  ;;  %v1461_v55 = vpack.c.b16 %v1445_v37, %v1444_v34  ;;  %v2533_v1 = vpack.c.b16 %v2517_v45, %v2516_v31 }
 0x140   : > { %2030 = vst.msk [vmem:[#allocation2 + $0x50] sm:$0xff] %vm447_vm9, %v1998_v7  ;;  %v2715_v19 = vadd.f32 %v2683_v30, %v6647_v56  ;;  %v3670_v56 = vshll.u32 %v5606_v14, 16  ;;  %v2870_v7 = vrot.slane %v2868_v27, 4  ;;  %v4434_v10 = vrot.slane %v5672_v46, 5  ;;  %v5611_v46 = vld [vmem:[%s6054_s19 + $0x2c] sm:$0x1] }
 0x141   : > { %v1057_v22 = vpop.f32.mrf.mxu1  ;;  %v964_v53 = vpack.c.b16 %v948_v36, %v947_v28  ;;  %v3688_v29 = vrot.slane %v3686_v50, 5 }
 0x142   : > { %v6734_v20 = vpop.f32.mrf.mxu3  ;;  %2747 = vst.msk [vmem:[#allocation2 + $0x48] sm:$0xff] %vm447_vm9, %v2715_v19  ;;  %v1150_v26 = vadd.f32 %v1118_v23, %v1057_v22  ;;  %v3672_v42 = vrot.slane %v3670_v56, 5  ;;  %v5609_v22 = vld [vmem:[%s6054_s19 + $0x24] sm:$0xf]  ;;  %v5610_v23 = vld [vmem:[%s6054_s19 + $0x28] sm:$0xf] }
 0x143   : > { %v1614_v58 = vld [vmem:[#allocation2 + $0x60] sm:$0xff]  ;;  %v5719_v56 = vrot.slane %v5671_v15, 9  ;;  %v4436_v25 = vrot.slane %v4434_v10, 4  ;;  %v3691_v36 = vshrl.u32 %v5609_v22, 16  ;;  %v3694_v34 = vshll.u32 %v5609_v22, 16 }
 0x144   : > { %v6746_v49 = vpop.f32.mrf.mxu0  ;;  %v1646_v52 = vadd.f32 %v1614_v58, %v1552_v11  ;;  %1182 = vst.msk [vmem:[#allocation2 + $0x68] sm:$0xff] %vm447_vm9, %v1150_v26  ;;  %v3673_v0 = vor.u32 %v3672_v42, %v3669_v41  ;;  %v2871_v11 = vrot.slane %v5414_v62, 5  ;;  %v4437_v26 = vrot.slane %v5673_v16, 5  ;;  %v5675_v16 = vld [vmem:[%s6054_s19 + $0x28] sm:$0xf] }
 0x145   : > { %v1967_v21 = vld [vmem:[#allocation2 + $0x58] sm:$0xff]  ;;  %v3700_v37 = vshll.u32 %v5610_v23, 16  ;;  %v3710_v15 = vshll.u32 %v5611_v46, 16 }
 0x146   : > { %v1999_v43 = vadd.f32 %v1967_v21, %v6709_v40  ;;  %1678 = vst.msk [vmem:[#allocation2 + $0x60] sm:$0xff] %vm447_vm9, %v1646_v52  ;;  %v5412_v40 = vld [vmem:[%s6054_s19 + $0xc] sm:$0xe]  ;;  %v3674_v19 = vrot.slane %v3673_v0, 4  ;;  %v2872_v28 = vsel %vm6122_vm8, %v2870_v7, %v2871_v11  ;;  %v3704_v21 = vshrl.u32 %v5610_v23, 16 }
 0x147   : > { %v2684_v3 = vld [vmem:[#allocation2 + $0x50] sm:$0xff]  ;;  %v1554_v51 = vpop.f32.mrf.mxu2  ;;  %v5460_v6 = vrot.slane %v5412_v40, 9  ;;  %v2981_v47 = vunpack.c.l.b16 %v2872_v28 }
 0x148   : > { %2031 = vst.msk [vmem:[#allocation2 + $0x58] sm:$0xff] %vm447_vm9, %v1999_v43  ;;  %v2716_v54 = vadd.f32 %v2684_v3, %v6665_v17  ;;  %v3683_v17 = vor.u32 %v3682_v48, %v6757_v9  ;;  %v3679_v52 = vsel %vm6115_vm7, %v3674_v19, %v6757_v9  ;;  %v4435_v43 = vsel %vm6122_vm8, %v5719_v56, %v4434_v10  ;;  %v6808_v3 = vld [vmem:[%s6054_s19 + $0x1c] sm:$0xf]  ;;  %v1121_v10 = vld [vmem:[#allocation2 + $0x80] sm:$0xff]  ;;  %v5676_v56 = vld [vmem:[%s6054_s19 + $0x2c] sm:$0x1] }
 0x149   : > { %v1060_v60 = vpop.f32.mrf.mxu1  ;;  %v4438_v9 = vsel %vm6122_vm8, %v4436_v25, %v4437_v26  ;;  %v4052_v48 = vunpack.c.l.b16 %v3679_v52  ;;  %v2875_v50 = vrot.slane %v6808_v3, 5  ;;  %v4441_v25 = vrot.slane %v5675_v16, 5  ;;  %v5613_v52 = vld [vmem:[%s6054_s19 + $0x34] sm:$0xf] }
 0x14a   : > { %v6765_v32 = vpop.f32.mrf.mxu3  ;;  %2748 = vst.msk [vmem:[#allocation2 + $0x50] sm:$0xff] %vm447_vm9, %v2716_v54  ;;  %v1151_v63 = vadd.f32 %v1119_v61, %v1060_v60  ;;  %v3684_v4 = vrot.slane %v3683_v17, 4  ;;  %v3693_v54 = vrot.slane %v3691_v36, 4  ;;  %v3706_v60 = vrot.slane %v3704_v21, 4  ;;  %v5789_v17 = vld [vmem:[%s6054_s19 + $0x18] sm:$0xff] }
 0x14b   : > { %v1615_v2 = vld [vmem:[#allocation2 + $0x68] sm:$0xff]  ;;  %v4546_v61 = vunpack.c.l.b16 %v4435_v43  ;;  %v3724_v3 = vshll.u32 %v5613_v52, 16 }
 0x14c   : > { %v6773_v14 = vpop.f32.mrf.mxu0  ;;  %v1647_v30 = vadd.f32 %v1615_v2, %v1554_v51  ;;  %1183 = vst.msk [vmem:[#allocation2 + $0x70] sm:$0xff] %vm447_vm9, %v1151_v63  ;;  %5200 = vmatmul.msk.bf16.gmra.mxu1 %vm302_vm2, %v964_v53  ;;  %5233 = vmatmul.msk.bf16.gmra.mxu2 %vm302_vm2, %v1461_v55  ;;  %v3689_v38 = vsel %vm6115_vm7, %v3684_v4, %v3688_v29  ;;  %v3696_v53 = vrot.slane %v3694_v34, 5  ;;  %v6810_v55 = vrot.slane %v3700_v37, 5 }
 0x14d   : > { %v1968_v18 = vld [vmem:[#allocation2 + $0x60] sm:$0xff]  ;;  %v2877_v4 = vrot.slane %v2875_v50, 4 }
 0x14e   : > { %v2000_v59 = vadd.f32 %v1968_v18, %v6734_v20  ;;  %1679 = vst.msk [vmem:[#allocation2 + $0x68] sm:$0xff] %vm447_vm9, %v1647_v30  ;;  %v2869_v20 = vsel %vm6122_vm8, %v5460_v6, %v2868_v27  ;;  %v4053_v27 = vunpack.c.l.b16 %v3689_v38  ;;  %v5417_v6 = vld [vmem:[%s6054_s19 + $0x20] sm:$0x1]  ;;  %v3697_v11 = vor.u32 %v3696_v53, %v3693_v54 }
 0x14f   : > { %5346 = vmatmul.msk.bf16.gmra.mxu3 %vm302_vm2, %v5788_v39  ;;  %5411 = vmatmul.msk.bf16.gmra.mxu0 %vm302_vm2, %v2533_v1  ;;  %v2685_v24 = vld [vmem:[#allocation2 + $0x58] sm:$0xff]  ;;  %v1557_v44 = vpop.f32.mrf.mxu2  ;;  %v2980_v45 = vunpack.c.l.b16 %v2869_v20  ;;  %v4547_v39 = vunpack.c.l.b16 %v4438_v9  ;;  %v3707_v19 = vor.u32 %v3706_v60, %v6810_v55  ;;  %v2878_v22 = vrot.slane %v5417_v6, 5 }
 0x150   : > { %2032 = vst.msk [vmem:[#allocation2 + $0x60] sm:$0xff] %vm447_vm9, %v2000_v59  ;;  %v2717_v5 = vadd.f32 %v2685_v24, %v6692_v12  ;;  %v4084_v30 = vpack.c.b16 %v4053_v27, %v4052_v48  ;;  %v3712_v20 = vrot.slane %v3710_v15, 5  ;;  %v4444_v38 = vrot.slane %v5676_v56, 5  ;;  %v5614_v6 = vld [vmem:[%s6054_s19 + $0x38] sm:$0x1] }
 0x151   : > { %v1062_v33 = vpop.f32.mrf.mxu1  ;;  %v3012_v1 = vpack.c.b16 %v2981_v47, %v2980_v45  ;;  %v2879_v43 = vsel %vm6122_vm8, %v2877_v4, %v2878_v22  ;;  %v3728_v27 = vshrl.u32 %v5613_v52, 16  ;;  %v1123_v22 = vld [vmem:[#allocation2 + $0x90] sm:$0xff]  ;;  %v3734_v56 = vshll.u32 %v5614_v6, 16 }
 0x152   : > { %v6788_v58 = vpop.f32.mrf.mxu3  ;;  %2749 = vst.msk [vmem:[#allocation2 + $0x58] sm:$0xff] %vm447_vm9, %v2717_v5  ;;  %v1152_v12 = vadd.f32 %v1120_v35, %v1062_v33  ;;  %v3698_v5 = vrot.slane %v3697_v11, 4  ;;  %v3708_v33 = vrot.slane %v3707_v19, 4  ;;  %v5612_v35 = vld [vmem:[%s6054_s19 + $0x30] sm:$0xf] }
 0x153   : > { %v1616_v41 = vld [vmem:[#allocation2 + $0x70] sm:$0xff]  ;;  %v3715_v47 = vshrl.u32 %v5612_v35, 16  ;;  %v3718_v48 = vshll.u32 %v5612_v35, 16 }
 0x154   : > { %v6800_v42 = vpop.f32.mrf.mxu0  ;;  %v1648_v31 = vadd.f32 %v1616_v41, %v1557_v44  ;;  %1184 = vst.msk [vmem:[#allocation2 + $0x78] sm:$0xff] %vm447_vm9, %v1152_v12  ;;  %v5674_v44 = vld [vmem:[%s6054_s19 + $0x24] sm:$0xe]  ;;  %v4443_v12 = vrot.slane %v4441_v25, 4  ;;  %v3703_v45 = vsel %vm6115_vm7, %v3698_v5, %v6810_v55 }
 0x155   : > { %v1969_v51 = vld [vmem:[#allocation2 + $0x68] sm:$0xff]  ;;  %v5720_v37 = vrot.slane %v5674_v44, 9 }
 0x156   : > { %v2001_v40 = vadd.f32 %v1969_v51, %v6765_v32  ;;  %1680 = vst.msk [vmem:[#allocation2 + $0x70] sm:$0xff] %vm447_vm9, %v1648_v31  ;;  %v5415_v32 = vld [vmem:[%s6054_s19 + $0x18] sm:$0xe]  ;;  %v1122_v31 = vld [vmem:[#allocation2 + $0x88] sm:$0xff]  ;;  %v3713_v51 = vsel %vm6115_vm7, %v3708_v33, %v3712_v20  ;;  %v4445_v55 = vsel %vm6122_vm8, %v4443_v12, %v4444_v38 }
 0x157   : > { %v2686_v62 = vld [vmem:[#allocation2 + $0x60] sm:$0xff]  ;;  %v1559_v0 = vpop.f32.mrf.mxu2  ;;  %v5461_v59 = vrot.slane %v5415_v32, 9 }
 0x158   : > { %2033 = vst.msk [vmem:[#allocation2 + $0x68] sm:$0xff] %vm447_vm9, %v2001_v40  ;;  %v2718_v63 = vadd.f32 %v2686_v62, %v6720_v57  ;;  %v4578_v57 = vpack.c.b16 %v4547_v39, %v4546_v61  ;;  %v4442_v40 = vsel %vm6122_vm8, %v5720_v37, %v4441_v25  ;;  %v2983_v61 = vunpack.c.l.b16 %v2879_v43  ;;  %v6861_v62 = vld [vmem:[%s6054_s19 + $0x28] sm:$0xf]  ;;  %v5678_v25 = vld [vmem:[%s6054_s19 + $0x34] sm:$0xf] }
 0x159   : > { %v1065_v7 = vpop.f32.mrf.mxu1  ;;  %v4054_v39 = vunpack.c.l.b16 %v3703_v45  ;;  %v2882_v16 = vrot.slane %v6861_v62, 5  ;;  %v5679_v37 = vld [vmem:[%s6054_s19 + $0x38] sm:$0x1]  ;;  %v4448_v12 = vrot.slane %v5678_v25, 5  ;;  %v5616_v45 = vld [vmem:[%s6054_s19 + $0x40] sm:$0xf] }
 0x15a   : > { %v6819_v2 = vpop.f32.mrf.mxu3  ;;  %2750 = vst.msk [vmem:[#allocation2 + $0x60] sm:$0xff] %vm447_vm9, %v2718_v63  ;;  %v1153_v18 = vadd.f32 %v1121_v10, %v1065_v7  ;;  %v3717_v63 = vrot.slane %v3715_v47, 4  ;;  %v3730_v7 = vrot.slane %v3728_v27, 4  ;;  %v4548_v10 = vunpack.c.l.b16 %v4442_v40 }
 0x15b   : > { %v1617_v29 = vld [vmem:[#allocation2 + $0x78] sm:$0xff]  ;;  %v2884_v33 = vrot.slane %v2882_v16, 4  ;;  %v3748_v62 = vshll.u32 %v5616_v45, 16 }
 0x15c   : > { %v6826_v23 = vpop.f32.mrf.mxu0  ;;  %v1649_v24 = vadd.f32 %v1617_v29, %v1559_v0  ;;  %1185 = vst.msk [vmem:[#allocation2 + $0x80] sm:$0xff] %vm447_vm9, %v1153_v18  ;;  %5477 = vmatmul.msk.bf16.vlgmr.msra.gmra.mxu1 %vm302_vm2, %v3012_v1  ;;  %5590 = vmatmul.msk.bf16.vlgmr.msra.gmra.mxu2 %vm302_vm2, %v5789_v17  ;;  %v3720_v1 = vrot.slane %v3718_v48, 5  ;;  %v6863_v17 = vrot.slane %v3724_v3, 5 }
 0x15d   : > { %v1970_v26 = vld [vmem:[#allocation2 + $0x70] sm:$0xff] }
 0x15e   : > { %v2002_v28 = vadd.f32 %v1970_v26, %v6788_v58  ;;  %1681 = vst.msk [vmem:[#allocation2 + $0x78] sm:$0xff] %vm447_vm9, %v1649_v24  ;;  %v2876_v58 = vsel %vm6122_vm8, %v5461_v59, %v2875_v50  ;;  %v4055_v50 = vunpack.c.l.b16 %v3713_v51  ;;  %v5420_v59 = vld [vmem:[%s6054_s19 + $0x2c] sm:$0x1]  ;;  %v3721_v44 = vor.u32 %v3720_v1, %v3717_v63 }
 0x15f   : > { %5655 = vmatmul.msk.bf16.vlgmr.msra.gmra.mxu3 %vm302_vm2, %v4084_v30  ;;  %5736 = vmatmul.msk.bf16.vlgmr.msra.gmra.mxu0 %vm302_vm2, %v4578_v57  ;;  %v2687_v36 = vld [vmem:[#allocation2 + $0x68] sm:$0xff]  ;;  %v1562_v34 = vpop.f32.mrf.mxu2  ;;  %v2982_v60 = vunpack.c.l.b16 %v2876_v58  ;;  %v4549_v30 = vunpack.c.l.b16 %v4445_v55  ;;  %v3731_v5 = vor.u32 %v3730_v7, %v6863_v17  ;;  %v2885_v35 = vrot.slane %v5420_v59, 5  ;;  %v5617_v59 = vld [vmem:[%s6054_s19 + $0x44] sm:$0x1] }
 0x160   : > { %2034 = vst.msk [vmem:[#allocation2 + $0x70] sm:$0xff] %vm447_vm9, %v2002_v28  ;;  %v2719_v21 = vadd.f32 %v2687_v36, %v6746_v49  ;;  %v5790_v57 = vld [vmem:[%s6054_s19 + $0x24] sm:$0xff]  ;;  %v4085_v24 = vpack.c.b16 %v4055_v50, %v4054_v39  ;;  %v3736_v58 = vrot.slane %v3734_v56, 5  ;;  %v4451_v51 = vrot.slane %v5679_v37, 5 }
 0x161   : > { %v1067_v9 = vpop.f32.mrf.mxu1  ;;  %v3013_v19 = vpack.c.b16 %v2983_v61, %v2982_v60  ;;  %v2886_v40 = vsel %vm6122_vm8, %v2884_v33, %v2885_v35  ;;  %v3752_v50 = vshrl.u32 %v5616_v45, 16  ;;  %v1125_v35 = vld [vmem:[#allocation2 + $0xa0] sm:$0xff]  ;;  %v3758_v37 = vshll.u32 %v5617_v59, 16 }
 0x162   : > { %v6841_v41 = vpop.f32.mrf.mxu3  ;;  %2751 = vst.msk [vmem:[#allocation2 + $0x68] sm:$0xff] %vm447_vm9, %v2719_v21  ;;  %v1154_v49 = vadd.f32 %v1122_v31, %v1067_v9  ;;  %v3722_v21 = vrot.slane %v3721_v44, 4  ;;  %v3732_v9 = vrot.slane %v3731_v5, 4  ;;  %v5615_v31 = vld [vmem:[%s6054_s19 + $0x3c] sm:$0xf] }
 0x163   : > { %v1618_v54 = vld [vmem:[#allocation2 + $0x80] sm:$0xff]  ;;  %v3739_v61 = vshrl.u32 %v5615_v31, 16  ;;  %v3742_v39 = vshll.u32 %v5615_v31, 16 }
 0x164   : > { %v6853_v53 = vpop.f32.mrf.mxu0  ;;  %v1650_v46 = vadd.f32 %v1618_v54, %v1562_v34  ;;  %1186 = vst.msk [vmem:[#allocation2 + $0x88] sm:$0xff] %vm447_vm9, %v1154_v49  ;;  %v5677_v34 = vld [vmem:[%s6054_s19 + $0x30] sm:$0xe]  ;;  %v4450_v49 = vrot.slane %v4448_v12, 4  ;;  %v3727_v60 = vsel %vm6115_vm7, %v3722_v21, %v6863_v17 }
 0x165   : > { %v1971_v0 = vld [vmem:[#allocation2 + $0x78] sm:$0xff]  ;;  %v5721_v3 = vrot.slane %v5677_v34, 9 }
 0x166   : > { %v2003_v32 = vadd.f32 %v1971_v0, %v6819_v2  ;;  %1682 = vst.msk [vmem:[#allocation2 + $0x80] sm:$0xff] %vm447_vm9, %v1650_v46  ;;  %v5418_v2 = vld [vmem:[%s6054_s19 + $0x24] sm:$0xe]  ;;  %v1124_v46 = vld [vmem:[#allocation2 + $0x98] sm:$0xff]  ;;  %v3737_v0 = vsel %vm6115_vm7, %v3732_v9, %v3736_v58  ;;  %v4452_v17 = vsel %vm6122_vm8, %v4450_v49, %v4451_v51 }
 0x167   : > { %v2688_v11 = vld [vmem:[#allocation2 + $0x70] sm:$0xff]  ;;  %v1564_v15 = vpop.f32.mrf.mxu2  ;;  %v5462_v28 = vrot.slane %v5418_v2, 9 }
 0x168   : > { %2035 = vst.msk [vmem:[#allocation2 + $0x78] sm:$0xff] %vm447_vm9, %v2003_v32  ;;  %v2720_v18 = vadd.f32 %v2688_v11, %v6773_v14  ;;  %v4579_v14 = vpack.c.b16 %v4549_v30, %v4548_v10  ;;  %v4449_v32 = vsel %vm6122_vm8, %v5721_v3, %v4448_v12  ;;  %v2985_v10 = vunpack.c.l.b16 %v2886_v40  ;;  %v6914_v11 = vld [vmem:[%s6054_s19 + $0x34] sm:$0xf]  ;;  %v5681_v12 = vld [vmem:[%s6054_s19 + $0x40] sm:$0xf] }
 0x169   : > { %v1070_v4 = vpop.f32.mrf.mxu1  ;;  %v4056_v30 = vunpack.c.l.b16 %v3727_v60  ;;  %v2889_v25 = vrot.slane %v6914_v11, 5  ;;  %v5682_v3 = vld [vmem:[%s6054_s19 + $0x44] sm:$0x1]  ;;  %v4455_v49 = vrot.slane %v5681_v12, 5  ;;  %v5619_v60 = vld [vmem:[%s6054_s19 + $0x4c] sm:$0xf] }
 0x16a   : > { %v6872_v29 = vpop.f32.mrf.mxu3  ;;  %2752 = vst.msk [vmem:[#allocation2 + $0x70] sm:$0xff] %vm447_vm9, %v2720_v18  ;;  %v1155_v26 = vadd.f32 %v1123_v22, %v1070_v4  ;;  %v3741_v18 = vrot.slane %v3739_v61, 4  ;;  %v3754_v4 = vrot.slane %v3752_v50, 4  ;;  %v4550_v22 = vunpack.c.l.b16 %v4449_v32 }
 0x16b   : > { %v1619_v20 = vld [vmem:[#allocation2 + $0x88] sm:$0xff]  ;;  %v2891_v9 = vrot.slane %v2889_v25, 4  ;;  %v3772_v11 = vshll.u32 %v5619_v60, 16 }
 0x16c   : > { %v6879_v52 = vpop.f32.mrf.mxu0  ;;  %v1651_v36 = vadd.f32 %v1619_v20, %v1564_v15  ;;  %1187 = vst.msk [vmem:[#allocation2 + $0x90] sm:$0xff] %vm447_vm9, %v1155_v26  ;;  %5478 = vmatmul.msk.bf16.gmra.mxu1 %vm302_vm2, %v3013_v19  ;;  %5591 = vmatmul.msk.bf16.gmra.mxu2 %vm302_vm2, %v5790_v57  ;;  %v3744_v19 = vrot.slane %v3742_v39, 5  ;;  %v6916_v57 = vrot.slane %v3748_v62, 5 }
 0x16d   : > { %v1972_v38 = vld [vmem:[#allocation2 + $0x80] sm:$0xff] }
 0x16e   : > { %v2004_v43 = vadd.f32 %v1972_v38, %v6841_v41  ;;  %1683 = vst.msk [vmem:[#allocation2 + $0x88] sm:$0xff] %vm447_vm9, %v1651_v36  ;;  %v2883_v41 = vsel %vm6122_vm8, %v5462_v28, %v2882_v16  ;;  %v4057_v16 = vunpack.c.l.b16 %v3737_v0  ;;  %v5423_v28 = vld [vmem:[%s6054_s19 + $0x38] sm:$0x1]  ;;  %v3745_v34 = vor.u32 %v3744_v19, %v3741_v18 }
 0x16f   : > { %5656 = vmatmul.msk.bf16.gmra.mxu3 %vm302_vm2, %v4085_v24  ;;  %5737 = vmatmul.msk.bf16.gmra.mxu0 %vm302_vm2, %v4579_v14  ;;  %v2689_v47 = vld [vmem:[#allocation2 + $0x78] sm:$0xff]  ;;  %v1567_v48 = vpop.f32.mrf.mxu2  ;;  %v2984_v7 = vunpack.c.l.b16 %v2883_v41  ;;  %v4551_v24 = vunpack.c.l.b16 %v4452_v17  ;;  %v5791_v14 = vld [vmem:[%s6054_s19 + $0x30] sm:$0xff]  ;;  %v3755_v21 = vor.u32 %v3754_v4, %v6916_v57  ;;  %v2892_v31 = vrot.slane %v5423_v28, 5 }
 0x170   : > { %2036 = vst.msk [vmem:[#allocation2 + $0x80] sm:$0xff] %vm447_vm9, %v2004_v43  ;;  %v2721_v27 = vadd.f32 %v2689_v47, %v6800_v42  ;;  %v4086_v36 = vpack.c.b16 %v4057_v16, %v4056_v30  ;;  %v3760_v41 = vrot.slane %v3758_v37, 5  ;;  %v4458_v0 = vrot.slane %v5682_v3, 5  ;;  %v5620_v28 = vld [vmem:[%s6054_s19 + $0x50] sm:$0x1] }
 0x171   : > { %v1072_v55 = vpop.f32.mrf.mxu1  ;;  %v3014_v5 = vpack.c.b16 %v2985_v10, %v2984_v7  ;;  %v2893_v32 = vsel %vm6122_vm8, %v2891_v9, %v2892_v31  ;;  %v3776_v16 = vshrl.u32 %v5619_v60, 16  ;;  %v1127_v31 = vld [vmem:[#allocation2 + $0xb0] sm:$0xff]  ;;  %v3782_v3 = vshll.u32 %v5620_v28, 16 }
 0x172   : > { %v6894_v54 = vpop.f32.mrf.mxu3  ;;  %2753 = vst.msk [vmem:[#allocation2 + $0x78] sm:$0xff] %vm447_vm9, %v2721_v27  ;;  %v1156_v42 = vadd.f32 %v1124_v46, %v1072_v55  ;;  %v3746_v27 = vrot.slane %v3745_v34, 4  ;;  %v3756_v55 = vrot.slane %v3755_v21, 4  ;;  %v5618_v46 = vld [vmem:[%s6054_s19 + $0x48] sm:$0xf] }
 0x173   : > { %v1620_v63 = vld [vmem:[#allocation2 + $0x90] sm:$0xff]  ;;  %v3763_v10 = vshrl.u32 %v5618_v46, 16  ;;  %v3766_v30 = vshll.u32 %v5618_v46, 16 }
 0x174   : > { %v6906_v1 = vpop.f32.mrf.mxu0  ;;  %v1652_v6 = vadd.f32 %v1620_v63, %v1567_v48  ;;  %1188 = vst.msk [vmem:[#allocation2 + $0x98] sm:$0xff] %vm447_vm9, %v1156_v42  ;;  %v5680_v48 = vld [vmem:[%s6054_s19 + $0x3c] sm:$0xe]  ;;  %v4457_v42 = vrot.slane %v4455_v49, 4  ;;  %v3751_v7 = vsel %vm6115_vm7, %v3746_v27, %v6916_v57 }
 0x175   : > { %v1973_v15 = vld [vmem:[#allocation2 + $0x88] sm:$0xff]  ;;  %v5722_v62 = vrot.slane %v5680_v48, 9 }
 0x176   : > { %v2005_v2 = vadd.f32 %v1973_v15, %v6872_v29  ;;  %1684 = vst.msk [vmem:[#allocation2 + $0x90] sm:$0xff] %vm447_vm9, %v1652_v6  ;;  %v5421_v29 = vld [vmem:[%s6054_s19 + $0x30] sm:$0xe]  ;;  %v1126_v6 = vld [vmem:[#allocation2 + $0xa8] sm:$0xff]  ;;  %v3761_v15 = vsel %vm6115_vm7, %v3756_v55, %v3760_v41  ;;  %v4459_v57 = vsel %vm6122_vm8, %v4457_v42, %v4458_v0 }
 0x177   : > { %v2690_v44 = vld [vmem:[#allocation2 + $0x80] sm:$0xff]  ;;  %v1569_v56 = vpop.f32.mrf.mxu2  ;;  %v5463_v43 = vrot.slane %v5421_v29, 9 }
 0x178   : > { %2037 = vst.msk [vmem:[#allocation2 + $0x88] sm:$0xff] %vm447_vm9, %v2005_v2  ;;  %v2722_v26 = vadd.f32 %v2690_v44, %v6826_v23  ;;  %v4580_v23 = vpack.c.b16 %v4551_v24, %v4550_v22  ;;  %v4456_v2 = vsel %vm6122_vm8, %v5722_v62, %v4455_v49  ;;  %v2987_v22 = vunpack.c.l.b16 %v2893_v32  ;;  %v6967_v44 = vld [vmem:[%s6054_s19 + $0x40] sm:$0xf]  ;;  %v5684_v49 = vld [vmem:[%s6054_s19 + $0x4c] sm:$0xf] }
 0x179   : > { %v1075_v33 = vpop.f32.mrf.mxu1  ;;  %v4058_v24 = vunpack.c.l.b16 %v3751_v7  ;;  %v2896_v12 = vrot.slane %v6967_v44, 5  ;;  %v5685_v62 = vld [vmem:[%s6054_s19 + $0x50] sm:$0x1]  ;;  %v4462_v42 = vrot.slane %v5684_v49, 5  ;;  %v5622_v7 = vld [vmem:[%s6054_s19 + $0x58] sm:$0xf] }
 0x17a   : > { %v6925_v20 = vpop.f32.mrf.mxu3  ;;  %2754 = vst.msk [vmem:[#allocation2 + $0x80] sm:$0xff] %vm447_vm9, %v2722_v26  ;;  %v1157_v38 = vadd.f32 %v1125_v35, %v1075_v33  ;;  %v3765_v26 = vrot.slane %v3763_v10, 4  ;;  %v3778_v33 = vrot.slane %v3776_v16, 4  ;;  %v4552_v35 = vunpack.c.l.b16 %v4456_v2 }
 0x17b   : > { %v1621_v58 = vld [vmem:[#allocation2 + $0x98] sm:$0xff]  ;;  %v2898_v55 = vrot.slane %v2896_v12, 4  ;;  %v3796_v44 = vshll.u32 %v5622_v7, 16 }
 0x17c   : > { %v6932_v45 = vpop.f32.mrf.mxu0  ;;  %v1653_v47 = vadd.f32 %v1621_v58, %v1569_v56  ;;  %1189 = vst.msk [vmem:[#allocation2 + $0xa0] sm:$0xff] %vm447_vm9, %v1157_v38  ;;  %5479 = vmatmul.msk.bf16.gmra.mxu1 %vm302_vm2, %v3014_v5  ;;  %5592 = vmatmul.msk.bf16.gmra.mxu2 %vm302_vm2, %v5791_v14  ;;  %v3768_v5 = vrot.slane %v3766_v30, 5  ;;  %v6969_v14 = vrot.slane %v3772_v11, 5 }
 0x17d   : > { %v1974_v51 = vld [vmem:[#allocation2 + $0x90] sm:$0xff] }
 0x17e   : > { %v2006_v40 = vadd.f32 %v1974_v51, %v6894_v54  ;;  %1685 = vst.msk [vmem:[#allocation2 + $0x98] sm:$0xff] %vm447_vm9, %v1653_v47  ;;  %v2890_v54 = vsel %vm6122_vm8, %v5463_v43, %v2889_v25  ;;  %v4059_v25 = vunpack.c.l.b16 %v3761_v15  ;;  %v5426_v43 = vld [vmem:[%s6054_s19 + $0x44] sm:$0x1]  ;;  %v3769_v48 = vor.u32 %v3768_v5, %v3765_v26 }
 0x17f   : > { %5657 = vmatmul.msk.bf16.gmra.mxu3 %vm302_vm2, %v4086_v36  ;;  %5738 = vmatmul.msk.bf16.gmra.mxu0 %vm302_vm2, %v4580_v23  ;;  %v2691_v61 = vld [vmem:[#allocation2 + $0x88] sm:$0xff]  ;;  %v1572_v39 = vpop.f32.mrf.mxu2  ;;  %v2986_v4 = vunpack.c.l.b16 %v2890_v54  ;;  %v4553_v36 = vunpack.c.l.b16 %v4459_v57  ;;  %v5792_v23 = vld [vmem:[%s6054_s19 + $0x3c] sm:$0xff]  ;;  %v3779_v27 = vor.u32 %v3778_v33, %v6969_v14  ;;  %v2899_v46 = vrot.slane %v5426_v43, 5 }
 0x180   : > { %2038 = vst.msk [vmem:[#allocation2 + $0x90] sm:$0xff] %vm447_vm9, %v2006_v40  ;;  %v2723_v50 = vadd.f32 %v2691_v61, %v6853_v53  ;;  %v4087_v47 = vpack.c.b16 %v4059_v25, %v4058_v24  ;;  %v3784_v54 = vrot.slane %v3782_v3, 5  ;;  %v4465_v15 = vrot.slane %v5685_v62, 5  ;;  %v5623_v43 = vld [vmem:[%s6054_s19 + $0x5c] sm:$0x1] }
 0x181   : > { %v1077_v17 = vpop.f32.mrf.mxu1  ;;  %v3015_v21 = vpack.c.b16 %v2987_v22, %v2986_v4  ;;  %v2900_v2 = vsel %vm6122_vm8, %v2898_v55, %v2899_v46  ;;  %v3800_v25 = vshrl.u32 %v5622_v7, 16  ;;  %v1129_v46 = vld [vmem:[#allocation2 + $0xc0] sm:$0xff]  ;;  %v3806_v62 = vshll.u32 %v5623_v43, 16 }
 0x182   : > { %v6947_v63 = vpop.f32.mrf.mxu3  ;;  %2755 = vst.msk [vmem:[#allocation2 + $0x88] sm:$0xff] %vm447_vm9, %v2723_v50  ;;  %v1158_v53 = vadd.f32 %v1126_v6, %v1077_v17  ;;  %v3770_v50 = vrot.slane %v3769_v48, 4  ;;  %v3780_v17 = vrot.slane %v3779_v27, 4  ;;  %v5621_v6 = vld [vmem:[%s6054_s19 + $0x54] sm:$0xf] }
 0x183   : > { %v1622_v18 = vld [vmem:[#allocation2 + $0xa0] sm:$0xff]  ;;  %v3787_v22 = vshrl.u32 %v5621_v6, 16  ;;  %v3790_v24 = vshll.u32 %v5621_v6, 16 }
 0x184   : > { %v6959_v19 = vpop.f32.mrf.mxu0  ;;  %v1654_v59 = vadd.f32 %v1622_v18, %v1572_v39  ;;  %1190 = vst.msk [vmem:[#allocation2 + $0xa8] sm:$0xff] %vm447_vm9, %v1158_v53  ;;  %v5683_v39 = vld [vmem:[%s6054_s19 + $0x48] sm:$0xe]  ;;  %v4464_v53 = vrot.slane %v4462_v42, 4  ;;  %v3775_v4 = vsel %vm6115_vm7, %v3770_v50, %v6969_v14 }
 0x185   : > { %v1975_v56 = vld [vmem:[#allocation2 + $0x98] sm:$0xff]  ;;  %v5723_v11 = vrot.slane %v5683_v39, 9 }
 0x186   : > { %v2007_v29 = vadd.f32 %v1975_v56, %v6925_v20  ;;  %1686 = vst.msk [vmem:[#allocation2 + $0xa0] sm:$0xff] %vm447_vm9, %v1654_v59  ;;  %v5424_v20 = vld [vmem:[%s6054_s19 + $0x3c] sm:$0xe]  ;;  %v3785_v56 = vsel %vm6115_vm7, %v3780_v17, %v3784_v54  ;;  %v4466_v14 = vsel %vm6122_vm8, %v4464_v53, %v4465_v15 }
 0x187   : > { %v2692_v34 = vld [vmem:[#allocation2 + $0x90] sm:$0xff]  ;;  %v1574_v37 = vpop.f32.mrf.mxu2  ;;  %v5464_v40 = vrot.slane %v5424_v20, 9  ;;  %v1128_v59 = vld [vmem:[#allocation2 + $0xb8] sm:$0xff] }
 0x188   : > { %2039 = vst.msk [vmem:[#allocation2 + $0x98] sm:$0xff] %vm447_vm9, %v2007_v29  ;;  %v2724_v38 = vadd.f32 %v2692_v34, %v6879_v52  ;;  %v4581_v52 = vpack.c.b16 %v4553_v36, %v4552_v35  ;;  %v4463_v29 = vsel %vm6122_vm8, %v5723_v11, %v4462_v42  ;;  %v2989_v35 = vunpack.c.l.b16 %v2900_v2  ;;  %v7020_v34 = vld [vmem:[%s6054_s19 + $0x4c] sm:$0xf]  ;;  %v5687_v42 = vld [vmem:[%s6054_s19 + $0x58] sm:$0xf] }
 0x189   : > { %v1080_v9 = vpop.f32.mrf.mxu1  ;;  %v4060_v36 = vunpack.c.l.b16 %v3775_v4  ;;  %v2903_v49 = vrot.slane %v7020_v34, 5  ;;  %v5688_v11 = vld [vmem:[%s6054_s19 + $0x5c] sm:$0x1]  ;;  %v4469_v53 = vrot.slane %v5687_v42, 5  ;;  %v5625_v4 = vld [vmem:[%s6054_s19 + $0x64] sm:$0xf] }
 0x18a   : > { %v6978_v58 = vpop.f32.mrf.mxu3  ;;  %2756 = vst.msk [vmem:[#allocation2 + $0x90] sm:$0xff] %vm447_vm9, %v2724_v38  ;;  %v1159_v51 = vadd.f32 %v1127_v31, %v1080_v9  ;;  %v3789_v38 = vrot.slane %v3787_v22, 4  ;;  %v3802_v9 = vrot.slane %v3800_v25, 4  ;;  %v4554_v31 = vunpack.c.l.b16 %v4463_v29 }
 0x18b   : > { %v1623_v41 = vld [vmem:[#allocation2 + $0xa8] sm:$0xff]  ;;  %v2905_v17 = vrot.slane %v2903_v49, 4  ;;  %v3820_v34 = vshll.u32 %v5625_v4, 16 }
 0x18c   : > { %v6985_v60 = vpop.f32.mrf.mxu0  ;;  %v1655_v61 = vadd.f32 %v1623_v41, %v1574_v37  ;;  %1191 = vst.msk [vmem:[#allocation2 + $0xb0] sm:$0xff] %vm447_vm9, %v1159_v51  ;;  %5480 = vmatmul.msk.bf16.gmra.mxu1 %vm302_vm2, %v3015_v21  ;;  %5593 = vmatmul.msk.bf16.gmra.mxu2 %vm302_vm2, %v5792_v23  ;;  %v3792_v21 = vrot.slane %v3790_v24, 5  ;;  %v7022_v23 = vrot.slane %v3796_v44, 5 }
 0x18d   : > { %v1976_v0 = vld [vmem:[#allocation2 + $0xa0] sm:$0xff] }
 0x18e   : > { %v2008_v32 = vadd.f32 %v1976_v0, %v6947_v63  ;;  %1687 = vst.msk [vmem:[#allocation2 + $0xa8] sm:$0xff] %vm447_vm9, %v1655_v61  ;;  %v2897_v63 = vsel %vm6122_vm8, %v5464_v40, %v2896_v12  ;;  %v4061_v12 = vunpack.c.l.b16 %v3785_v56  ;;  %v5429_v40 = vld [vmem:[%s6054_s19 + $0x50] sm:$0x1]  ;;  %v3793_v39 = vor.u32 %v3792_v21, %v3789_v38 }
 0x18f   : > { %5658 = vmatmul.msk.bf16.gmra.mxu3 %vm302_vm2, %v4087_v47  ;;  %5739 = vmatmul.msk.bf16.gmra.mxu0 %vm302_vm2, %v4581_v52  ;;  %v2693_v10 = vld [vmem:[#allocation2 + $0x98] sm:$0xff]  ;;  %v1577_v30 = vpop.f32.mrf.mxu2  ;;  %v2988_v33 = vunpack.c.l.b16 %v2897_v63  ;;  %v4555_v47 = vunpack.c.l.b16 %v4466_v14  ;;  %v5793_v52 = vld [vmem:[%s6054_s19 + $0x48] sm:$0xff]  ;;  %v3803_v50 = vor.u32 %v3802_v9, %v7022_v23  ;;  %v2906_v6 = vrot.slane %v5429_v40, 5 }
 0x190   : > { %2040 = vst.msk [vmem:[#allocation2 + $0xa0] sm:$0xff] %vm447_vm9, %v2008_v32  ;;  %v2725_v16 = vadd.f32 %v2693_v10, %v6906_v1  ;;  %v4088_v61 = vpack.c.b16 %v4061_v12, %v4060_v36  ;;  %v3808_v63 = vrot.slane %v3806_v62, 5  ;;  %v4472_v56 = vrot.slane %v5688_v11, 5  ;;  %v5626_v40 = vld [vmem:[%s6054_s19 + $0x68] sm:$0x1] }
 0x191   : > { %v1082_v57 = vpop.f32.mrf.mxu1  ;;  %v3016_v27 = vpack.c.b16 %v2989_v35, %v2988_v33  ;;  %v2907_v29 = vsel %vm6122_vm8, %v2905_v17, %v2906_v6  ;;  %v3824_v12 = vshrl.u32 %v5625_v4, 16  ;;  %v1131_v6 = vld [vmem:[#allocation2 + $0xd0] sm:$0xff]  ;;  %v3830_v11 = vshll.u32 %v5626_v40, 16 }
 0x192   : > { %v7000_v18 = vpop.f32.mrf.mxu3  ;;  %2757 = vst.msk [vmem:[#allocation2 + $0x98] sm:$0xff] %vm447_vm9, %v2725_v16  ;;  %v1160_v1 = vadd.f32 %v1128_v59, %v1082_v57  ;;  %v3794_v16 = vrot.slane %v3793_v39, 4  ;;  %v3804_v57 = vrot.slane %v3803_v50, 4  ;;  %v5624_v59 = vld [vmem:[%s6054_s19 + $0x60] sm:$0xf] }
 0x193   : > { %v1624_v26 = vld [vmem:[#allocation2 + $0xb0] sm:$0xff]  ;;  %v3811_v35 = vshrl.u32 %v5624_v59, 16  ;;  %v3814_v36 = vshll.u32 %v5624_v59, 16 }
 0x194   : > { %v7012_v5 = vpop.f32.mrf.mxu0  ;;  %v1656_v28 = vadd.f32 %v1624_v26, %v1577_v30  ;;  %1192 = vst.msk [vmem:[#allocation2 + $0xb8] sm:$0xff] %vm447_vm9, %v1160_v1  ;;  %v5686_v30 = vld [vmem:[%s6054_s19 + $0x54] sm:$0xe]  ;;  %v4471_v1 = vrot.slane %v4469_v53, 4  ;;  %v3799_v33 = vsel %vm6115_vm7, %v3794_v16, %v7022_v23 }
 0x195   : > { %v1977_v37 = vld [vmem:[#allocation2 + $0xa8] sm:$0xff]  ;;  %v5724_v44 = vrot.slane %v5686_v30, 9 }
 0x196   : > { %v2009_v20 = vadd.f32 %v1977_v37, %v6978_v58  ;;  %1688 = vst.msk [vmem:[#allocation2 + $0xb0] sm:$0xff] %vm447_vm9, %v1656_v28  ;;  %v5427_v58 = vld [vmem:[%s6054_s19 + $0x48] sm:$0xe]  ;;  %v3809_v37 = vsel %vm6115_vm7, %v3804_v57, %v3808_v63  ;;  %v4473_v23 = vsel %vm6122_vm8, %v4471_v1, %v4472_v56 }
 0x197   : > { %v2694_v48 = vld [vmem:[#allocation2 + $0xa0] sm:$0xff]  ;;  %v1579_v3 = vpop.f32.mrf.mxu2  ;;  %v5465_v32 = vrot.slane %v5427_v58, 9  ;;  %v1130_v28 = vld [vmem:[#allocation2 + $0xc8] sm:$0xff] }
 0x198   : > { %2041 = vst.msk [vmem:[#allocation2 + $0xa8] sm:$0xff] %vm447_vm9, %v2009_v20  ;;  %v2726_v51 = vadd.f32 %v2694_v48, %v6932_v45  ;;  %v4582_v45 = vpack.c.b16 %v4555_v47, %v4554_v31  ;;  %v4470_v20 = vsel %vm6122_vm8, %v5724_v44, %v4469_v53  ;;  %v2991_v31 = vunpack.c.l.b16 %v2907_v29  ;;  %v7073_v48 = vld [vmem:[%s6054_s19 + $0x58] sm:$0xf]  ;;  %v5690_v53 = vld [vmem:[%s6054_s19 + $0x64] sm:$0xf] }
 0x199   : > { %v1085_v55 = vpop.f32.mrf.mxu1  ;;  %v4062_v47 = vunpack.c.l.b16 %v3799_v33  ;;  %v2910_v42 = vrot.slane %v7073_v48, 5  ;;  %v5691_v44 = vld [vmem:[%s6054_s19 + $0x68] sm:$0x1]  ;;  %v4476_v1 = vrot.slane %v5690_v53, 5  ;;  %v5628_v33 = vld [vmem:[%s6054_s19 + $0x70] sm:$0xf] }
 0x19a   : > { %v7031_v41 = vpop.f32.mrf.mxu3  ;;  %2758 = vst.msk [vmem:[#allocation2 + $0xa0] sm:$0xff] %vm447_vm9, %v2726_v51  ;;  %v1161_v0 = vadd.f32 %v1129_v46, %v1085_v55  ;;  %v3813_v51 = vrot.slane %v3811_v35, 4  ;;  %v3826_v55 = vrot.slane %v3824_v12, 4  ;;  %v4556_v46 = vunpack.c.l.b16 %v4470_v20 }
 0x19b   : > { %v1625_v54 = vld [vmem:[#allocation2 + $0xb8] sm:$0xff]  ;;  %v2912_v57 = vrot.slane %v2910_v42, 4  ;;  %v3844_v48 = vshll.u32 %v5628_v33, 16 }
 0x19c   : > { %v7038_v7 = vpop.f32.mrf.mxu0  ;;  %v1657_v10 = vadd.f32 %v1625_v54, %v1579_v3  ;;  %1193 = vst.msk [vmem:[#allocation2 + $0xc0] sm:$0xff] %vm447_vm9, %v1161_v0  ;;  %5481 = vmatmul.msk.bf16.gmra.mxu1 %vm302_vm2, %v3016_v27  ;;  %5594 = vmatmul.msk.bf16.gmra.mxu2 %vm302_vm2, %v5793_v52  ;;  %v3816_v27 = vrot.slane %v3814_v36, 5  ;;  %v7075_v52 = vrot.slane %v3820_v34, 5 }
 0x19d   : > { %v1978_v15 = vld [vmem:[#allocation2 + $0xb0] sm:$0xff] }
 0x19e   : > { %v2010_v2 = vadd.f32 %v1978_v15, %v7000_v18  ;;  %1689 = vst.msk [vmem:[#allocation2 + $0xb8] sm:$0xff] %vm447_vm9, %v1657_v10  ;;  %v2904_v18 = vsel %vm6122_vm8, %v5465_v32, %v2903_v49  ;;  %v4063_v49 = vunpack.c.l.b16 %v3809_v37  ;;  %v5432_v32 = vld [vmem:[%s6054_s19 + $0x5c] sm:$0x1]  ;;  %v3817_v30 = vor.u32 %v3816_v27, %v3813_v51 }
 0x19f   : > { %5659 = vmatmul.msk.bf16.gmra.mxu3 %vm302_vm2, %v4088_v61  ;;  %5740 = vmatmul.msk.bf16.gmra.mxu0 %vm302_vm2, %v4582_v45  ;;  %v2695_v22 = vld [vmem:[#allocation2 + $0xa8] sm:$0xff]  ;;  %v1582_v24 = vpop.f32.mrf.mxu2  ;;  %v2990_v9 = vunpack.c.l.b16 %v2904_v18  ;;  %v4557_v61 = vunpack.c.l.b16 %v4473_v23  ;;  %v5794_v45 = vld [vmem:[%s6054_s19 + $0x54] sm:$0xff]  ;;  %v3827_v16 = vor.u32 %v3826_v55, %v7075_v52  ;;  %v2913_v59 = vrot.slane %v5432_v32, 5 }
 0x1a0   : > { %2042 = vst.msk [vmem:[#allocation2 + $0xb0] sm:$0xff] %vm447_vm9, %v2010_v2  ;;  %v2727_v25 = vadd.f32 %v2695_v22, %v6959_v19  ;;  %v4089_v10 = vpack.c.b16 %v4063_v49, %v4062_v47  ;;  %v3832_v18 = vrot.slane %v3830_v11, 5  ;;  %v4479_v37 = vrot.slane %v5691_v44, 5  ;;  %v5629_v32 = vld [vmem:[%s6054_s19 + $0x74] sm:$0x1] }
 0x1a1   : > { %v1087_v14 = vpop.f32.mrf.mxu1  ;;  %v3017_v50 = vpack.c.b16 %v2991_v31, %v2990_v9  ;;  %v2914_v20 = vsel %vm6122_vm8, %v2912_v57, %v2913_v59  ;;  %v3848_v49 = vshrl.u32 %v5628_v33, 16  ;;  %v1133_v59 = vld [vmem:[#allocation2 + $0xe0] sm:$0xff]  ;;  %v3854_v44 = vshll.u32 %v5629_v32, 16 }
 0x1a2   : > { %v7053_v26 = vpop.f32.mrf.mxu3  ;;  %2759 = vst.msk [vmem:[#allocation2 + $0xa8] sm:$0xff] %vm447_vm9, %v2727_v25  ;;  %v1162_v19 = vadd.f32 %v1130_v28, %v1087_v14  ;;  %v3818_v25 = vrot.slane %v3817_v30, 4  ;;  %v3828_v14 = vrot.slane %v3827_v16, 4  ;;  %v5627_v28 = vld [vmem:[%s6054_s19 + $0x6c] sm:$0xf] }
 0x1a3   : > { %v1626_v38 = vld [vmem:[#allocation2 + $0xc0] sm:$0xff]  ;;  %v3835_v31 = vshrl.u32 %v5627_v28, 16  ;;  %v3838_v47 = vshll.u32 %v5627_v28, 16 }
 0x1a4   : > { %v7065_v21 = vpop.f32.mrf.mxu0  ;;  %v1658_v43 = vadd.f32 %v1626_v38, %v1582_v24  ;;  %1194 = vst.msk [vmem:[#allocation2 + $0xc8] sm:$0xff] %vm447_vm9, %v1162_v19  ;;  %v5689_v24 = vld [vmem:[%s6054_s19 + $0x60] sm:$0xe]  ;;  %v4478_v19 = vrot.slane %v4476_v1, 4  ;;  %v3823_v9 = vsel %vm6115_vm7, %v3818_v25, %v7075_v52 }
 0x1a5   : > { %v1979_v3 = vld [vmem:[#allocation2 + $0xb8] sm:$0xff]  ;;  %v5725_v34 = vrot.slane %v5689_v24, 9 }
 0x1a6   : > { %v2011_v58 = vadd.f32 %v1979_v3, %v7031_v41  ;;  %1690 = vst.msk [vmem:[#allocation2 + $0xc0] sm:$0xff] %vm447_vm9, %v1658_v43  ;;  %v5430_v41 = vld [vmem:[%s6054_s19 + $0x54] sm:$0xe]  ;;  %v1132_v43 = vld [vmem:[#allocation2 + $0xd8] sm:$0xff]  ;;  %v3833_v3 = vsel %vm6115_vm7, %v3828_v14, %v3832_v18  ;;  %v4480_v52 = vsel %vm6122_vm8, %v4478_v19, %v4479_v37 }
 0x1a7   : > { %v2696_v39 = vld [vmem:[#allocation2 + $0xb0] sm:$0xff]  ;;  %v1584_v62 = vpop.f32.mrf.mxu2  ;;  %v5466_v2 = vrot.slane %v5430_v41, 9 }
 0x1a8   : > { %2043 = vst.msk [vmem:[#allocation2 + $0xb8] sm:$0xff] %vm447_vm9, %v2011_v58  ;;  %v2728_v0 = vadd.f32 %v2696_v39, %v6985_v60  ;;  %v4583_v60 = vpack.c.b16 %v4557_v61, %v4556_v46  ;;  %v4477_v58 = vsel %vm6122_vm8, %v5725_v34, %v4476_v1  ;;  %v2993_v46 = vunpack.c.l.b16 %v2914_v20  ;;  %v7126_v39 = vld [vmem:[%s6054_s19 + $0x64] sm:$0xf]  ;;  %v5693_v1 = vld [vmem:[%s6054_s19 + $0x70] sm:$0xf] }
 0x1a9   : > { %v1090_v17 = vpop.f32.mrf.mxu1  ;;  %v4064_v61 = vunpack.c.l.b16 %v3823_v9  ;;  %v2917_v53 = vrot.slane %v7126_v39, 5  ;;  %v5694_v34 = vld [vmem:[%s6054_s19 + $0x74] sm:$0x1]  ;;  %v4483_v19 = vrot.slane %v5693_v1, 5  ;;  %v5631_v9 = vld [vmem:[%s6054_s19 + $0x7c] sm:$0xf] }
 0x1aa   : > { %v7084_v54 = vpop.f32.mrf.mxu3  ;;  %2760 = vst.msk [vmem:[#allocation2 + $0xb0] sm:$0xff] %vm447_vm9, %v2728_v0  ;;  %v1163_v15 = vadd.f32 %v1131_v6, %v1090_v17  ;;  %v3837_v0 = vrot.slane %v3835_v31, 4  ;;  %v3850_v17 = vrot.slane %v3848_v49, 4  ;;  %v4558_v6 = vunpack.c.l.b16 %v4477_v58 }
 0x1ab   : > { %v1627_v63 = vld [vmem:[#allocation2 + $0xc8] sm:$0xff]  ;;  %v2919_v14 = vrot.slane %v2917_v53, 4  ;;  %v3868_v39 = vshll.u32 %v5631_v9, 16 }
 0x1ac   : > { %v7091_v4 = vpop.f32.mrf.mxu0  ;;  %v1659_v22 = vadd.f32 %v1627_v63, %v1584_v62  ;;  %1195 = vst.msk [vmem:[#allocation2 + $0xd0] sm:$0xff] %vm447_vm9, %v1163_v15  ;;  %5482 = vmatmul.msk.bf16.gmra.mxu1 %vm302_vm2, %v3017_v50  ;;  %5595 = vmatmul.msk.bf16.gmra.mxu2 %vm302_vm2, %v5794_v45  ;;  %v3840_v50 = vrot.slane %v3838_v47, 5  ;;  %v7128_v45 = vrot.slane %v3844_v48, 5 }
 0x1ad   : > { %v1980_v56 = vld [vmem:[#allocation2 + $0xc0] sm:$0xff] }
 0x1ae   : > { %v2012_v29 = vadd.f32 %v1980_v56, %v7053_v26  ;;  %1691 = vst.msk [vmem:[#allocation2 + $0xc8] sm:$0xff] %vm447_vm9, %v1659_v22  ;;  %v2911_v26 = vsel %vm6122_vm8, %v5466_v2, %v2910_v42  ;;  %v4065_v42 = vunpack.c.l.b16 %v3833_v3  ;;  %v5435_v2 = vld [vmem:[%s6054_s19 + $0x68] sm:$0x1]  ;;  %v3841_v24 = vor.u32 %v3840_v50, %v3837_v0 }
 0x1af   : > { %5660 = vmatmul.msk.bf16.gmra.mxu3 %vm302_vm2, %v4089_v10  ;;  %5741 = vmatmul.msk.bf16.gmra.mxu0 %vm302_vm2, %v4583_v60  ;;  %v2697_v35 = vld [vmem:[#allocation2 + $0xb8] sm:$0xff]  ;;  %v1587_v36 = vpop.f32.mrf.mxu2  ;;  %v2992_v55 = vunpack.c.l.b16 %v2911_v26  ;;  %v4559_v10 = vunpack.c.l.b16 %v4480_v52  ;;  %v5795_v60 = vld [vmem:[%s6054_s19 + $0x60] sm:$0xff]  ;;  %v3851_v25 = vor.u32 %v3850_v17, %v7128_v45  ;;  %v2920_v28 = vrot.slane %v5435_v2, 5 }
 0x1b0   : > { %2044 = vst.msk [vmem:[#allocation2 + $0xc0] sm:$0xff] %vm447_vm9, %v2012_v29  ;;  %v2729_v12 = vadd.f32 %v2697_v35, %v7012_v5  ;;  %v4090_v22 = vpack.c.b16 %v4065_v42, %v4064_v61  ;;  %v3856_v26 = vrot.slane %v3854_v44, 5  ;;  %v4486_v3 = vrot.slane %v5694_v34, 5  ;;  %v5632_v2 = vld [vmem:[%s6054_s19 + $0x80] sm:$0x1] }
 0x1b1   : > { %v1092_v23 = vpop.f32.mrf.mxu1  ;;  %v3018_v16 = vpack.c.b16 %v2993_v46, %v2992_v55  ;;  %v2921_v58 = vsel %vm6122_vm8, %v2919_v14, %v2920_v28  ;;  %v3872_v42 = vshrl.u32 %v5631_v9, 16  ;;  %v1135_v28 = vld [vmem:[#allocation2 + $0xf0] sm:$0xff]  ;;  %v3878_v34 = vshll.u32 %v5632_v2, 16 }
 0x1b2   : > { %v7106_v38 = vpop.f32.mrf.mxu3  ;;  %2761 = vst.msk [vmem:[#allocation2 + $0xb8] sm:$0xff] %vm447_vm9, %v2729_v12  ;;  %v1164_v5 = vadd.f32 %v1132_v43, %v1092_v23  ;;  %v3842_v12 = vrot.slane %v3841_v24, 4  ;;  %v3852_v23 = vrot.slane %v3851_v25, 4  ;;  %v5630_v43 = vld [vmem:[%s6054_s19 + $0x78] sm:$0xf] }
 0x1b3   : > { %v1628_v51 = vld [vmem:[#allocation2 + $0xd0] sm:$0xff]  ;;  %v3859_v46 = vshrl.u32 %v5630_v43, 16  ;;  %v3862_v61 = vshll.u32 %v5630_v43, 16 }
 0x1b4   : > { %v7118_v27 = vpop.f32.mrf.mxu0  ;;  %v1660_v40 = vadd.f32 %v1628_v51, %v1587_v36  ;;  %1196 = vst.msk [vmem:[#allocation2 + $0xd8] sm:$0xff] %vm447_vm9, %v1164_v5  ;;  %v5692_v36 = vld [vmem:[%s6054_s19 + $0x6c] sm:$0xe]  ;;  %v4485_v5 = vrot.slane %v4483_v19, 4  ;;  %v3847_v55 = vsel %vm6115_vm7, %v3842_v12, %v7128_v45 }
 0x1b5   : > { %v1981_v62 = vld [vmem:[#allocation2 + $0xc8] sm:$0xff]  ;;  %v5726_v48 = vrot.slane %v5692_v36, 9 }
 0x1b6   : > { %v2013_v41 = vadd.f32 %v1981_v62, %v7084_v54  ;;  %1692 = vst.msk [vmem:[#allocation2 + $0xd0] sm:$0xff] %vm447_vm9, %v1660_v40  ;;  %v5433_v54 = vld [vmem:[%s6054_s19 + $0x60] sm:$0xe]  ;;  %v1134_v40 = vld [vmem:[#allocation2 + $0xe8] sm:$0xff]  ;;  %v3857_v62 = vsel %vm6115_vm7, %v3852_v23, %v3856_v26  ;;  %v4487_v45 = vsel %vm6122_vm8, %v4485_v5, %v4486_v3 }
 0x1b7   : > { %v2698_v30 = vld [vmem:[#allocation2 + $0xc0] sm:$0xff]  ;;  %v1589_v11 = vpop.f32.mrf.mxu2  ;;  %v5467_v29 = vrot.slane %v5433_v54, 9 }
 0x1b8   : > { %2045 = vst.msk [vmem:[#allocation2 + $0xc8] sm:$0xff] %vm447_vm9, %v2013_v41  ;;  %v2730_v15 = vadd.f32 %v2698_v30, %v7038_v7  ;;  %v4584_v7 = vpack.c.b16 %v4559_v10, %v4558_v6  ;;  %v4484_v41 = vsel %vm6122_vm8, %v5726_v48, %v4483_v19  ;;  %v2995_v6 = vunpack.c.l.b16 %v2921_v58  ;;  %v7179_v30 = vld [vmem:[%s6054_s19 + $0x70] sm:$0xf]  ;;  %v5696_v19 = vld [vmem:[%s6054_s19 + $0x7c] sm:$0xf] }
 0x1b9   : > { %v1095_v57 = vpop.f32.mrf.mxu1  ;;  %v4066_v10 = vunpack.c.l.b16 %v3847_v55  ;;  %v2924_v1 = vrot.slane %v7179_v30, 5  ;;  %v5697_v48 = vld [vmem:[%s6054_s19 + $0x80] sm:$0x1]  ;;  %v4490_v5 = vrot.slane %v5696_v19, 5  ;;  %v5634_v55 = vld [vmem:[%s6054_s19 + $0x88] sm:$0xf] }
 0x1ba   : > { %v7137_v63 = vpop.f32.mrf.mxu3  ;;  %2762 = vst.msk [vmem:[#allocation2 + $0xc0] sm:$0xff] %vm447_vm9, %v2730_v15  ;;  %v1165_v56 = vadd.f32 %v1133_v59, %v1095_v57  ;;  %v3861_v15 = vrot.slane %v3859_v46, 4  ;;  %v3874_v57 = vrot.slane %v3872_v42, 4  ;;  %v4560_v59 = vunpack.c.l.b16 %v4484_v41 }
 0x1bb   : > { %v1629_v18 = vld [vmem:[#allocation2 + $0xd8] sm:$0xff]  ;;  %v2926_v23 = vrot.slane %v2924_v1, 4  ;;  %v3892_v30 = vshll.u32 %v5634_v55, 16 }
 0x1bc   : > { %v7144_v33 = vpop.f32.mrf.mxu0  ;;  %v1661_v35 = vadd.f32 %v1629_v18, %v1589_v11  ;;  %1197 = vst.msk [vmem:[#allocation2 + $0xe0] sm:$0xff] %vm447_vm9, %v1165_v56  ;;  %5483 = vmatmul.msk.bf16.gmra.mxu1 %vm302_vm2, %v3018_v16  ;;  %5596 = vmatmul.msk.bf16.gmra.mxu2 %vm302_vm2, %v5795_v60  ;;  %v3864_v16 = vrot.slane %v3862_v61, 5  ;;  %v7181_v60 = vrot.slane %v3868_v39, 5 }
 0x1bd   : > { %v1982_v37 = vld [vmem:[#allocation2 + $0xd0] sm:$0xff] }
 0x1be   : > { %v2014_v20 = vadd.f32 %v1982_v37, %v7106_v38  ;;  %1693 = vst.msk [vmem:[#allocation2 + $0xd8] sm:$0xff] %vm447_vm9, %v1661_v35  ;;  %v2918_v38 = vsel %vm6122_vm8, %v5467_v29, %v2917_v53  ;;  %v4067_v53 = vunpack.c.l.b16 %v3857_v62  ;;  %v5438_v29 = vld [vmem:[%s6054_s19 + $0x74] sm:$0x1]  ;;  %v3865_v36 = vor.u32 %v3864_v16, %v3861_v15 }
 0x1bf   : > { %5661 = vmatmul.msk.bf16.gmra.mxu3 %vm302_vm2, %v4090_v22  ;;  %5742 = vmatmul.msk.bf16.gmra.mxu0 %vm302_vm2, %v4584_v7  ;;  %v2699_v31 = vld [vmem:[#allocation2 + $0xc8] sm:$0xff]  ;;  %v1592_v47 = vpop.f32.mrf.mxu2  ;;  %v2994_v17 = vunpack.c.l.b16 %v2918_v38  ;;  %v4561_v22 = vunpack.c.l.b16 %v4487_v45  ;;  %v3875_v12 = vor.u32 %v3874_v57, %v7181_v60  ;;  %v2927_v43 = vrot.slane %v5438_v29, 5  ;;  %v5439_v29 = vld [vmem:[%s6054_s19 + $0x78] sm:$0xe] }
 0x1c0   : > { %2046 = vst.msk [vmem:[#allocation2 + $0xd0] sm:$0xff] %vm447_vm9, %v2014_v20  ;;  %v2731_v49 = vadd.f32 %v2699_v31, %v7065_v21  ;;  %v5796_v7 = vld [vmem:[%s6054_s19 + $0x6c] sm:$0xff]  ;;  %v4091_v35 = vpack.c.b16 %v4067_v53, %v4066_v10  ;;  %v3880_v38 = vrot.slane %v3878_v34, 5  ;;  %v4493_v62 = vrot.slane %v5697_v48, 5 }
 0x1c1   : > { %v1097_v52 = vpop.f32.mrf.mxu1  ;;  %v3019_v25 = vpack.c.b16 %v2995_v6, %v2994_v17  ;;  %v2928_v41 = vsel %vm6122_vm8, %v2926_v23, %v2927_v43  ;;  %v3896_v53 = vshrl.u32 %v5634_v55, 16  ;;  %v5469_v43 = vrot.slane %v5439_v29, 9  ;;  %v7277_v29 = vld [vmem:[%s6054_s19 + $0x88] sm:$0xf] }
 0x1c2   : > { %v7159_v51 = vpop.f32.mrf.mxu3  ;;  %2763 = vst.msk [vmem:[#allocation2 + $0xc8] sm:$0xff] %vm447_vm9, %v2731_v49  ;;  %v1166_v21 = vadd.f32 %v1134_v40, %v1097_v52  ;;  %v3866_v49 = vrot.slane %v3865_v36, 4  ;;  %v3876_v52 = vrot.slane %v3875_v12, 4  ;;  %v5633_v40 = vld [vmem:[%s6054_s19 + $0x84] sm:$0xf] }
 0x1c3   : > { %v1630_v0 = vld [vmem:[#allocation2 + $0xe0] sm:$0xff]  ;;  %v3883_v6 = vshrl.u32 %v5633_v40, 16  ;;  %v3886_v10 = vshll.u32 %v5633_v40, 16  ;;  %v5636_v40 = vld [vmem:[%s6054_s19 + $0x90] sm:$0xf] }
 0x1c4   : > { %v7171_v50 = vpop.f32.mrf.mxu0  ;;  %v1662_v32 = vadd.f32 %v1630_v0, %v1592_v47  ;;  %1198 = vst.msk [vmem:[#allocation2 + $0xe8] sm:$0xff] %vm447_vm9, %v1166_v21  ;;  %v5695_v47 = vld [vmem:[%s6054_s19 + $0x78] sm:$0xe]  ;;  %v4492_v21 = vrot.slane %v4490_v5, 4  ;;  %v3871_v17 = vsel %vm6115_vm7, %v3866_v49, %v7181_v60 }
 0x1c5   : > { %v1983_v11 = vld [vmem:[#allocation2 + $0xd8] sm:$0xff]  ;;  %v5727_v39 = vrot.slane %v5695_v47, 9 }
 0x1c6   : > { %v2015_v54 = vadd.f32 %v1983_v11, %v7137_v63  ;;  %1694 = vst.msk [vmem:[#allocation2 + $0xe0] sm:$0xff] %vm447_vm9, %v1662_v32  ;;  %v5436_v63 = vld [vmem:[%s6054_s19 + $0x6c] sm:$0xe]  ;;  %v1136_v32 = vld [vmem:[#allocation2 + $0xf8] sm:$0xff]  ;;  %v3881_v11 = vsel %vm6115_vm7, %v3876_v52, %v3880_v38  ;;  %v4494_v60 = vsel %vm6122_vm8, %v4492_v21, %v4493_v62  ;;  %v5699_v38 = vld [vmem:[%s6054_s19 + $0x88] sm:$0xf] }
 0x1c7   : > { %v2700_v24 = vld [vmem:[#allocation2 + $0xd0] sm:$0xff]  ;;  %v1594_v44 = vpop.f32.mrf.mxu2  ;;  %v5468_v20 = vrot.slane %v5436_v63, 9  ;;  %v4563_v36 = vunpack.c.l.b16 %v4494_v60  ;;  %v4497_v55 = vrot.slane %v5699_v38, 5 }
 0x1c8   : > { %2047 = vst.msk [vmem:[#allocation2 + $0xd8] sm:$0xff] %vm447_vm9, %v2015_v54  ;;  %v2732_v56 = vadd.f32 %v2700_v24, %v7091_v4  ;;  %v4585_v4 = vpack.c.b16 %v4561_v22, %v4560_v59  ;;  %v4491_v54 = vsel %vm6122_vm8, %v5727_v39, %v4490_v5  ;;  %v2997_v59 = vunpack.c.l.b16 %v2928_v41  ;;  %v5441_v5 = vld [vmem:[%s6054_s19 + $0x80] sm:$0x1]  ;;  %v5700_v39 = vld [vmem:[%s6054_s19 + $0x8c] sm:$0x1] }
 0x1c9   : > { %v1100_v14 = vpop.f32.mrf.mxu1  ;;  %v4068_v22 = vunpack.c.l.b16 %v3871_v17 }
 0x1ca   : > { %v7190_v18 = vpop.f32.mrf.mxu3  ;;  %2764 = vst.msk [vmem:[#allocation2 + $0xd0] sm:$0xff] %vm447_vm9, %v2732_v56  ;;  %v1167_v37 = vadd.f32 %v1135_v28, %v1100_v14  ;;  %v3885_v56 = vrot.slane %v3883_v6, 4  ;;  %v5635_v14 = vld [vmem:[%s6054_s19 + $0x8c] sm:$0x1]  ;;  %v3898_v28 = vrot.slane %v3896_v53, 4 }
 0x1cb   : > { %v1631_v26 = vld [vmem:[#allocation2 + $0xe8] sm:$0xff]  ;;  %v3902_v47 = vshll.u32 %v5635_v14, 16 }
 0x1cc   : > { %v7197_v9 = vpop.f32.mrf.mxu0  ;;  %v1663_v31 = vadd.f32 %v1631_v26, %v1594_v44  ;;  %1199 = vst.msk [vmem:[#allocation2 + $0xf0] sm:$0xff] %vm447_vm9, %v1167_v37  ;;  %5484 = vmatmul.msk.bf16.gmra.mxu1 %vm302_vm2, %v3019_v25  ;;  %5597 = vmatmul.msk.bf16.gmra.mxu2 %vm302_vm2, %v5796_v7  ;;  %v4069_v44 = vunpack.c.l.b16 %v3881_v11  ;;  %v3888_v25 = vrot.slane %v3886_v10, 5  ;;  %v7232_v7 = vrot.slane %v3892_v30, 5 }
 0x1cd   : > { %v1984_v3 = vld [vmem:[#allocation2 + $0xe0] sm:$0xff]  ;;  %v3904_v41 = vrot.slane %v3902_v47, 5  ;;  %v3907_v10 = vshrl.u32 %v5636_v40, 16  ;;  %v3910_v11 = vshll.u32 %v5636_v40, 16 }
 0x1ce   : > { %v2016_v58 = vadd.f32 %v1984_v3, %v7159_v51  ;;  %1695 = vst.msk [vmem:[#allocation2 + $0xe8] sm:$0xff] %vm447_vm9, %v1663_v31  ;;  %v2925_v51 = vsel %vm6122_vm8, %v5468_v20, %v2924_v1  ;;  %v5440_v1 = vld [vmem:[%s6054_s19 + $0x7c] sm:$0xf]  ;;  %v3168_v20 = vld [vmem:[#allocation2] sm:$0xff]  ;;  %v4092_v23 = vpack.c.b16 %v4069_v44, %v4068_v22  ;;  %v3889_v3 = vor.u32 %v3888_v25, %v3885_v56  ;;  %v3169_v22 = vld [vmem:[#allocation2 + $0x8] sm:$0xff] }
 0x1cf   : > { %5662 = vmatmul.msk.bf16.gmra.mxu3 %vm302_vm2, %v4091_v35  ;;  %5743 = vmatmul.msk.bf16.gmra.mxu0 %vm302_vm2, %v4585_v4  ;;  %v2701_v46 = vld [vmem:[#allocation2 + $0xd8] sm:$0xff]  ;;  %v1597_v61 = vpop.f32.mrf.mxu2  ;;  %v2996_v57 = vunpack.c.l.b16 %v2925_v51  ;;  %v4562_v35 = vunpack.c.l.b16 %v4491_v54  ;;  %v2931_v31 = vrot.slane %v5440_v1, 5  ;;  %v2934_v51 = vrot.slane %v5441_v5, 5  ;;  %v5798_v40 = vld [vmem:[%s6054_s19 + $0x84] sm:$0xff] }
 0x1d0   : > { %2048 = vst.msk [vmem:[#allocation2 + $0xe0] sm:$0xff] %vm447_vm9, %v2016_v58  ;;  %v2733_v42 = vadd.f32 %v2701_v46, %v7118_v27  ;;  %v5797_v4 = vld [vmem:[%s6054_s19 + $0x78] sm:$0xff]  ;;  %v3890_v17 = vrot.slane %v3889_v3, 4  ;;  %v4500_v54 = vrot.slane %v5700_v39, 5  ;;  %v3909_v14 = vrot.slane %v3907_v10, 4  ;;  %v3170_v39 = vld [vmem:[#allocation2 + $0x10] sm:$0xff] }
 0x1d1   : > { %v1102_v45 = vpop.f32.mrf.mxu1  ;;  %v3020_v12 = vpack.c.b16 %v2997_v59, %v2996_v57  ;;  %v4586_v49 = vpack.c.b16 %v4563_v36, %v4562_v35  ;;  %v2932_v62 = vsel %vm6122_vm8, %v5469_v43, %v2931_v31  ;;  %v2938_v43 = vrot.slane %v7277_v29, 5  ;;  %v5442_v3 = vld [vmem:[%s6054_s19 + $0x84] sm:$0xe] }
 0x1d2   : > { %v7212_v0 = vpop.f32.mrf.mxu3  ;;  %2765 = vst.msk [vmem:[#allocation2 + $0xd8] sm:$0xff] %vm447_vm9, %v2733_v42  ;;  %v1168_v27 = vadd.f32 %v1136_v32, %v1102_v45  ;;  %v2933_v42 = vrot.slane %v2931_v31, 4  ;;  %v5637_v45 = vld [vmem:[%s6054_s19 + $0x94] sm:$0xf]  ;;  %v2998_v1 = vunpack.c.l.b16 %v2932_v62  ;;  %v3895_v56 = vsel %vm6115_vm7, %v3890_v17, %v7232_v7 }
 0x1d3   : > { %v1632_v15 = vld [vmem:[#allocation2 + $0xf0] sm:$0xff]  ;;  %v3920_v57 = vshrl.u32 %v5637_v45, 16 }
 0x1d4   : > { %v7224_v16 = vpop.f32.mrf.mxu0  ;;  %v1664_v2 = vadd.f32 %v1632_v15, %v1597_v61  ;;  %1200 = vst.msk [vmem:[#allocation2 + $0xf8] sm:$0xff] %vm447_vm9, %v1168_v27  ;;  %v5698_v61 = vld [vmem:[%s6054_s19 + $0x84] sm:$0xe]  ;;  %v4499_v15 = vrot.slane %v4497_v55, 4  ;;  %v5702_v62 = vld [vmem:[%s6054_s19 + $0x94] sm:$0xf] }
 0x1d5   : > { %v1985_v24 = vld [vmem:[#allocation2 + $0xe8] sm:$0xff]  ;;  %v5728_v53 = vrot.slane %v5698_v61, 9 }
 0x1d6   : > { %v2017_v63 = vadd.f32 %v1985_v24, %v7190_v18  ;;  %1696 = vst.msk [vmem:[#allocation2 + $0xf0] sm:$0xff] %vm447_vm9, %v1664_v2  ;;  %v2935_v24 = vsel %vm6122_vm8, %v2933_v42, %v2934_v51  ;;  %v4501_v36 = vsel %vm6122_vm8, %v4499_v15, %v4500_v54  ;;  %v5470_v51 = vrot.slane %v5442_v3, 9  ;;  %v5703_v15 = vld [vmem:[%s6054_s19 + $0x98] sm:$0x1] }
 0x1d7   : > { %v2702_v34 = vld [vmem:[#allocation2 + $0xe0] sm:$0xff]  ;;  %v1599_v19 = vpop.f32.mrf.mxu2  ;;  %v4498_v35 = vsel %vm6122_vm8, %v5728_v53, %v4497_v55  ;;  %v4565_v47 = vunpack.c.l.b16 %v4501_v36  ;;  %v5701_v53 = vld [vmem:[%s6054_s19 + $0x90] sm:$0xe] }
 0x1d8   : > { %2049 = vst.msk [vmem:[#allocation2 + $0xe8] sm:$0xff] %vm447_vm9, %v2017_v63  ;;  %v2734_v37 = vadd.f32 %v2702_v34, %v7144_v33  ;;  %v3899_v33 = vor.u32 %v3898_v28, %v7232_v7  ;;  %v3912_v28 = vrot.slane %v3910_v11, 5  ;;  %v2999_v7 = vunpack.c.l.b16 %v2935_v24 }
 0x1d9   : > { %v3088_v18 = vpop.f32.mrf.mxu1  ;;  %v4564_v31 = vunpack.c.l.b16 %v4498_v35  ;;  %v2939_v24 = vsel %vm6122_vm8, %v5470_v51, %v2938_v43  ;;  %v3171_v35 = vld [vmem:[#allocation2 + $0x18] sm:$0xff]  ;;  %v5799_v51 = vld [vmem:[%s6054_s19 + $0x90] sm:$0xff] }
 0x1da   : > { %v7241_v26 = vpop.f32.mrf.mxu3  ;;  %2766 = vst.msk [vmem:[#allocation2 + $0xe0] sm:$0xff] %vm447_vm9, %v2734_v37  ;;  %v3200_v48 = vadd.f32 %v3168_v20, %v3088_v18  ;;  %v3900_v6 = vrot.slane %v3899_v33, 4  ;;  %v4070_v18 = vunpack.c.l.b16 %v3895_v56  ;;  %v3913_v33 = vor.u32 %v3912_v28, %v3909_v14 }
 0x1db   : > { %v1633_v58 = vld [vmem:[#allocation2 + $0xf8] sm:$0xff]  ;;  %v4507_v56 = vrot.slane %v5703_v15, 5 }
 0x1dc   : > { %v7247_v52 = vpop.f32.mrf.mxu0  ;;  %v1665_v46 = vadd.f32 %v1633_v58, %v1599_v19  ;;  %3232 = vst.msk [vmem:[#allocation2] sm:$0xff] %vm447_vm9, %v3200_v48  ;;  %5485 = vmatmul.msk.bf16.gmra.mxu1 %vm302_vm2, %v3020_v12  ;;  %5598 = vmatmul.msk.bf16.gmra.mxu2 %vm302_vm2, %v5797_v4  ;;  %v5638_v19 = vld [vmem:[%s6054_s19 + $0x98] sm:$0x1]  ;;  %v3922_v12 = vrot.slane %v3920_v57, 4  ;;  %v3021_v58 = vpack.c.b16 %v2999_v7, %v2998_v1  ;;  %v5640_v57 = vld [vmem:[%s6054_s19 + $0xa0] sm:$0xf] }
 0x1dd   : > { %v1986_v21 = vld [vmem:[#allocation2 + $0xf0] sm:$0xff]  ;;  %v3940_v7 = vshll.u32 %v5640_v57, 16 }
 0x1de   : > { %v2018_v32 = vadd.f32 %v1986_v21, %v7212_v0  ;;  %1697 = vst.msk [vmem:[#allocation2 + $0xf8] sm:$0xff] %vm447_vm9, %v1665_v46  ;;  %v3916_v0 = vshll.u32 %v5637_v45, 16  ;;  %v4587_v45 = vpack.c.b16 %v4565_v47, %v4564_v31 }
 0x1df   : > { %5663 = vmatmul.msk.bf16.gmra.mxu3 %vm302_vm2, %v4092_v23  ;;  %5744 = vmatmul.msk.bf16.gmra.mxu0 %vm302_vm2, %v4586_v49  ;;  %v2703_v30 = vld [vmem:[#allocation2 + $0xe8] sm:$0xff]  ;;  %v3442_v27 = vpop.f32.mrf.mxu2  ;;  %v3926_v49 = vshll.u32 %v5638_v19, 16  ;;  %v3944_v19 = vshrl.u32 %v5640_v57, 16 }
 0x1e0   : > { %2050 = vst.msk [vmem:[#allocation2 + $0xf0] sm:$0xff] %vm447_vm9, %v2018_v32  ;;  %v2735_v60 = vadd.f32 %v2703_v30, %v7171_v50  ;;  %v3905_v50 = vsel %vm6115_vm7, %v3900_v6, %v3904_v41  ;;  %v7285_v37 = vrot.slane %v3916_v0, 5  ;;  %v2940_v41 = vrot.slane %v2938_v43, 4  ;;  %v5639_v0 = vld [vmem:[%s6054_s19 + $0x9c] sm:$0xf] }
 0x1e1   : > { %v3090_v59 = vpop.f32.mrf.mxu1  ;;  %v4071_v20 = vunpack.c.l.b16 %v3905_v50  ;;  %v3914_v6 = vrot.slane %v3913_v33, 4  ;;  %v3928_v10 = vrot.slane %v3926_v49, 5  ;;  %v4504_v30 = vrot.slane %v5702_v62, 5  ;;  %v5643_v57 = vld [vmem:[%s6054_s19 + $0xac] sm:$0xf] }
 0x1e2   : > { %v7264_v2 = vpop.f32.mrf.mxu3  ;;  %2767 = vst.msk [vmem:[#allocation2 + $0xe8] sm:$0xff] %vm447_vm9, %v2735_v60  ;;  %v3201_v44 = vadd.f32 %v3169_v22, %v3090_v59  ;;  %v3923_v46 = vor.u32 %v3922_v12, %v7285_v37  ;;  %v3931_v36 = vshrl.u32 %v5639_v0, 16  ;;  %v7337_v49 = vrot.slane %v3940_v7, 5 }
 0x1e3   : > { %v3522_v25 = vld [vmem:[#allocation2] sm:$0xff]  ;;  %v4093_v21 = vpack.c.b16 %v4071_v20, %v4070_v18  ;;  %v4506_v1 = vrot.slane %v4504_v30, 4  ;;  %v3919_v29 = vsel %vm6115_vm7, %v3914_v6, %v7285_v37  ;;  %v3964_v7 = vshll.u32 %v5643_v57, 16 }
 0x1e4   : > { %v7274_v63 = vpop.f32.mrf.mxu0  ;;  %v3554_v34 = vadd.f32 %v3522_v25, %v3442_v27  ;;  %3233 = vst.msk [vmem:[#allocation2 + $0x8] sm:$0xff] %vm447_vm9, %v3201_v44  ;;  %v3924_v11 = vrot.slane %v3923_v46, 4  ;;  %v5729_v44 = vrot.slane %v5701_v53, 9  ;;  %v4072_v31 = vunpack.c.l.b16 %v3919_v29 }
 0x1e5   : > { %v1987_v4 = vld [vmem:[#allocation2 + $0xf8] sm:$0xff]  ;;  %v4508_v20 = vsel %vm6122_vm8, %v4506_v1, %v4507_v56  ;;  %v3933_v3 = vrot.slane %v3931_v36, 4  ;;  %v5706_v1 = vld [vmem:[%s6054_s19 + $0xa4] sm:$0x1] }
 0x1e6   : > { %v2019_v23 = vadd.f32 %v1987_v4, %v7241_v26  ;;  %3586 = vst.msk [vmem:[#allocation2] sm:$0xff] %vm447_vm9, %v3554_v34  ;;  %v5444_v26 = vld [vmem:[%s6054_s19 + $0x8c] sm:$0x1]  ;;  %v3929_v14 = vsel %vm6115_vm7, %v3924_v11, %v3928_v10  ;;  %v3934_v34 = vshll.u32 %v5639_v0, 16  ;;  %v3000_v4 = vunpack.c.l.b16 %v2939_v24  ;;  %v5447_v11 = vld [vmem:[%s6054_s19 + $0x98] sm:$0x1] }
 0x1e7   : > { %v2704_v48 = vld [vmem:[#allocation2 + $0xf0] sm:$0xff]  ;;  %v3444_v5 = vpop.f32.mrf.mxu2  ;;  %v2941_v32 = vrot.slane %v5444_v26, 5  ;;  %v4505_v37 = vsel %vm6122_vm8, %v5729_v44, %v4504_v30  ;;  %v4073_v47 = vunpack.c.l.b16 %v3929_v14  ;;  %v4567_v46 = vunpack.c.l.b16 %v4508_v20  ;;  %v5642_v0 = vld [vmem:[%s6054_s19 + $0xa8] sm:$0xf]  ;;  %v5704_v44 = vld [vmem:[%s6054_s19 + $0x9c] sm:$0xe] }
 0x1e8   : > { %2051 = vst.msk [vmem:[#allocation2 + $0xf8] sm:$0xff] %vm447_vm9, %v2019_v23  ;;  %v2736_v38 = vadd.f32 %v2704_v48, %v7197_v9  ;;  %v7335_v48 = vld [vmem:[%s6054_s19 + $0x94] sm:$0xf]  ;;  %v3936_v33 = vrot.slane %v3934_v34, 5  ;;  %v4566_v26 = vunpack.c.l.b16 %v4505_v37  ;;  %v3955_v36 = vshrl.u32 %v5642_v0, 16 }
 0x1e9   : > { %v3093_v61 = vpop.f32.mrf.mxu1  ;;  %v3958_v34 = vshll.u32 %v5642_v0, 16  ;;  %v4514_v20 = vrot.slane %v5706_v1, 5 }
 0x1ea   : > { %v7294_v55 = vpop.f32.mrf.mxu3  ;;  %2768 = vst.msk [vmem:[#allocation2 + $0xf0] sm:$0xff] %vm447_vm9, %v2736_v38  ;;  %v3202_v42 = vadd.f32 %v3170_v39, %v3093_v61  ;;  %v3946_v38 = vrot.slane %v3944_v19, 4  ;;  %v3937_v6 = vor.u32 %v3936_v33, %v3933_v3  ;;  %v4588_v15 = vpack.c.b16 %v4567_v46, %v4566_v26 }
 0x1eb   : > { %v3523_v9 = vld [vmem:[#allocation2 + $0x8] sm:$0xff]  ;;  %v3960_v26 = vrot.slane %v3958_v34, 5 }
 0x1ec   : > { %v7300_v17 = vpop.f32.mrf.mxu0  ;;  %v3555_v27 = vadd.f32 %v3523_v9, %v3444_v5  ;;  %3234 = vst.msk [vmem:[#allocation2 + $0x10] sm:$0xff] %vm447_vm9, %v3202_v42  ;;  %5486 = vmatmul.msk.bf16.gmra.mxu1 %vm302_vm2, %v3021_v58  ;;  %5599 = vmatmul.msk.bf16.gmra.mxu2 %vm302_vm2, %v5798_v40  ;;  %v5641_v40 = vld [vmem:[%s6054_s19 + $0xa4] sm:$0x1]  ;;  %v3947_v10 = vor.u32 %v3946_v38, %v7337_v49 }
 0x1ed   : > { %v4240_v54 = vld [vmem:[#allocation2] sm:$0xff]  ;;  %v3950_v30 = vshll.u32 %v5641_v40, 16  ;;  %v3957_v40 = vrot.slane %v3955_v36, 4 }
 0x1ee   : > { %v4272_v60 = vadd.f32 %v4240_v54, %v7264_v2  ;;  %3587 = vst.msk [vmem:[#allocation2 + $0x8] sm:$0xff] %vm447_vm9, %v3555_v27  ;;  %v2942_v2 = vsel %vm6122_vm8, %v2940_v41, %v2941_v32  ;;  %v3172_v9 = vld [vmem:[#allocation2 + $0x20] sm:$0xff]  ;;  %v4094_v32 = vpack.c.b16 %v4073_v47, %v4072_v31  ;;  %v3948_v29 = vrot.slane %v3947_v10, 4  ;;  %v3173_v47 = vld [vmem:[#allocation2 + $0x28] sm:$0xff] }
 0x1ef   : > { %5664 = vmatmul.msk.bf16.gmra.mxu3 %vm302_vm2, %v4093_v21  ;;  %5745 = vmatmul.msk.bf16.gmra.mxu0 %vm302_vm2, %v4587_v45  ;;  %v2705_v59 = vld [vmem:[#allocation2 + $0xf8] sm:$0xff]  ;;  %v3447_v22 = vpop.f32.mrf.mxu2  ;;  %v3001_v43 = vunpack.c.l.b16 %v2942_v2  ;;  %v5445_v21 = vld [vmem:[%s6054_s19 + $0x90] sm:$0xe]  ;;  %v5705_v27 = vld [vmem:[%s6054_s19 + $0xa0] sm:$0xf]  ;;  %v3938_v2 = vrot.slane %v3937_v6, 4 }
 0x1f0   : > { %4304 = vst.msk [vmem:[#allocation2] sm:$0xff] %vm447_vm9, %v4272_v60  ;;  %v2737_v50 = vadd.f32 %v2705_v59, %v7224_v16  ;;  %v5471_v53 = vrot.slane %v5445_v21, 9  ;;  %v4511_v59 = vrot.slane %v5705_v27, 5  ;;  %v3952_v14 = vrot.slane %v3950_v30, 5 }
 0x1f1   : > { %v3095_v28 = vpop.f32.mrf.mxu1  ;;  %v3022_v42 = vpack.c.b16 %v3001_v43, %v3000_v4  ;;  %v5730_v4 = vrot.slane %v5704_v44, 9  ;;  %v3943_v3 = vsel %vm6115_vm7, %v3938_v2, %v7337_v49  ;;  %v7396_v49 = vrot.slane %v3964_v7, 5  ;;  %v5800_v44 = vld [vmem:[%s6054_s19 + $0x9c] sm:$0xff] }
 0x1f2   : > { %v7317_v25 = vpop.f32.mrf.mxu3  ;;  %2769 = vst.msk [vmem:[#allocation2 + $0xf8] sm:$0xff] %vm447_vm9, %v2737_v50  ;;  %v3203_v16 = vadd.f32 %v3171_v35, %v3095_v28  ;;  %v2948_v50 = vrot.slane %v5447_v11, 5  ;;  %v7366_v28 = vld [vmem:[%s7856_s2] ss:$0 sm:$0xff]  ;;  %v4513_v37 = vrot.slane %v4511_v59, 4  ;;  %v3953_v33 = vsel %vm6115_vm7, %v3948_v29, %v3952_v14  ;;  %v3174_v29 = vld [vmem:[#allocation2 + $0x30] sm:$0xff] }
 0x1f3   : > { %v3524_v12 = vld [vmem:[#allocation2 + $0x10] sm:$0xff]  ;;  %v4512_v21 = vsel %vm6122_vm8, %v5730_v4, %v4511_v59  ;;  %v4074_v6 = vunpack.c.l.b16 %v3943_v3  ;;  %v4075_v10 = vunpack.c.l.b16 %v3953_v33  ;;  %v5448_v11 = vld [vmem:[%s6054_s19 + $0x9c] sm:$0xe] }
 0x1f4   : > { %v7327_v18 = vpop.f32.mrf.mxu0  ;;  %v3556_v23 = vadd.f32 %v3524_v12, %v3447_v22  ;;  %3235 = vst.msk [vmem:[#allocation2 + $0x18] sm:$0xff] %vm447_vm9, %v3203_v16  ;;  %v3968_v12 = vshrl.u32 %v5643_v57, 16  ;;  %v3961_v57 = vor.u32 %v3960_v26, %v3957_v40  ;;  %v5645_v3 = vld [vmem:[%s6054_s19 + $0xb4] sm:$0xf] }
 0x1f5   : > { %v4241_v5 = vld [vmem:[#allocation2 + $0x8] sm:$0xff]  ;;  %v4095_v14 = vpack.c.b16 %v4075_v10, %v4074_v6  ;;  %v3175_v10 = vld [vmem:[#allocation2 + $0x38] sm:$0xff] }
 0x1f6   : > { %v4273_v58 = vadd.f32 %v4241_v5, %v7294_v55  ;;  %3588 = vst.msk [vmem:[#allocation2 + $0x10] sm:$0xff] %vm447_vm9, %v3556_v23  ;;  %v2945_v55 = vrot.slane %v7335_v48, 5 }
 0x1f7   : > { %v4734_v61 = vld [vmem:[#allocation2] sm:$0xff]  ;;  %v3449_v39 = vpop.f32.mrf.mxu2 }
 0x1f8   : > { %4305 = vst.msk [vmem:[#allocation2 + $0x8] sm:$0xff] %vm447_vm9, %v4273_v58  ;;  %v4766_v62 = vadd.f32 %v4734_v61, %v7247_v52  ;;  %v2947_v24 = vrot.slane %v2945_v55, 4  ;;  %v2946_v48 = vsel %vm6122_vm8, %v5471_v53, %v2945_v55  ;;  %v7392_v58 = vld [vmem:[%s6054_s19 + $0xa0] sm:$0xf]  ;;  %v4568_v53 = vunpack.c.l.b16 %v4512_v21 }
 0x1f9   : > { %v3098_v45 = vpop.f32.mrf.mxu1  ;;  %v3002_v55 = vunpack.c.l.b16 %v2946_v48  ;;  %v2952_v30 = vrot.slane %v7392_v58, 5  ;;  %v5709_v48 = vld [vmem:[%s6054_s19 + $0xb0] sm:$0x1]  ;;  %v5646_v58 = vld [vmem:[%s6054_s19 + $0xb8] sm:$0xf] }
 0x1fa   : > { %v7346_v41 = vpop.f32.mrf.mxu3  ;;  %4798 = vst.msk [vmem:[#allocation2] sm:$0xff] %vm447_vm9, %v4766_v62  ;;  %v3204_v52 = vadd.f32 %v3172_v9, %v3098_v45  ;;  %v2949_v5 = vsel %vm6122_vm8, %v2947_v24, %v2948_v50  ;;  %v4515_v62 = vsel %vm6122_vm8, %v4513_v37, %v4514_v20  ;;  %v5644_v9 = vld [vmem:[%s6054_s19 + $0xb0] sm:$0x1]  ;;  %v3962_v37 = vrot.slane %v3961_v57, 4 }
 0x1fb   : > { %v3525_v54 = vld [vmem:[#allocation2 + $0x18] sm:$0xff]  ;;  %v3003_v45 = vunpack.c.l.b16 %v2949_v5  ;;  %v4521_v21 = vrot.slane %v5709_v48, 5 }
 0x1fc   : > { %v7353_v60 = vpop.f32.mrf.mxu0  ;;  %v3557_v22 = vadd.f32 %v3525_v54, %v3449_v39  ;;  %3236 = vst.msk [vmem:[#allocation2 + $0x20] sm:$0xff] %vm447_vm9, %v3204_v52  ;;  %5487 = vmatmul.msk.bf16.gmra.mxu1 %vm302_vm2, %v3022_v42  ;;  %5600 = vmatmul.msk.bf16.gmra.mxu2 %vm302_vm2, %v5799_v51  ;;  %v3970_v39 = vrot.slane %v3968_v12, 4 }
 0x1fd   : > { %v4242_v56 = vld [vmem:[#allocation2 + $0x10] sm:$0xff] }
 0x1fe   : > { %v4274_v35 = vadd.f32 %v4242_v56, %v7317_v25  ;;  %3589 = vst.msk [vmem:[#allocation2 + $0x18] sm:$0xff] %vm447_vm9, %v3557_v22  ;;  %v3971_v59 = vor.u32 %v3970_v39, %v7396_v49  ;;  %v3974_v22 = vshll.u32 %v5644_v9, 16  ;;  %v5450_v56 = vld [vmem:[%s6054_s19 + $0xa4] sm:$0x1] }
 0x1ff   : > { %5665 = vmatmul.msk.bf16.gmra.mxu3 %vm302_vm2, %v4094_v32  ;;  %5746 = vmatmul.msk.bf16.gmra.mxu0 %vm302_vm2, %v4588_v15  ;;  %v4735_v19 = vld [vmem:[#allocation2 + $0x8] sm:$0xff]  ;;  %v3452_v16 = vpop.f32.mrf.mxu2  ;;  %v4569_v15 = vunpack.c.l.b16 %v4515_v62  ;;  %v2955_v12 = vrot.slane %v5450_v56, 5 }
 0x200   : > { %4306 = vst.msk [vmem:[#allocation2 + $0x10] sm:$0xff] %vm447_vm9, %v4274_v35  ;;  %v4767_v25 = vadd.f32 %v4735_v19, %v7274_v63  ;;  %v5472_v35 = vrot.slane %v5448_v11, 9  ;;  %v5708_v19 = vld [vmem:[%s6054_s19 + $0xac] sm:$0xf]  ;;  %v3972_v20 = vrot.slane %v3971_v59, 4 }
 0x201   : > { %v4830_v43 = vld [vmem:[#allocation2] sm:$0xff]  ;;  %v3100_v31 = vpop.f32.mrf.mxu1  ;;  %v4589_v7 = vpack.c.b16 %v4569_v15, %v4568_v53  ;;  %v4518_v33 = vrot.slane %v5708_v19, 5 }
 0x202   : > { %v7374_v23 = vpop.f32.mrf.mxu3  ;;  %v4866_v63 = vadd.f32 %v7366_v28, %v4830_v43  ;;  %4799 = vst.msk [vmem:[#allocation2 + $0x8] sm:$0xff] %vm447_vm9, %v4767_v25  ;;  %v3205_v38 = vadd.f32 %v3173_v47, %v3100_v31  ;;  %v3976_v25 = vrot.slane %v3974_v22, 5  ;;  %v5707_v47 = vld [vmem:[%s6054_s19 + $0xa8] sm:$0xe]  ;;  %v2953_v26 = vsel %vm6122_vm8, %v5472_v35, %v2952_v30 }
 0x203   : > { %v3526_v46 = vld [vmem:[#allocation2 + $0x20] sm:$0xff]  ;;  %v4520_v39 = vrot.slane %v4518_v33, 4  ;;  %v3004_v15 = vunpack.c.l.b16 %v2953_v26 }
 0x204   : > { %v7394_v61 = vpop.f32.mrf.mxu0  ;;  %v4898_v42 = vmax.f32 %v4866_v63, 0.0  ;;  %v3558_v51 = vadd.f32 %v3526_v46, %v3452_v16  ;;  %3237 = vst.msk [vmem:[#allocation2 + $0x28] sm:$0xff] %vm447_vm9, %v3205_v38  ;;  %v5731_v46 = vrot.slane %v5707_v47, 9 }
 0x205   : > { %v4243_v32 = vld [vmem:[#allocation2 + $0x18] sm:$0xff] }
 0x206   : > { %v4930_v27 = vpack.c.bf16 %v4898_v42, %v4898_v42  ;;  %v4275_v52 = vadd.f32 %v4243_v32, %v7346_v41  ;;  %3590 = vst.msk [vmem:[#allocation2 + $0x20] sm:$0xff] %vm447_vm9, %v3558_v51  ;;  %v3023_v41 = vpack.c.b16 %v3003_v45, %v3002_v55  ;;  %v3967_v51 = vsel %vm6115_vm7, %v3962_v37, %v7396_v49 }
 0x207   : > { %v4736_v54 = vld [vmem:[#allocation2 + $0x10] sm:$0xff]  ;;  %v3454_v0 = vpop.f32.mrf.mxu2  ;;  %v3977_v55 = vsel %vm6115_vm7, %v3972_v20, %v3976_v25  ;;  %v3979_v45 = vshrl.u32 %v5645_v3, 16  ;;  %v4519_v57 = vsel %vm6122_vm8, %v5731_v46, %v4518_v33  ;;  %v3176_v20 = vld [vmem:[#allocation2 + $0x40] sm:$0xff] }
 0x208   : > { %4963 = vst.msk [vmem:[%s7410_s9] sm:$0xf] %vm4962_vm10, %v4930_v27  ;;  %v4768_v24 = vadd.f32 %v4736_v54, %v7300_v17  ;;  %v2954_v17 = vrot.slane %v2952_v30, 4  ;;  %v3982_v30 = vshll.u32 %v5645_v3, 16  ;;  %v3988_v27 = vshll.u32 %v5646_v58, 16 }
 0x209   : > { %v4831_v50 = vld [vmem:[#allocation2 + $0x8] sm:$0xff]  ;;  %4307 = vst.msk [vmem:[#allocation2 + $0x18] sm:$0xff] %vm447_vm9, %v4275_v52  ;;  %v3103_v2 = vpop.f32.mrf.mxu1  ;;  %v3992_v52 = vshrl.u32 %v5646_v58, 16 }
 0x20a   : > { %v7416_v1 = vpop.f32.mrf.mxu3  ;;  %v4867_v36 = vadd.f32 %v7366_v28, %v4831_v50  ;;  %4800 = vst.msk [vmem:[#allocation2 + $0x10] sm:$0xff] %vm447_vm9, %v4768_v24  ;;  %v3206_v34 = vadd.f32 %v3174_v29, %v3103_v2  ;;  %v4076_v24 = vunpack.c.l.b16 %v3967_v51  ;;  %v3981_v50 = vrot.slane %v3979_v45, 4  ;;  %v5710_v45 = vld [vmem:[%s6054_s19 + $0xb4] sm:$0xe] }
 0x20b   : > { %v3527_v16 = vld [vmem:[#allocation2 + $0x28] sm:$0xff]  ;;  %v3984_v2 = vrot.slane %v3982_v30, 5  ;;  %v7461_v29 = vrot.slane %v3988_v27, 5  ;;  %v5648_v30 = vld [vmem:[%s6054_s19 + $0xc0] sm:$0xf] }
 0x20c   : > { %v7423_v4 = vpop.f32.mrf.mxu0  ;;  %v4899_v43 = vmax.f32 %v4867_v36, 0.0  ;;  %v3559_v31 = vadd.f32 %v3527_v16, %v3454_v0  ;;  %3238 = vst.msk [vmem:[#allocation2 + $0x30] sm:$0xff] %vm447_vm9, %v3206_v34  ;;  %5488 = vmatmul.msk.bf16.gmra.mxu1 %vm302_vm2, %v3023_v41  ;;  %5601 = vmatmul.msk.bf16.gmra.mxu2 %vm302_vm2, %v5800_v44  ;;  %v4077_v41 = vunpack.c.l.b16 %v3977_v55  ;;  %v5452_v44 = vld [vmem:[%s6054_s19 + $0xac] sm:$0xf]  ;;  %v5451_v34 = vld [vmem:[%s6054_s19 + $0xa8] sm:$0xe] }
 0x20d   : > { %v4244_v5 = vld [vmem:[#allocation2 + $0x20] sm:$0xff]  ;;  %v2959_v16 = vrot.slane %v5452_v44, 5  ;;  %v5473_v3 = vrot.slane %v5451_v34, 9  ;;  %v3985_v33 = vor.u32 %v3984_v2, %v3981_v50  ;;  %v4006_v44 = vshll.u32 %v5648_v30, 16  ;;  %v3177_v2 = vld [vmem:[#allocation2 + $0x48] sm:$0xff] }
 0x20e   : > { %v4931_v63 = vpack.c.bf16 %v4899_v43, %v4899_v43  ;;  %v4276_v38 = vadd.f32 %v4244_v5, %v7374_v23  ;;  %3591 = vst.msk [vmem:[#allocation2 + $0x28] sm:$0xff] %vm447_vm9, %v3559_v31  ;;  %v2956_v23 = vsel %vm6122_vm8, %v2954_v17, %v2955_v12  ;;  %v4570_v17 = vunpack.c.l.b16 %v4519_v57  ;;  %v5647_v12 = vld [vmem:[%s6054_s19 + $0xbc] sm:$0x1]  ;;  %v5801_v43 = vld [vmem:[%s6054_s19 + $0xa8] sm:$0xff]  ;;  %v5453_v5 = vld [vmem:[%s6054_s19 + $0xb0] sm:$0x1] }
 0x20f   : > { %5666 = vmatmul.msk.bf16.gmra.mxu3 %vm302_vm2, %v4095_v14  ;;  %5747 = vmatmul.msk.bf16.gmra.mxu0 %vm302_vm2, %v4589_v7  ;;  %v3457_v40 = vpop.f32.mrf.mxu2  ;;  %v3005_v54 = vunpack.c.l.b16 %v2956_v23  ;;  %v3994_v14 = vrot.slane %v3992_v52, 4  ;;  %v4096_v48 = vpack.c.b16 %v4077_v41, %v4076_v24  ;;  %v3998_v26 = vshll.u32 %v5647_v12, 16 }
 0x210   : > { %4964 = vst.msk [vmem:[%s7410_s9 + $0x4] sm:$0xf] %vm4962_vm10, %v4931_v63  ;;  %v4737_v62 = vld [vmem:[#allocation2 + $0x18] sm:$0xff]  ;;  %v2962_v55 = vrot.slane %v5453_v5, 5  ;;  %v2960_v52 = vsel %vm6122_vm8, %v5473_v3, %v2959_v16  ;;  %v5732_v57 = vrot.slane %v5710_v45, 9  ;;  %v4003_v41 = vshrl.u32 %v5648_v30, 16 }
 0x211   : > { %v4832_v9 = vld [vmem:[#allocation2 + $0x10] sm:$0xff]  ;;  %4308 = vst.msk [vmem:[#allocation2 + $0x20] sm:$0xff] %vm447_vm9, %v4276_v38  ;;  %v4769_v32 = vadd.f32 %v4737_v62, %v7327_v18  ;;  %v3105_v6 = vpop.f32.mrf.mxu1  ;;  %v4522_v18 = vsel %vm6122_vm8, %v4520_v39, %v4521_v21  ;;  %v3024_v25 = vpack.c.b16 %v3005_v54, %v3004_v15  ;;  %v5711_v63 = vld [vmem:[%s6054_s19 + $0xb8] sm:$0xf]  ;;  %v2961_v21 = vrot.slane %v2959_v16, 4 }
 0x212   : > { %v7440_v42 = vpop.f32.mrf.mxu3  ;;  %v4868_v11 = vadd.f32 %v7366_v28, %v4832_v9  ;;  %v3207_v53 = vadd.f32 %v3175_v10, %v3105_v6  ;;  %v4571_v7 = vunpack.c.l.b16 %v4522_v18  ;;  %v4525_v23 = vrot.slane %v5711_v63, 5  ;;  %v5712_v9 = vld [vmem:[%s6054_s19 + $0xbc] sm:$0x1] }
 0x213   : > { %4801 = vst.msk [vmem:[#allocation2 + $0x18] sm:$0xff] %vm447_vm9, %v4769_v32  ;;  %v3528_v49 = vld [vmem:[#allocation2 + $0x30] sm:$0xff]  ;;  %v3986_v10 = vrot.slane %v3985_v33, 4  ;;  %v2963_v24 = vsel %vm6122_vm8, %v2961_v21, %v2962_v55  ;;  %v4008_v5 = vrot.slane %v4006_v44, 5 }
 0x214   : > { %v7453_v0 = vpop.f32.mrf.mxu0  ;;  %v4900_v59 = vmax.f32 %v4868_v11, 0.0  ;;  %v3560_v22 = vadd.f32 %v3528_v49, %v3457_v40  ;;  %3239 = vst.msk [vmem:[#allocation2 + $0x38] sm:$0xff] %vm447_vm9, %v3207_v53  ;;  %v3995_v40 = vor.u32 %v3994_v14, %v7461_v29  ;;  %v4590_v46 = vpack.c.b16 %v4571_v7, %v4570_v17  ;;  %v5649_v49 = vld [vmem:[%s6054_s19 + $0xc4] sm:$0xf] }
 0x215   : > { %v4245_v56 = vld [vmem:[#allocation2 + $0x28] sm:$0xff]  ;;  %v4000_v53 = vrot.slane %v3998_v26, 5  ;;  %v4527_v18 = vrot.slane %v4525_v23, 4  ;;  %v3991_v14 = vsel %vm6115_vm7, %v3986_v10, %v7461_v29  ;;  %v3006_v7 = vunpack.c.l.b16 %v2960_v52 }
 0x216   : > { %v4932_v35 = vpack.c.bf16 %v4900_v59, %v4900_v59  ;;  %v4277_v36 = vadd.f32 %v4245_v56, %v7416_v1  ;;  %3592 = vst.msk [vmem:[#allocation2 + $0x30] sm:$0xff] %vm447_vm9, %v3560_v22  ;;  %v3996_v11 = vrot.slane %v3995_v40, 4  ;;  %v4528_v59 = vrot.slane %v5712_v9, 5 }
 0x217   : > { %v3459_v19 = vpop.f32.mrf.mxu2  ;;  %v3007_v12 = vunpack.c.l.b16 %v2963_v24  ;;  %v4526_v29 = vsel %vm6122_vm8, %v5732_v57, %v4525_v23  ;;  %v5454_v23 = vld [vmem:[%s6054_s19 + $0xb4] sm:$0xe] }
 0x218   : > { %4965 = vst.msk [vmem:[%s7410_s9 + $0x8] sm:$0xf] %vm4962_vm10, %v4932_v35  ;;  %v4738_v37 = vld [vmem:[#allocation2 + $0x20] sm:$0xff]  ;;  %v4012_v35 = vshll.u32 %v5649_v49, 16  ;;  %v4572_v26 = vunpack.c.l.b16 %v4526_v29 }
 0x219   : > { %4309 = vst.msk [vmem:[#allocation2 + $0x28] sm:$0xff] %vm447_vm9, %v4277_v36  ;;  %v4770_v1 = vadd.f32 %v4738_v37, %v7353_v60  ;;  %v3108_v47 = vpop.f32.mrf.mxu1  ;;  %v4016_v36 = vshrl.u32 %v5649_v49, 16  ;;  %v3025_v9 = vpack.c.b16 %v3007_v12, %v3006_v7 }
 0x21a   : > { %v7470_v31 = vpop.f32.mrf.mxu3  ;;  %v4833_v38 = vld [vmem:[#allocation2 + $0x18] sm:$0xff]  ;;  %v3208_v58 = vadd.f32 %v3176_v20, %v3108_v47  ;;  %v5650_v47 = vld [vmem:[%s6054_s19 + $0xc8] sm:$0x1] }
 0x21b   : > { %v4869_v39 = vadd.f32 %v7366_v28, %v4833_v38  ;;  %4802 = vst.msk [vmem:[#allocation2 + $0x20] sm:$0xff] %vm447_vm9, %v4770_v1  ;;  %v3529_v60 = vld [vmem:[#allocation2 + $0x38] sm:$0xff]  ;;  %v4078_v1 = vunpack.c.l.b16 %v3991_v14  ;;  %v7520_v38 = vrot.slane %v4012_v35, 5  ;;  %v4022_v55 = vshll.u32 %v5650_v47, 16 }
 0x21c   : > { %v7479_v62 = vpop.f32.mrf.mxu0  ;;  %v3561_v51 = vadd.f32 %v3529_v60, %v3459_v19  ;;  %3240 = vst.msk [vmem:[#allocation2 + $0x40] sm:$0xff] %vm447_vm9, %v3208_v58  ;;  %5489 = vmatmul.msk.bf16.gmra.mxu1 %vm302_vm2, %v3024_v25  ;;  %5602 = vmatmul.msk.bf16.gmra.mxu2 %vm302_vm2, %v5801_v43  ;;  %v4001_v19 = vsel %vm6115_vm7, %v3996_v11, %v4000_v53  ;;  %v7512_v20 = vld [vmem:[%s6054_s19 + $0xb8] sm:$0xf]  ;;  %v4018_v58 = vrot.slane %v4016_v36, 4 }
 0x21d   : > { %v4901_v32 = vmax.f32 %v4869_v39, 0.0  ;;  %v4246_v6 = vld [vmem:[#allocation2 + $0x30] sm:$0xff]  ;;  %v4529_v25 = vsel %vm6122_vm8, %v4527_v18, %v4528_v59  ;;  %v4079_v63 = vunpack.c.l.b16 %v4001_v19  ;;  %v4024_v24 = vrot.slane %v4022_v55, 5 }
 0x21e   : > { %v4278_v27 = vadd.f32 %v4246_v6, %v7440_v42  ;;  %3593 = vst.msk [vmem:[#allocation2 + $0x38] sm:$0xff] %vm447_vm9, %v3561_v51  ;;  %v2966_v51 = vrot.slane %v7512_v20, 5  ;;  %v4019_v11 = vor.u32 %v4018_v58, %v7520_v38 }
 0x21f   : > { %5667 = vmatmul.msk.bf16.gmra.mxu3 %vm302_vm2, %v4096_v48  ;;  %5748 = vmatmul.msk.bf16.gmra.mxu0 %vm302_vm2, %v4590_v46  ;;  %v4933_v15 = vpack.c.bf16 %v4901_v32, %v4901_v32  ;;  %v3462_v54 = vpop.f32.mrf.mxu2  ;;  %v4005_v48 = vrot.slane %v4003_v41, 4  ;;  %v4573_v46 = vunpack.c.l.b16 %v4529_v25  ;;  %v5802_v32 = vld [vmem:[%s6054_s19 + $0xb4] sm:$0xff]  ;;  %v4097_v52 = vpack.c.b16 %v4079_v63, %v4078_v1  ;;  %v5651_v41 = vld [vmem:[%s6054_s19 + $0xcc] sm:$0xf] }
 0x220   : > { %4310 = vst.msk [vmem:[#allocation2 + $0x30] sm:$0xff] %vm447_vm9, %v4278_v27  ;;  %v4739_v22 = vld [vmem:[#allocation2 + $0x28] sm:$0xff]  ;;  %v3178_v27 = vld [vmem:[#allocation2 + $0x50] sm:$0xff]  ;;  %v2968_v18 = vrot.slane %v2966_v51, 4  ;;  %v4020_v36 = vrot.slane %v4019_v11, 4 }
 0x221   : > { %4966 = vst.msk [vmem:[%s7410_s9 + $0xc] sm:$0xf] %vm4962_vm10, %v4933_v15  ;;  %v4771_v56 = vadd.f32 %v4739_v22, %v7394_v61  ;;  %v3110_v50 = vpop.f32.mrf.mxu1  ;;  %v4009_v10 = vor.u32 %v4008_v5, %v4005_v48  ;;  %v4591_v15 = vpack.c.b16 %v4573_v46, %v4572_v26 }
 0x222   : > { %v7495_v42 = vpop.f32.mrf.mxu3  ;;  %v4834_v34 = vld [vmem:[#allocation2 + $0x20] sm:$0xff]  ;;  %v3209_v17 = vadd.f32 %v3177_v2, %v3110_v50  ;;  %v4025_v58 = vsel %vm6115_vm7, %v4020_v36, %v4024_v24 }
 0x223   : > { %v4870_v16 = vadd.f32 %v7366_v28, %v4834_v34  ;;  %4803 = vst.msk [vmem:[#allocation2 + $0x28] sm:$0xff] %vm447_vm9, %v4771_v56  ;;  %v3530_v61 = vld [vmem:[#allocation2 + $0x40] sm:$0xff]  ;;  %v4010_v56 = vrot.slane %v4009_v10, 4  ;;  %v5715_v34 = vld [vmem:[%s6054_s19 + $0xc8] sm:$0x1] }
 0x224   : > { %v7509_v37 = vpop.f32.mrf.mxu0  ;;  %v3562_v43 = vadd.f32 %v3530_v61, %v3462_v54  ;;  %3241 = vst.msk [vmem:[#allocation2 + $0x48] sm:$0xff] %vm447_vm9, %v3209_v17  ;;  %v5713_v50 = vld [vmem:[%s6054_s19 + $0xc0] sm:$0xe]  ;;  %v5714_v2 = vld [vmem:[%s6054_s19 + $0xc4] sm:$0xf] }
 0x225   : > { %v4902_v3 = vmax.f32 %v4870_v16, 0.0  ;;  %v4247_v33 = vld [vmem:[#allocation2 + $0x38] sm:$0xff]  ;;  %v4532_v17 = vrot.slane %v5714_v2, 5  ;;  %v5652_v16 = vld [vmem:[%s6054_s19 + $0xd0] sm:$0xf]  ;;  %v5733_v29 = vrot.slane %v5713_v50, 9  ;;  %v4015_v5 = vsel %vm6115_vm7, %v4010_v56, %v7520_v38 }
 0x226   : > { %v4279_v40 = vadd.f32 %v4247_v33, %v7470_v31  ;;  %3594 = vst.msk [vmem:[#allocation2 + $0x40] sm:$0xff] %vm447_vm9, %v3562_v43  ;;  %v5456_v31 = vld [vmem:[%s6054_s19 + $0xbc] sm:$0x1]  ;;  %v4535_v43 = vrot.slane %v5715_v34, 5  ;;  %v4040_v26 = vshrl.u32 %v5652_v16, 16  ;;  %v5803_v56 = vld [vmem:[%s6054_s19 + $0xc0] sm:$0xff] }
 0x227   : > { %v4934_v39 = vpack.c.bf16 %v4902_v3, %v4902_v3  ;;  %v4740_v60 = vld [vmem:[#allocation2 + $0x30] sm:$0xff]  ;;  %v3464_v21 = vpop.f32.mrf.mxu2  ;;  %v2969_v59 = vrot.slane %v5456_v31, 5  ;;  %v4534_v25 = vrot.slane %v4532_v17, 4  ;;  %v4027_v3 = vshrl.u32 %v5651_v41, 16 }
 0x228   : > { %4311 = vst.msk [vmem:[#allocation2 + $0x38] sm:$0xff] %vm447_vm9, %v4279_v40  ;;  %v4772_v45 = vadd.f32 %v4740_v60, %v7423_v4  ;;  %v5474_v4 = vrot.slane %v5454_v23, 9  ;;  %v4030_v40 = vshll.u32 %v5651_v41, 16  ;;  %v4081_v31 = vunpack.c.l.b16 %v4025_v58  ;;  %v3180_v41 = vld [vmem:[#allocation2 + $0x60] sm:$0xff] }
 0x229   : > { %4967 = vst.msk [vmem:[%s7410_s9 + $0x10] sm:$0xf] %vm4962_vm10, %v4934_v39  ;;  %v3113_v30 = vpop.f32.mrf.mxu1  ;;  %v2970_v48 = vsel %vm6122_vm8, %v2968_v18, %v2969_v59  ;;  %v4536_v55 = vsel %vm6122_vm8, %v4534_v25, %v4535_v43  ;;  %v4042_v11 = vrot.slane %v4040_v26, 4 }
 0x22a   : > { %v7529_v6 = vpop.f32.mrf.mxu3  ;;  %v4835_v53 = vld [vmem:[#allocation2 + $0x28] sm:$0xff]  ;;  %4804 = vst.msk [vmem:[#allocation2 + $0x30] sm:$0xff] %vm447_vm9, %v4772_v45  ;;  %v3210_v49 = vadd.f32 %v3178_v27, %v3113_v30  ;;  %v2967_v19 = vsel %vm6122_vm8, %v5474_v4, %v2966_v51  ;;  %v3009_v23 = vunpack.c.l.b16 %v2970_v48  ;;  %v4533_v51 = vsel %vm6122_vm8, %v5733_v29, %v4532_v17  ;;  %v7580_v4 = vld [vmem:[%s6054_s19 + $0xc4] sm:$0xf]  ;;  %v5717_v17 = vld [vmem:[%s6054_s19 + $0xd0] sm:$0xf] }
 0x22b   : > { %v4871_v54 = vadd.f32 %v7366_v28, %v4835_v53  ;;  %v3531_v57 = vld [vmem:[#allocation2 + $0x48] sm:$0xff]  ;;  %v4029_v30 = vrot.slane %v4027_v3, 4  ;;  %v4032_v27 = vrot.slane %v4030_v40, 5  ;;  %v4539_v25 = vrot.slane %v5717_v17, 5  ;;  %v5718_v48 = vld [vmem:[%s6054_s19 + $0xd4] sm:$0x1] }
 0x22c   : > { %v7537_v22 = vpop.f32.mrf.mxu0  ;;  %v3563_v44 = vadd.f32 %v3531_v57, %v3464_v21  ;;  %3242 = vst.msk [vmem:[#allocation2 + $0x50] sm:$0xff] %vm447_vm9, %v3210_v49  ;;  %5490 = vmatmul.msk.bf16.gmra.mxu1 %vm302_vm2, %v3025_v9  ;;  %5603 = vmatmul.msk.bf16.gmra.mxu2 %vm302_vm2, %v5802_v32  ;;  %v3008_v21 = vunpack.c.l.b16 %v2967_v19  ;;  %v4080_v32 = vunpack.c.l.b16 %v4015_v5  ;;  %v4575_v57 = vunpack.c.l.b16 %v4536_v55  ;;  %v5457_v19 = vld [vmem:[%s6054_s19 + $0xc0] sm:$0xe] }
 0x22d   : > { %v4903_v14 = vmax.f32 %v4871_v54, 0.0  ;;  %v4248_v35 = vld [vmem:[#allocation2 + $0x40] sm:$0xff]  ;;  %v4574_v54 = vunpack.c.l.b16 %v4533_v51  ;;  %v4033_v36 = vor.u32 %v4032_v27, %v4029_v30  ;;  %v5475_v3 = vrot.slane %v5457_v19, 9 }
 0x22e   : > { %v4280_v7 = vadd.f32 %v4248_v35, %v7495_v42  ;;  %3595 = vst.msk [vmem:[#allocation2 + $0x48] sm:$0xff] %vm447_vm9, %v3563_v44  ;;  %v3179_v42 = vld [vmem:[#allocation2 + $0x58] sm:$0xff]  ;;  %v3026_v44 = vpack.c.b16 %v3009_v23, %v3008_v21  ;;  %v2973_v35 = vrot.slane %v7580_v4, 5  ;;  %v4541_v21 = vrot.slane %v4539_v25, 4 }
 0x22f   : > { %5668 = vmatmul.msk.bf16.gmra.mxu3 %vm302_vm2, %v4097_v52  ;;  %5749 = vmatmul.msk.bf16.gmra.mxu0 %vm302_vm2, %v4591_v15  ;;  %v4935_v61 = vpack.c.bf16 %v4903_v14, %v4903_v14  ;;  %v4741_v12 = vld [vmem:[#allocation2 + $0x38] sm:$0xff]  ;;  %v3467_v20 = vpop.f32.mrf.mxu2  ;;  %v5653_v15 = vld [vmem:[%s6054_s19 + $0xd4] sm:$0x1]  ;;  %v4098_v14 = vpack.c.b16 %v4081_v31, %v4080_v32  ;;  %v4034_v26 = vrot.slane %v4033_v36, 4  ;;  %v4542_v23 = vrot.slane %v5718_v48, 5  ;;  %v3181_v32 = vld [vmem:[#allocation2 + $0x68] sm:$0xff] }
 0x230   : > { %4312 = vst.msk [vmem:[#allocation2 + $0x40] sm:$0xff] %vm447_vm9, %v4280_v7  ;;  %v4773_v1 = vadd.f32 %v4741_v12, %v7453_v0  ;;  %v4036_v0 = vshll.u32 %v5652_v16, 16  ;;  %v4046_v34 = vshll.u32 %v5653_v15, 16  ;;  %v5459_v16 = vld [vmem:[%s6054_s19 + $0xc8] sm:$0x1]  ;;  %v4592_v12 = vpack.c.b16 %v4575_v57, %v4574_v54 }
 0x231   : > { %4968 = vst.msk [vmem:[%s7410_s9 + $0x14] sm:$0xf] %vm4962_vm10, %v4935_v61  ;;  %v4836_v33 = vld [vmem:[#allocation2 + $0x30] sm:$0xff]  ;;  %v3115_v63 = vpop.f32.mrf.mxu1  ;;  %v2974_v31 = vsel %vm6122_vm8, %v5475_v3, %v2973_v35  ;;  %v4543_v15 = vsel %vm6122_vm8, %v4541_v21, %v4542_v23 }
 0x232   : > { %v7555_v47 = vpop.f32.mrf.mxu3  ;;  %v4872_v46 = vadd.f32 %v7366_v28, %v4836_v33  ;;  %4805 = vst.msk [vmem:[#allocation2 + $0x38] sm:$0xff] %vm447_vm9, %v4773_v1  ;;  %v3211_v39 = vadd.f32 %v3179_v42, %v3115_v63  ;;  %v7575_v52 = vrot.slane %v4036_v0, 5  ;;  %v5716_v42 = vld [vmem:[%s6054_s19 + $0xcc] sm:$0xe]  ;;  %v2975_v33 = vrot.slane %v2973_v35, 4 }
 0x233   : > { %v3532_v60 = vld [vmem:[#allocation2 + $0x50] sm:$0xff]  ;;  %v2976_v63 = vrot.slane %v5459_v16, 5  ;;  %v4048_v58 = vrot.slane %v4046_v34, 5 }
 0x234   : > { %v7568_v38 = vpop.f32.mrf.mxu0  ;;  %v4904_v45 = vmax.f32 %v4872_v46, 0.0  ;;  %v3564_v9 = vadd.f32 %v3532_v60, %v3467_v20  ;;  %3243 = vst.msk [vmem:[#allocation2 + $0x58] sm:$0xff] %vm447_vm9, %v3211_v39  ;;  %v4043_v61 = vor.u32 %v4042_v11, %v7575_v52  ;;  %v5734_v60 = vrot.slane %v5716_v42, 9  ;;  %v5804_v35 = vld [vmem:[%s6054_s19 + $0xcc] sm:$0xff] }
 0x235   : > { %v4249_v10 = vld [vmem:[#allocation2 + $0x48] sm:$0xff]  ;;  %v4039_v11 = vsel %vm6115_vm7, %v4034_v26, %v7575_v52  ;;  %v3010_v52 = vunpack.c.l.b16 %v2974_v31  ;;  %v3184_v31 = vld [vmem:[#allocation2 + $0x80] sm:$0xff] }
 0x236   : > { %v4936_v53 = vpack.c.bf16 %v4904_v45, %v4904_v45  ;;  %v4281_v49 = vadd.f32 %v4249_v10, %v7529_v6  ;;  %3596 = vst.msk [vmem:[#allocation2 + $0x50] sm:$0xff] %vm447_vm9, %v3564_v9  ;;  %v4044_v46 = vrot.slane %v4043_v61, 4  ;;  %v2977_v10 = vsel %vm6122_vm8, %v2975_v33, %v2976_v63 }
 0x237   : > { %v4742_v18 = vld [vmem:[#allocation2 + $0x40] sm:$0xff]  ;;  %v3469_v59 = vpop.f32.mrf.mxu2  ;;  %v4540_v4 = vsel %vm6122_vm8, %v5734_v60, %v4539_v25  ;;  %v3011_v8 = vunpack.c.l.b16 %v2977_v10 }
 0x238   : > { %4969 = vst.msk [vmem:[%s7410_s9 + $0x18] sm:$0xf] %vm4962_vm10, %v4936_v53  ;;  %v4774_v24 = vadd.f32 %v4742_v18, %v7479_v62  ;;  %v4049_v53 = vsel %vm6115_vm7, %v4044_v46, %v4048_v58  ;;  %v3183_v58 = vld [vmem:[#allocation2 + $0x78] sm:$0xff] }
 0x239   : > { %v4837_v50 = vld [vmem:[#allocation2 + $0x38] sm:$0xff]  ;;  %4313 = vst.msk [vmem:[#allocation2 + $0x48] sm:$0xff] %vm447_vm9, %v4281_v49  ;;  %v3118_v2 = vpop.f32.mrf.mxu1 }
 0x23a   : > { %v7587_v6 = vpop.f32.mrf.mxu3  ;;  %v4873_v62 = vadd.f32 %v7366_v28, %v4837_v50  ;;  %4806 = vst.msk [vmem:[#allocation2 + $0x40] sm:$0xff] %vm447_vm9, %v4774_v24  ;;  %v3212_v7 = vadd.f32 %v3180_v41, %v3118_v2  ;;  %v4083_v24 = vunpack.c.l.b16 %v4049_v53  ;;  %v4577_v50 = vunpack.c.l.b16 %v4543_v15 }
 0x23b   : > { %v3533_v20 = vld [vmem:[#allocation2 + $0x58] sm:$0xff] }
 0x23c   : > { %v7597_v29 = vpop.f32.mrf.mxu0  ;;  %v4905_v43 = vmax.f32 %v4873_v62, 0.0  ;;  %v3565_v1 = vadd.f32 %v3533_v20, %v3469_v59  ;;  %3244 = vst.msk [vmem:[#allocation2 + $0x60] sm:$0xff] %vm447_vm9, %v3212_v7  ;;  %5491 = vmatmul.msk.bf16.gmra.mxu1 %vm302_vm2, %v3026_v44  ;;  %5604 = vmatmul.msk.bf16.gmra.mxu2 %vm302_vm2, %v5803_v56  ;;  %v4082_v59 = vunpack.c.l.b16 %v4039_v11  ;;  %v4576_v56 = vunpack.c.l.b16 %v4540_v4  ;;  %v3182_v62 = vld [vmem:[#allocation2 + $0x70] sm:$0xff] }
 0x23d   : > { %v4250_v5 = vld [vmem:[#allocation2 + $0x50] sm:$0xff] }
 0x23e   : > { %v4937_v40 = vpack.c.bf16 %v4905_v43, %v4905_v43  ;;  %v4282_v0 = vadd.f32 %v4250_v5, %v7555_v47  ;;  %3597 = vst.msk [vmem:[#allocation2 + $0x58] sm:$0xff] %vm447_vm9, %v3565_v1  ;;  %v4099_v7 = vpack.c.b16 %v4083_v24, %v4082_v59  ;;  %v4593_v16 = vpack.c.b16 %v4577_v50, %v4576_v56 }
 0x23f   : > { %5669 = vmatmul.msk.bf16.gmra.mxu3 %vm302_vm2, %v4098_v14  ;;  %5750 = vmatmul.msk.bf16.gmra.mxu0 %vm302_vm2, %v4592_v12  ;;  %v3472_v39 = vpop.f32.mrf.mxu2  ;;  %v3027_v14 = vpack.c.b16 %v3011_v8, %v3010_v52 }
 0x240   : > { %4970 = vst.msk [vmem:[%s7410_s9 + $0x1c] sm:$0xf] %vm4962_vm10, %v4937_v40  ;;  %v4743_v51 = vld [vmem:[#allocation2 + $0x48] sm:$0xff] }
 0x241   : > { %v4838_v45 = vld [vmem:[#allocation2 + $0x40] sm:$0xff]  ;;  %4314 = vst.msk [vmem:[#allocation2 + $0x50] sm:$0xff] %vm447_vm9, %v4282_v0  ;;  %v4775_v9 = vadd.f32 %v4743_v51, %v7509_v37  ;;  %v3120_v47 = vpop.f32.mrf.mxu1 }
 0x242   : > { %v4190_v55 = vpop.f32.mrf.mxu3  ;;  %v4874_v30 = vadd.f32 %v7366_v28, %v4838_v45  ;;  %v3213_v27 = vadd.f32 %v3181_v32, %v3120_v47 }
 0x243   : > { %4807 = vst.msk [vmem:[#allocation2 + $0x48] sm:$0xff] %vm447_vm9, %v4775_v9  ;;  %v3534_v37 = vld [vmem:[#allocation2 + $0x60] sm:$0xff] }
 0x244   : > { %v7623_v49 = vpop.f32.mrf.mxu0  ;;  %v4906_v54 = vmax.f32 %v4874_v30, 0.0  ;;  %v3566_v57 = vadd.f32 %v3534_v37, %v3472_v39  ;;  %3245 = vst.msk [vmem:[#allocation2 + $0x68] sm:$0xff] %vm447_vm9, %v3213_v27 }
 0x245   : > { %v4251_v18 = vld [vmem:[#allocation2 + $0x58] sm:$0xff] }
 0x246   : > { %v4938_v41 = vpack.c.bf16 %v4906_v54, %v4906_v54  ;;  %v4283_v44 = vadd.f32 %v4251_v18, %v7587_v6  ;;  %3598 = vst.msk [vmem:[#allocation2 + $0x60] sm:$0xff] %vm447_vm9, %v3566_v57 }
 0x247   : > { %v3474_v13 = vpop.f32.mrf.mxu2 }
 0x248   : > { %4971 = vst.msk [vmem:[%s7410_s9 + $0x20] sm:$0xf] %vm4962_vm10, %v4938_v41  ;;  %v4744_v2 = vld [vmem:[#allocation2 + $0x50] sm:$0xff]  ;;  %v3185_v41 = vld [vmem:[#allocation2 + $0x88] sm:$0xff] }
 0x249   : > { %4315 = vst.msk [vmem:[#allocation2 + $0x58] sm:$0xff] %vm447_vm9, %v4283_v44  ;;  %v4776_v34 = vadd.f32 %v4744_v2, %v7537_v22  ;;  %v3123_v17 = vpop.f32.mrf.mxu1 }
 0x24a   : > { %v4192_v36 = vpop.f32.mrf.mxu3  ;;  %v4839_v19 = vld [vmem:[#allocation2 + $0x48] sm:$0xff]  ;;  %v3214_v6 = vadd.f32 %v3182_v62, %v3123_v17 }
 0x24b   : > { %v4875_v61 = vadd.f32 %v7366_v28, %v4839_v19  ;;  %4808 = vst.msk [vmem:[#allocation2 + $0x50] sm:$0xff] %vm447_vm9, %v4776_v34  ;;  %v3535_v12 = vld [vmem:[#allocation2 + $0x68] sm:$0xff] }
 0x24c   : > { %v7639_v20 = vpop.f32.mrf.mxu0  ;;  %v3567_v25 = vadd.f32 %v3535_v12, %v3474_v13  ;;  %3246 = vst.msk [vmem:[#allocation2 + $0x70] sm:$0xff] %vm447_vm9, %v3214_v6  ;;  %5492 = vmatmul.msk.bf16.gmra.mxu1 %vm302_vm2, %v3027_v14  ;;  %5605 = vmatmul.msk.bf16.gmra.mxu2 %vm302_vm2, %v5804_v35  ;;  %v3186_v6 = vld [vmem:[#allocation2 + $0x90] sm:$0xff] }
 0x24d   : > { %v4907_v22 = vmax.f32 %v4875_v61, 0.0  ;;  %v4252_v43 = vld [vmem:[#allocation2 + $0x60] sm:$0xff] }
 0x24e   : > { %v4284_v1 = vadd.f32 %v4252_v43, %v4190_v55  ;;  %3599 = vst.msk [vmem:[#allocation2 + $0x68] sm:$0xff] %vm447_vm9, %v3567_v25 }
 0x24f   : > { %5670 = vmatmul.msk.bf16.gmra.mxu3 %vm302_vm2, %v4099_v7  ;;  %5751 = vmatmul.msk.bf16.gmra.mxu0 %vm302_vm2, %v4593_v16  ;;  %v4939_v42 = vpack.c.bf16 %v4907_v22, %v4907_v22  ;;  %v3477_v48 = vpop.f32.mrf.mxu2  ;;  %v7684_v16 = vld [vmem:[%s7856_s2] ss:$0 sm:$0xff] }
 0x250   : > { %4316 = vst.msk [vmem:[#allocation2 + $0x60] sm:$0xff] %vm447_vm9, %v4284_v1  ;;  %v4745_v5 = vld [vmem:[#allocation2 + $0x58] sm:$0xff] }
 0x251   : > { %4972 = vst.msk [vmem:[%s7410_s9 + $0x24] sm:$0xf] %vm4962_vm10, %v4939_v42  ;;  %v4777_v33 = vadd.f32 %v4745_v5, %v7568_v38  ;;  %v3125_v63 = vpop.f32.mrf.mxu1 }
 0x252   : > { %v4195_v3 = vpop.f32.mrf.mxu3  ;;  %v4840_v40 = vld [vmem:[#allocation2 + $0x50] sm:$0xff]  ;;  %v3215_v0 = vadd.f32 %v3183_v58, %v3125_v63 }
 0x253   : > { %v4876_v26 = vadd.f32 %v7366_v28, %v4840_v40  ;;  %4809 = vst.msk [vmem:[#allocation2 + $0x58] sm:$0xff] %vm447_vm9, %v4777_v33  ;;  %v3536_v46 = vld [vmem:[#allocation2 + $0x70] sm:$0xff] }
 0x254   : > { %v7653_v39 = vpop.f32.mrf.mxu0  ;;  %v3568_v60 = vadd.f32 %v3536_v46, %v3477_v48  ;;  %3247 = vst.msk [vmem:[#allocation2 + $0x78] sm:$0xff] %vm447_vm9, %v3215_v0  ;;  %v3187_v0 = vld [vmem:[#allocation2 + $0x98] sm:$0xff] }
 0x255   : > { %v4908_v21 = vmax.f32 %v4876_v26, 0.0  ;;  %v4253_v23 = vld [vmem:[#allocation2 + $0x68] sm:$0xff] }
 0x256   : > { %v4285_v51 = vadd.f32 %v4253_v23, %v4192_v36  ;;  %3600 = vst.msk [vmem:[#allocation2 + $0x70] sm:$0xff] %vm447_vm9, %v3568_v60 }
 0x257   : > { %v4940_v38 = vpack.c.bf16 %v4908_v21, %v4908_v21  ;;  %v4746_v55 = vld [vmem:[#allocation2 + $0x60] sm:$0xff]  ;;  %v3479_v45 = vpop.f32.mrf.mxu2 }
 0x258   : > { %4317 = vst.msk [vmem:[#allocation2 + $0x68] sm:$0xff] %vm447_vm9, %v4285_v51  ;;  %v4778_v9 = vadd.f32 %v4746_v55, %v7597_v29 }
 0x259   : > { %4973 = vst.msk [vmem:[%s7410_s9 + $0x28] sm:$0xf] %vm4962_vm10, %v4940_v38  ;;  %v3128_v32 = vpop.f32.mrf.mxu1 }
 0x25a   : > { %v4197_v47 = vpop.f32.mrf.mxu3  ;;  %v4841_v10 = vld [vmem:[#allocation2 + $0x58] sm:$0xff]  ;;  %4810 = vst.msk [vmem:[#allocation2 + $0x60] sm:$0xff] %vm447_vm9, %v4778_v9  ;;  %v3216_v30 = vadd.f32 %v3184_v31, %v3128_v32 }
 0x25b   : > { %v4877_v27 = vadd.f32 %v7366_v28, %v4841_v10  ;;  %v3537_v11 = vld [vmem:[#allocation2 + $0x78] sm:$0xff]  ;;  %v3188_v10 = vld [vmem:[#allocation2 + $0xa0] sm:$0xff] }
 0x25c   : > { %v7663_v53 = vpop.f32.mrf.mxu0  ;;  %v3569_v37 = vadd.f32 %v3537_v11, %v3479_v45  ;;  %3248 = vst.msk [vmem:[#allocation2 + $0x80] sm:$0xff] %vm447_vm9, %v3216_v30 }
 0x25d   : > { %v4909_v4 = vmax.f32 %v4877_v27, 0.0  ;;  %v4254_v29 = vld [vmem:[#allocation2 + $0x70] sm:$0xff] }
 0x25e   : > { %v4286_v15 = vadd.f32 %v4254_v29, %v4195_v3  ;;  %3601 = vst.msk [vmem:[#allocation2 + $0x78] sm:$0xff] %vm447_vm9, %v3569_v37 }
 0x25f   : > { %v4941_v54 = vpack.c.bf16 %v4909_v4, %v4909_v4  ;;  %v4747_v57 = vld [vmem:[#allocation2 + $0x68] sm:$0xff]  ;;  %v3482_v52 = vpop.f32.mrf.mxu2 }
 0x260   : > { %4318 = vst.msk [vmem:[#allocation2 + $0x70] sm:$0xff] %vm447_vm9, %v4286_v15  ;;  %v4779_v8 = vadd.f32 %v4747_v57, %v7623_v49 }
 0x261   : > { %4974 = vst.msk [vmem:[%s7410_s9 + $0x2c] sm:$0xf] %vm4962_vm10, %v4941_v54  ;;  %v4842_v59 = vld [vmem:[#allocation2 + $0x60] sm:$0xff]  ;;  %v3130_v24 = vpop.f32.mrf.mxu1 }
 0x262   : > { %v4200_v18 = vpop.f32.mrf.mxu3  ;;  %v4878_v44 = vadd.f32 %v7366_v28, %v4842_v59  ;;  %4811 = vst.msk [vmem:[#allocation2 + $0x68] sm:$0xff] %vm447_vm9, %v4779_v8  ;;  %v3217_v56 = vadd.f32 %v3185_v41, %v3130_v24  ;;  %v3189_v41 = vld [vmem:[#allocation2 + $0xa8] sm:$0xff] }
 0x263   : > { %v3538_v50 = vld [vmem:[#allocation2 + $0x80] sm:$0xff] }
 0x264   : > { %v7673_v13 = vpop.f32.mrf.mxu0  ;;  %v4910_v2 = vmax.f32 %v4878_v44, 0.0  ;;  %v3570_v14 = vadd.f32 %v3538_v50, %v3482_v52  ;;  %3249 = vst.msk [vmem:[#allocation2 + $0x88] sm:$0xff] %vm447_vm9, %v3217_v56 }
 0x265   : > { %v4255_v49 = vld [vmem:[#allocation2 + $0x78] sm:$0xff] }
 0x266   : > { %v4942_v35 = vpack.c.bf16 %v4910_v2, %v4910_v2  ;;  %v4287_v36 = vadd.f32 %v4255_v49, %v4197_v47  ;;  %3602 = vst.msk [vmem:[#allocation2 + $0x80] sm:$0xff] %vm447_vm9, %v3570_v14 }
 0x267   : > { %v4748_v34 = vld [vmem:[#allocation2 + $0x70] sm:$0xff]  ;;  %v3484_v17 = vpop.f32.mrf.mxu2 }
 0x268   : > { %4975 = vst.msk [vmem:[%s7410_s9 + $0x30] sm:$0xf] %vm4962_vm10, %v4942_v35  ;;  %v4780_v28 = vadd.f32 %v4748_v34, %v7639_v20 }
 0x269   : > { %v4843_v7 = vld [vmem:[#allocation2 + $0x68] sm:$0xff]  ;;  %4319 = vst.msk [vmem:[#allocation2 + $0x78] sm:$0xff] %vm447_vm9, %v4287_v36  ;;  %v3133_v19 = vpop.f32.mrf.mxu1 }
 0x26a   : > { %v4202_v62 = vpop.f32.mrf.mxu3  ;;  %v4879_v61 = vadd.f32 %v7684_v16, %v4843_v7  ;;  %4812 = vst.msk [vmem:[#allocation2 + $0x70] sm:$0xff] %vm447_vm9, %v4780_v28  ;;  %v3218_v12 = vadd.f32 %v3186_v6, %v3133_v19  ;;  %v3190_v19 = vld [vmem:[#allocation2 + $0xb0] sm:$0xff] }
 0x26b   : > { %v3539_v25 = vld [vmem:[#allocation2 + $0x88] sm:$0xff] }
 0x26c   : > { %v4911_v22 = vmax.f32 %v4879_v61, 0.0  ;;  %v3571_v20 = vadd.f32 %v3539_v25, %v3484_v17  ;;  %3250 = vst.msk [vmem:[#allocation2 + $0x90] sm:$0xff] %vm447_vm9, %v3218_v12  ;;  %v7689_v43 = vpop.f32.mrf.mxu0 }
 0x26d   : > { %v4256_v1 = vld [vmem:[#allocation2 + $0x80] sm:$0xff] }
 0x26e   : > { %v4943_v42 = vpack.c.bf16 %v4911_v22, %v4911_v22  ;;  %v4288_v48 = vadd.f32 %v4256_v1, %v4200_v18  ;;  %3603 = vst.msk [vmem:[#allocation2 + $0x88] sm:$0xff] %vm447_vm9, %v3571_v20 }
 0x26f   : > { %v3487_v5 = vpop.f32.mrf.mxu2 }
 0x270   : > { %4976 = vst.msk [vmem:[%s7410_s9 + $0x34] sm:$0xf] %vm4962_vm10, %v4943_v42  ;;  %v4749_v3 = vld [vmem:[#allocation2 + $0x78] sm:$0xff] }
 0x271   : > { %v4844_v63 = vld [vmem:[#allocation2 + $0x70] sm:$0xff]  ;;  %4320 = vst.msk [vmem:[#allocation2 + $0x80] sm:$0xff] %vm447_vm9, %v4288_v48  ;;  %v4781_v58 = vadd.f32 %v4749_v3, %v7653_v39  ;;  %v3135_v40 = vpop.f32.mrf.mxu1 }
 0x272   : > { %v4205_v33 = vpop.f32.mrf.mxu3  ;;  %v4880_v26 = vadd.f32 %v7684_v16, %v4844_v63  ;;  %v3219_v46 = vadd.f32 %v3187_v0, %v3135_v40  ;;  %v3191_v0 = vld [vmem:[#allocation2 + $0xb8] sm:$0xff] }
 0x273   : > { %4813 = vst.msk [vmem:[#allocation2 + $0x78] sm:$0xff] %vm447_vm9, %v4781_v58  ;;  %v3540_v60 = vld [vmem:[#allocation2 + $0x90] sm:$0xff] }
 0x274   : > { %v4912_v21 = vmax.f32 %v4880_v26, 0.0  ;;  %v3572_v23 = vadd.f32 %v3540_v60, %v3487_v5  ;;  %3251 = vst.msk [vmem:[#allocation2 + $0x98] sm:$0xff] %vm447_vm9, %v3219_v46  ;;  %v7700_v45 = vpop.f32.mrf.mxu0 }
 0x275   : > { %v4257_v51 = vld [vmem:[#allocation2 + $0x88] sm:$0xff] }
 0x276   : > { %v4944_v38 = vpack.c.bf16 %v4912_v21, %v4912_v21  ;;  %v4289_v55 = vadd.f32 %v4257_v51, %v4202_v62  ;;  %3604 = vst.msk [vmem:[#allocation2 + $0x90] sm:$0xff] %vm447_vm9, %v3572_v23 }
 0x277   : > { %v3489_v39 = vpop.f32.mrf.mxu2 }
 0x278   : > { %4977 = vst.msk [vmem:[%s7410_s9 + $0x38] sm:$0xf] %vm4962_vm10, %v4944_v38  ;;  %v4750_v9 = vld [vmem:[#allocation2 + $0x80] sm:$0xff] }
 0x279   : > { %4321 = vst.msk [vmem:[#allocation2 + $0x88] sm:$0xff] %vm447_vm9, %v4289_v55  ;;  %v4782_v32 = vadd.f32 %v4750_v9, %v7663_v53  ;;  %v3138_v31 = vpop.f32.mrf.mxu1 }
 0x27a   : > { %v4207_v47 = vpop.f32.mrf.mxu3  ;;  %v4845_v30 = vld [vmem:[#allocation2 + $0x78] sm:$0xff]  ;;  %v3220_v27 = vadd.f32 %v3188_v10, %v3138_v31 }
 0x27b   : > { %v4881_v11 = vadd.f32 %v7684_v16, %v4845_v30  ;;  %4814 = vst.msk [vmem:[#allocation2 + $0x80] sm:$0xff] %vm447_vm9, %v4782_v32  ;;  %v3541_v37 = vld [vmem:[#allocation2 + $0x98] sm:$0xff]  ;;  %v3192_v30 = vld [vmem:[#allocation2 + $0xc0] sm:$0xff] }
 0x27c   : > { %v3573_v4 = vadd.f32 %v3541_v37, %v3489_v39  ;;  %3252 = vst.msk [vmem:[#allocation2 + $0xa0] sm:$0xff] %vm447_vm9, %v3220_v27  ;;  %v4704_v18 = vpop.f32.mrf.mxu0 }
 0x27d   : > { %v4913_v29 = vmax.f32 %v4881_v11, 0.0  ;;  %v4258_v15 = vld [vmem:[#allocation2 + $0x90] sm:$0xff] }
 0x27e   : > { %v4290_v54 = vadd.f32 %v4258_v15, %v4205_v33  ;;  %3605 = vst.msk [vmem:[#allocation2 + $0x98] sm:$0xff] %vm447_vm9, %v3573_v4 }
 0x27f   : > { %v4945_v57 = vpack.c.bf16 %v4913_v29, %v4913_v29  ;;  %v3492_v53 = vpop.f32.mrf.mxu2 }
 0x280   : > { %4322 = vst.msk [vmem:[#allocation2 + $0x90] sm:$0xff] %vm447_vm9, %v4290_v54  ;;  %v4751_v52 = vld [vmem:[#allocation2 + $0x88] sm:$0xff] }
 0x281   : > { %4978 = vst.msk [vmem:[%s7410_s9 + $0x3c] sm:$0xf] %vm4962_vm10, %v4945_v57  ;;  %v4783_v59 = vadd.f32 %v4751_v52, %v7673_v13  ;;  %v3140_v24 = vpop.f32.mrf.mxu1 }
 0x282   : > { %v4210_v8 = vpop.f32.mrf.mxu3  ;;  %v4846_v44 = vld [vmem:[#allocation2 + $0x80] sm:$0xff]  ;;  %v3221_v56 = vadd.f32 %v3189_v41, %v3140_v24 }
 0x283   : > { %v4882_v50 = vadd.f32 %v7684_v16, %v4846_v44  ;;  %4815 = vst.msk [vmem:[#allocation2 + $0x88] sm:$0xff] %vm447_vm9, %v4783_v59  ;;  %v3542_v2 = vld [vmem:[#allocation2 + $0xa0] sm:$0xff]  ;;  %v3193_v44 = vld [vmem:[#allocation2 + $0xc8] sm:$0xff] }
 0x284   : > { %v3574_v14 = vadd.f32 %v3542_v2, %v3492_v53  ;;  %3253 = vst.msk [vmem:[#allocation2 + $0xa8] sm:$0xff] %vm447_vm9, %v3221_v56  ;;  %v4706_v12 = vpop.f32.mrf.mxu0 }
 0x285   : > { %v4914_v49 = vmax.f32 %v4882_v50, 0.0  ;;  %v4259_v35 = vld [vmem:[#allocation2 + $0x98] sm:$0xff] }
 0x286   : > { %v4291_v36 = vadd.f32 %v4259_v35, %v4207_v47  ;;  %3606 = vst.msk [vmem:[#allocation2 + $0xa0] sm:$0xff] %vm447_vm9, %v3574_v14 }
 0x287   : > { %v4946_v34 = vpack.c.bf16 %v4914_v49, %v4914_v49  ;;  %v4752_v13 = vld [vmem:[#allocation2 + $0x90] sm:$0xff]  ;;  %v3494_v17 = vpop.f32.mrf.mxu2 }
 0x288   : > { %4323 = vst.msk [vmem:[#allocation2 + $0x98] sm:$0xff] %vm447_vm9, %v4291_v36  ;;  %v4784_v28 = vadd.f32 %v4752_v13, %v7689_v43 }
 0x289   : > { %4979 = vst.msk [vmem:[%s7410_s9 + $0x40] sm:$0xf] %vm4962_vm10, %v4946_v34  ;;  %v3143_v7 = vpop.f32.mrf.mxu1 }
 0x28a   : > { %v4212_v62 = vpop.f32.mrf.mxu3  ;;  %v4847_v6 = vld [vmem:[#allocation2 + $0x88] sm:$0xff]  ;;  %4816 = vst.msk [vmem:[#allocation2 + $0x90] sm:$0xff] %vm447_vm9, %v4784_v28  ;;  %v3222_v61 = vadd.f32 %v3190_v19, %v3143_v7 }
 0x28b   : > { %v4883_v25 = vadd.f32 %v7684_v16, %v4847_v6  ;;  %v3543_v22 = vld [vmem:[#allocation2 + $0xa8] sm:$0xff]  ;;  %v3194_v6 = vld [vmem:[#allocation2 + $0xd0] sm:$0xff] }
 0x28c   : > { %v3575_v20 = vadd.f32 %v3543_v22, %v3494_v17  ;;  %3254 = vst.msk [vmem:[#allocation2 + $0xb0] sm:$0xff] %vm447_vm9, %v3222_v61  ;;  %v4709_v51 = vpop.f32.mrf.mxu0 }
 0x28d   : > { %v4915_v1 = vmax.f32 %v4883_v25, 0.0  ;;  %v4260_v42 = vld [vmem:[#allocation2 + $0xa0] sm:$0xff] }
 0x28e   : > { %v4292_v43 = vadd.f32 %v4260_v42, %v4210_v8  ;;  %3607 = vst.msk [vmem:[#allocation2 + $0xa8] sm:$0xff] %vm447_vm9, %v3575_v20 }
 0x28f   : > { %v4947_v48 = vpack.c.bf16 %v4915_v1, %v4915_v1  ;;  %v4753_v5 = vld [vmem:[#allocation2 + $0x98] sm:$0xff]  ;;  %v3497_v3 = vpop.f32.mrf.mxu2 }
 0x290   : > { %4324 = vst.msk [vmem:[#allocation2 + $0xa0] sm:$0xff] %vm447_vm9, %v4292_v43  ;;  %v4785_v33 = vadd.f32 %v4753_v5, %v7700_v45 }
 0x291   : > { %4980 = vst.msk [vmem:[%s7410_s9 + $0x44] sm:$0xf] %vm4962_vm10, %v4947_v48  ;;  %v4848_v58 = vld [vmem:[#allocation2 + $0x90] sm:$0xff]  ;;  %v3145_v40 = vpop.f32.mrf.mxu1 }
 0x292   : > { %v4215_v63 = vpop.f32.mrf.mxu3  ;;  %v4884_v26 = vadd.f32 %v7684_v16, %v4848_v58  ;;  %4817 = vst.msk [vmem:[#allocation2 + $0x98] sm:$0xff] %vm447_vm9, %v4785_v33  ;;  %v3223_v46 = vadd.f32 %v3191_v0, %v3145_v40  ;;  %v3195_v58 = vld [vmem:[#allocation2 + $0xd8] sm:$0xff] }
 0x293   : > { %v3544_v60 = vld [vmem:[#allocation2 + $0xb0] sm:$0xff] }
 0x294   : > { %v4916_v21 = vmax.f32 %v4884_v26, 0.0  ;;  %v3576_v23 = vadd.f32 %v3544_v60, %v3497_v3  ;;  %3255 = vst.msk [vmem:[#allocation2 + $0xb8] sm:$0xff] %vm447_vm9, %v3223_v46  ;;  %v4711_v53 = vpop.f32.mrf.mxu0 }
 0x295   : > { %v4261_v38 = vld [vmem:[#allocation2 + $0xa8] sm:$0xff] }
 0x296   : > { %v4948_v55 = vpack.c.bf16 %v4916_v21, %v4916_v21  ;;  %v4293_v45 = vadd.f32 %v4261_v38, %v4212_v62  ;;  %3608 = vst.msk [vmem:[#allocation2 + $0xb0] sm:$0xff] %vm447_vm9, %v3576_v23 }
 0x297   : > { %v4754_v39 = vld [vmem:[#allocation2 + $0xa0] sm:$0xff]  ;;  %v3499_v9 = vpop.f32.mrf.mxu2 }
 0x298   : > { %4981 = vst.msk [vmem:[%s7410_s9 + $0x48] sm:$0xf] %vm4962_vm10, %v4948_v55  ;;  %v4786_v47 = vadd.f32 %v4754_v39, %v4704_v18 }
 0x299   : > { %v4849_v31 = vld [vmem:[#allocation2 + $0x98] sm:$0xff]  ;;  %4325 = vst.msk [vmem:[#allocation2 + $0xa8] sm:$0xff] %vm447_vm9, %v4293_v45  ;;  %v3148_v10 = vpop.f32.mrf.mxu1 }
 0x29a   : > { %v4217_v32 = vpop.f32.mrf.mxu3  ;;  %v4885_v27 = vadd.f32 %v7684_v16, %v4849_v31  ;;  %4818 = vst.msk [vmem:[#allocation2 + $0xa0] sm:$0xff] %vm447_vm9, %v4786_v47  ;;  %v3224_v11 = vadd.f32 %v3192_v30, %v3148_v10  ;;  %v3196_v31 = vld [vmem:[#allocation2 + $0xe0] sm:$0xff] }
 0x29b   : > { %v3545_v37 = vld [vmem:[#allocation2 + $0xb8] sm:$0xff] }
 0x29c   : > { %v4917_v4 = vmax.f32 %v4885_v27, 0.0  ;;  %v3577_v29 = vadd.f32 %v3545_v37, %v3499_v9  ;;  %3256 = vst.msk [vmem:[#allocation2 + $0xc0] sm:$0xff] %vm447_vm9, %v3224_v11  ;;  %v4714_v62 = vpop.f32.mrf.mxu0 }
 0x29d   : > { %v4262_v15 = vld [vmem:[#allocation2 + $0xb0] sm:$0xff] }
 0x29e   : > { %v4949_v54 = vpack.c.bf16 %v4917_v4, %v4917_v4  ;;  %v4294_v57 = vadd.f32 %v4262_v15, %v4215_v63  ;;  %3609 = vst.msk [vmem:[#allocation2 + $0xb8] sm:$0xff] %vm447_vm9, %v3577_v29 }
 0x29f   : > { %v3502_v52 = vpop.f32.mrf.mxu2 }
 0x2a0   : > { %4982 = vst.msk [vmem:[%s7410_s9 + $0x4c] sm:$0xf] %vm4962_vm10, %v4949_v54  ;;  %v4755_v8 = vld [vmem:[#allocation2 + $0xa8] sm:$0xff] }
 0x2a1   : > { %v4850_v59 = vld [vmem:[#allocation2 + $0xa0] sm:$0xff]  ;;  %4326 = vst.msk [vmem:[#allocation2 + $0xb0] sm:$0xff] %vm447_vm9, %v4294_v57  ;;  %v4787_v24 = vadd.f32 %v4755_v8, %v4706_v12  ;;  %v3150_v41 = vpop.f32.mrf.mxu1 }
 0x2a2   : > { %v4220_v18 = vpop.f32.mrf.mxu3  ;;  %v4886_v56 = vadd.f32 %v7684_v16, %v4850_v59  ;;  %v3225_v50 = vadd.f32 %v3193_v44, %v3150_v41  ;;  %v3197_v41 = vld [vmem:[#allocation2 + $0xe8] sm:$0xff] }
 0x2a3   : > { %4819 = vst.msk [vmem:[#allocation2 + $0xa8] sm:$0xff] %vm447_vm9, %v4787_v24  ;;  %v3546_v2 = vld [vmem:[#allocation2 + $0xc0] sm:$0xff] }
 0x2a4   : > { %v4918_v14 = vmax.f32 %v4886_v56, 0.0  ;;  %v3578_v49 = vadd.f32 %v3546_v2, %v3502_v52  ;;  %3257 = vst.msk [vmem:[#allocation2 + $0xc8] sm:$0xff] %vm447_vm9, %v3225_v50  ;;  %v4716_v46 = vpop.f32.mrf.mxu0 }
 0x2a5   : > { %v4263_v35 = vld [vmem:[#allocation2 + $0xb8] sm:$0xff] }
 0x2a6   : > { %v4950_v36 = vpack.c.bf16 %v4918_v14, %v4918_v14  ;;  %v4295_v34 = vadd.f32 %v4263_v35, %v4217_v32  ;;  %3610 = vst.msk [vmem:[#allocation2 + $0xc0] sm:$0xff] %vm447_vm9, %v3578_v49 }
 0x2a7   : > { %v3504_v13 = vpop.f32.mrf.mxu2 }
 0x2a8   : > { %4983 = vst.msk [vmem:[%s7410_s9 + $0x50] sm:$0xf] %vm4962_vm10, %v4950_v36  ;;  %v4756_v17 = vld [vmem:[#allocation2 + $0xb0] sm:$0xff] }
 0x2a9   : > { %4327 = vst.msk [vmem:[#allocation2 + $0xb8] sm:$0xff] %vm447_vm9, %v4295_v34  ;;  %v4788_v7 = vadd.f32 %v4756_v17, %v4709_v51  ;;  %v3153_v19 = vpop.f32.mrf.mxu1 }
 0x2aa   : > { %v4222_v28 = vpop.f32.mrf.mxu3  ;;  %v4851_v61 = vld [vmem:[#allocation2 + $0xa8] sm:$0xff]  ;;  %v3226_v12 = vadd.f32 %v3194_v6, %v3153_v19  ;;  %v3198_v6 = vld [vmem:[#allocation2 + $0xf0] sm:$0xff] }
 0x2ab   : > { %v4887_v25 = vadd.f32 %v7684_v16, %v4851_v61  ;;  %4820 = vst.msk [vmem:[#allocation2 + $0xb0] sm:$0xff] %vm447_vm9, %v4788_v7  ;;  %v3547_v22 = vld [vmem:[#allocation2 + $0xc8] sm:$0xff] }
 0x2ac   : > { %v3579_v20 = vadd.f32 %v3547_v22, %v3504_v13  ;;  %3258 = vst.msk [vmem:[#allocation2 + $0xd0] sm:$0xff] %vm447_vm9, %v3226_v12  ;;  %v4719_v29 = vpop.f32.mrf.mxu0 }
 0x2ad   : > { %v4919_v1 = vmax.f32 %v4887_v25, 0.0  ;;  %v4264_v42 = vld [vmem:[#allocation2 + $0xc0] sm:$0xff] }
 0x2ae   : > { %v4296_v43 = vadd.f32 %v4264_v42, %v4220_v18  ;;  %3611 = vst.msk [vmem:[#allocation2 + $0xc8] sm:$0xff] %vm447_vm9, %v3579_v20 }
 0x2af   : > { %v4951_v48 = vpack.c.bf16 %v4919_v1, %v4919_v1  ;;  %v3507_v5 = vpop.f32.mrf.mxu2 }
 0x2b0   : > { %4328 = vst.msk [vmem:[#allocation2 + $0xc0] sm:$0xff] %vm447_vm9, %v4296_v43  ;;  %v4757_v3 = vld [vmem:[#allocation2 + $0xb8] sm:$0xff] }
 0x2b1   : > { %4984 = vst.msk [vmem:[%s7410_s9 + $0x54] sm:$0xf] %vm4962_vm10, %v4951_v48  ;;  %v4789_v33 = vadd.f32 %v4757_v3, %v4711_v53  ;;  %v3155_v63 = vpop.f32.mrf.mxu1 }
 0x2b2   : > { %v4852_v40 = vld [vmem:[#allocation2 + $0xb0] sm:$0xff]  ;;  %v3227_v0 = vadd.f32 %v3195_v58, %v3155_v63  ;;  %v4225_v26 = vpop.f32.mrf.mxu3 }
 0x2b3   : > { %v4888_v60 = vadd.f32 %v7684_v16, %v4852_v40  ;;  %4821 = vst.msk [vmem:[#allocation2 + $0xb8] sm:$0xff] %vm447_vm9, %v4789_v33  ;;  %v3548_v21 = vld [vmem:[#allocation2 + $0xd0] sm:$0xff] }
 0x2b4   : > { %v3580_v23 = vadd.f32 %v3548_v21, %v3507_v5  ;;  %3259 = vst.msk [vmem:[#allocation2 + $0xd8] sm:$0xff] %vm447_vm9, %v3227_v0  ;;  %v4721_v13 = vpop.f32.mrf.mxu0  ;;  %v3199_v0 = vld [vmem:[#allocation2 + $0xf8] sm:$0xff] }
 0x2b5   : > { %v4920_v51 = vmax.f32 %v4888_v60, 0.0  ;;  %v4265_v38 = vld [vmem:[#allocation2 + $0xc8] sm:$0xff] }
 0x2b6   : > { %v4297_v55 = vadd.f32 %v4265_v38, %v4222_v28  ;;  %3612 = vst.msk [vmem:[#allocation2 + $0xd0] sm:$0xff] %vm447_vm9, %v3580_v23 }
 0x2b7   : > { %v4952_v45 = vpack.c.bf16 %v4920_v51, %v4920_v51  ;;  %v4758_v39 = vld [vmem:[#allocation2 + $0xc0] sm:$0xff]  ;;  %v3509_v9 = vpop.f32.mrf.mxu2 }
 0x2b8   : > { %4329 = vst.msk [vmem:[#allocation2 + $0xc8] sm:$0xff] %vm447_vm9, %v4297_v55  ;;  %v4790_v47 = vadd.f32 %v4758_v39, %v4714_v62 }
 0x2b9   : > { %4985 = vst.msk [vmem:[%s7410_s9 + $0x58] sm:$0xf] %vm4962_vm10, %v4952_v45  ;;  %v3158_v32 = vpop.f32.mrf.mxu1 }
 0x2ba   : > { %v4853_v10 = vld [vmem:[#allocation2 + $0xb8] sm:$0xff]  ;;  %4822 = vst.msk [vmem:[#allocation2 + $0xc0] sm:$0xff] %vm447_vm9, %v4790_v47  ;;  %v3228_v30 = vadd.f32 %v3196_v31, %v3158_v32  ;;  %v4227_v4 = vpop.f32.mrf.mxu3 }
 0x2bb   : > { %v4889_v27 = vadd.f32 %v7684_v16, %v4853_v10  ;;  %v3549_v11 = vld [vmem:[#allocation2 + $0xd8] sm:$0xff] }
 0x2bc   : > { %v3581_v37 = vadd.f32 %v3549_v11, %v3509_v9  ;;  %3260 = vst.msk [vmem:[#allocation2 + $0xe0] sm:$0xff] %vm447_vm9, %v3228_v30  ;;  %v4724_v3 = vpop.f32.mrf.mxu0 }
 0x2bd   : > { %v4921_v15 = vmax.f32 %v4889_v27, 0.0  ;;  %v4266_v54 = vld [vmem:[#allocation2 + $0xd0] sm:$0xff] }
 0x2be   : > { %v4298_v57 = vadd.f32 %v4266_v54, %v4225_v26  ;;  %3613 = vst.msk [vmem:[#allocation2 + $0xd8] sm:$0xff] %vm447_vm9, %v3581_v37 }
 0x2bf   : > { %v4953_v53 = vpack.c.bf16 %v4921_v15, %v4921_v15  ;;  %v4759_v52 = vld [vmem:[#allocation2 + $0xc8] sm:$0xff]  ;;  %v3512_v8 = vpop.f32.mrf.mxu2 }
 0x2c0   : > { %4330 = vst.msk [vmem:[#allocation2 + $0xd0] sm:$0xff] %vm447_vm9, %v4298_v57  ;;  %v4791_v18 = vadd.f32 %v4759_v52, %v4716_v46 }
 0x2c1   : > { %4986 = vst.msk [vmem:[%s7410_s9 + $0x5c] sm:$0xf] %vm4962_vm10, %v4953_v53  ;;  %v4854_v59 = vld [vmem:[#allocation2 + $0xc0] sm:$0xff]  ;;  %v3160_v24 = vpop.f32.mrf.mxu1 }
 0x2c2   : > { %v4890_v44 = vadd.f32 %v7684_v16, %v4854_v59  ;;  %4823 = vst.msk [vmem:[#allocation2 + $0xc8] sm:$0xff] %vm447_vm9, %v4791_v18  ;;  %v3229_v56 = vadd.f32 %v3197_v41, %v3160_v24  ;;  %v4230_v34 = vpop.f32.mrf.mxu3 }
 0x2c3   : > { %v3550_v50 = vld [vmem:[#allocation2 + $0xe0] sm:$0xff] }
 0x2c4   : > { %v4922_v2 = vmax.f32 %v4890_v44, 0.0  ;;  %v3582_v14 = vadd.f32 %v3550_v50, %v3512_v8  ;;  %3261 = vst.msk [vmem:[#allocation2 + $0xe8] sm:$0xff] %vm447_vm9, %v3229_v56  ;;  %v4726_v47 = vpop.f32.mrf.mxu0 }
 0x2c5   : > { %v4267_v49 = vld [vmem:[#allocation2 + $0xd8] sm:$0xff] }
 0x2c6   : > { %v4954_v35 = vpack.c.bf16 %v4922_v2, %v4922_v2  ;;  %v4299_v36 = vadd.f32 %v4267_v49, %v4227_v4  ;;  %3614 = vst.msk [vmem:[#allocation2 + $0xe0] sm:$0xff] %vm447_vm9, %v3582_v14 }
 0x2c7   : > { %v4760_v17 = vld [vmem:[#allocation2 + $0xd0] sm:$0xff]  ;;  %v3514_v28 = vpop.f32.mrf.mxu2 }
 0x2c8   : > { %4987 = vst.msk [vmem:[%s7410_s9 + $0x60] sm:$0xf] %vm4962_vm10, %v4954_v35  ;;  %v4792_v62 = vadd.f32 %v4760_v17, %v4719_v29 }
 0x2c9   : > { %v4855_v7 = vld [vmem:[#allocation2 + $0xc8] sm:$0xff]  ;;  %4331 = vst.msk [vmem:[#allocation2 + $0xd8] sm:$0xff] %vm447_vm9, %v4299_v36  ;;  %v3163_v19 = vpop.f32.mrf.mxu1 }
 0x2ca   : > { %v4891_v61 = vadd.f32 %v7684_v16, %v4855_v7  ;;  %4824 = vst.msk [vmem:[#allocation2 + $0xd0] sm:$0xff] %vm447_vm9, %v4792_v62  ;;  %v3230_v12 = vadd.f32 %v3198_v6, %v3163_v19  ;;  %v4232_v5 = vpop.f32.mrf.mxu3 }
 0x2cb   : > { %v3551_v25 = vld [vmem:[#allocation2 + $0xe8] sm:$0xff] }
 0x2cc   : > { %v4923_v22 = vmax.f32 %v4891_v61, 0.0  ;;  %v3583_v20 = vadd.f32 %v3551_v25, %v3514_v28  ;;  %3262 = vst.msk [vmem:[#allocation2 + $0xf0] sm:$0xff] %vm447_vm9, %v3230_v12  ;;  %v4729_v59 = vpop.f32.mrf.mxu0 }
 0x2cd   : > { %v4268_v1 = vld [vmem:[#allocation2 + $0xe0] sm:$0xff] }
 0x2ce   : > { %v4955_v42 = vpack.c.bf16 %v4923_v22, %v4923_v22  ;;  %v4300_v43 = vadd.f32 %v4268_v1, %v4230_v34  ;;  %3615 = vst.msk [vmem:[#allocation2 + $0xe8] sm:$0xff] %vm447_vm9, %v3583_v20 }
 0x2cf   : > { %v3517_v58 = vpop.f32.mrf.mxu2 }
 0x2d0   : > { %4988 = vst.msk [vmem:[%s7410_s9 + $0x64] sm:$0xf] %vm4962_vm10, %v4955_v42  ;;  %v4761_v48 = vld [vmem:[#allocation2 + $0xd8] sm:$0xff] }
 0x2d1   : > { %v4856_v33 = vld [vmem:[#allocation2 + $0xd0] sm:$0xff]  ;;  %4332 = vst.msk [vmem:[#allocation2 + $0xe0] sm:$0xff] %vm447_vm9, %v4300_v43  ;;  %v4793_v63 = vadd.f32 %v4761_v48, %v4721_v13  ;;  %v3165_v40 = vpop.f32.mrf.mxu1 }
 0x2d2   : > { %v4892_v26 = vadd.f32 %v7684_v16, %v4856_v33  ;;  %v3231_v46 = vadd.f32 %v3199_v0, %v3165_v40  ;;  %v4235_v31 = vpop.f32.mrf.mxu3 }
 0x2d3   : > { %4825 = vst.msk [vmem:[#allocation2 + $0xd8] sm:$0xff] %vm447_vm9, %v4793_v63  ;;  %v3552_v60 = vld [vmem:[#allocation2 + $0xf0] sm:$0xff] }
 0x2d4   : > { %v4924_v21 = vmax.f32 %v4892_v26, 0.0  ;;  %v3584_v23 = vadd.f32 %v3552_v60, %v3517_v58  ;;  %3263 = vst.msk [vmem:[#allocation2 + $0xf8] sm:$0xff] %vm447_vm9, %v3231_v46  ;;  %v4731_v35 = vpop.f32.mrf.mxu0 }
 0x2d5   : > { %v4269_v51 = vld [vmem:[#allocation2 + $0xe8] sm:$0xff] }
 0x2d6   : > { %v4956_v38 = vpack.c.bf16 %v4924_v21, %v4924_v21  ;;  %v4301_v55 = vadd.f32 %v4269_v51, %v4232_v5  ;;  %3616 = vst.msk [vmem:[#allocation2 + $0xf0] sm:$0xff] %vm447_vm9, %v3584_v23 }
 0x2d7   : > { %v3519_v10 = vpop.f32.mrf.mxu2 }
 0x2d8   : > { %4989 = vst.msk [vmem:[%s7410_s9 + $0x68] sm:$0xf] %vm4962_vm10, %v4956_v38  ;;  %v4762_v45 = vld [vmem:[#allocation2 + $0xe0] sm:$0xff] }
 0x2d9   : > { %4333 = vst.msk [vmem:[#allocation2 + $0xe8] sm:$0xff] %vm447_vm9, %v4301_v55  ;;  %v4794_v39 = vadd.f32 %v4762_v45, %v4724_v3 }
 0x2da   : > { %v4857_v9 = vld [vmem:[#allocation2 + $0xd8] sm:$0xff]  ;;  %v4237_v8 = vpop.f32.mrf.mxu3 }
 0x2db   : > { %v4893_v32 = vadd.f32 %v7684_v16, %v4857_v9  ;;  %4826 = vst.msk [vmem:[#allocation2 + $0xe0] sm:$0xff] %vm447_vm9, %v4794_v39  ;;  %v3553_v30 = vld [vmem:[#allocation2 + $0xf8] sm:$0xff] }
 0x2dc   : > { %v3585_v27 = vadd.f32 %v3553_v30, %v3519_v10 }
 0x2dd   : > { %v4925_v11 = vmax.f32 %v4893_v32, 0.0  ;;  %v4270_v37 = vld [vmem:[#allocation2 + $0xf0] sm:$0xff] }
 0x2de   : > { %v4302_v4 = vadd.f32 %v4270_v37, %v4235_v31  ;;  %3617 = vst.msk [vmem:[#allocation2 + $0xf8] sm:$0xff] %vm447_vm9, %v3585_v27 }
 0x2df   : > { %v4957_v29 = vpack.c.bf16 %v4925_v11, %v4925_v11 }
 0x2e0   : > { %4334 = vst.msk [vmem:[#allocation2 + $0xf0] sm:$0xff] %vm447_vm9, %v4302_v4  ;;  %v4763_v15 = vld [vmem:[#allocation2 + $0xe8] sm:$0xff] }
 0x2e1   : > { %4990 = vst.msk [vmem:[%s7410_s9 + $0x6c] sm:$0xf] %vm4962_vm10, %v4957_v29  ;;  %v4795_v54 = vadd.f32 %v4763_v15, %v4726_v47 }
 0x2e2   : > { %v4858_v57 = vld [vmem:[#allocation2 + $0xe0] sm:$0xff] }
 0x2e3   : > { %v4894_v53 = vadd.f32 %v7684_v16, %v4858_v57  ;;  %4827 = vst.msk [vmem:[#allocation2 + $0xe8] sm:$0xff] %vm447_vm9, %v4795_v54 }
 0x2e5   : > { %v4926_v52 = vmax.f32 %v4894_v53, 0.0  ;;  %v4271_v18 = vld [vmem:[#allocation2 + $0xf8] sm:$0xff] }
 0x2e6   : > { %v4303_v24 = vadd.f32 %v4271_v18, %v4237_v8 }
 0x2e7   : > { %v4958_v41 = vpack.c.bf16 %v4926_v52, %v4926_v52  ;;  %v4764_v44 = vld [vmem:[#allocation2 + $0xf0] sm:$0xff] }
 0x2e8   : > { %4335 = vst.msk [vmem:[#allocation2 + $0xf8] sm:$0xff] %vm447_vm9, %v4303_v24  ;;  %v4796_v56 = vadd.f32 %v4764_v44, %v4729_v59 }
 0x2e9   : > { %4991 = vst.msk [vmem:[%s7410_s9 + $0x70] sm:$0xf] %vm4962_vm10, %v4958_v41 }
 0x2ea   : > { %v4859_v50 = vld [vmem:[#allocation2 + $0xe8] sm:$0xff]  ;;  %4828 = vst.msk [vmem:[#allocation2 + $0xf0] sm:$0xff] %vm447_vm9, %v4796_v56 }
 0x2eb   : > { %v4895_v2 = vadd.f32 %v7684_v16, %v4859_v50 }
 0x2ed   : > { %v4927_v14 = vmax.f32 %v4895_v2, 0.0 }
 0x2ef   : > { %v4959_v49 = vpack.c.bf16 %v4927_v14, %v4927_v14  ;;  %v4765_v36 = vld [vmem:[#allocation2 + $0xf8] sm:$0xff] }
 0x2f0   : > { %v4797_v34 = vadd.f32 %v4765_v36, %v4731_v35 }
 0x2f1   : > { %4992 = vst.msk [vmem:[%s7410_s9 + $0x74] sm:$0xf] %vm4962_vm10, %v4959_v49  ;;  %v4860_v13 = vld [vmem:[#allocation2 + $0xf0] sm:$0xff] }
 0x2f2   : > { %v4896_v17 = vadd.f32 %v7684_v16, %v4860_v13  ;;  %4829 = vst.msk [vmem:[#allocation2 + $0xf8] sm:$0xff] %vm447_vm9, %v4797_v34 }
 0x2f4   : > { %v4928_v28 = vmax.f32 %v4896_v17, 0.0 }
 0x2f6   : > { %v4960_v62 = vpack.c.bf16 %v4928_v28, %v4928_v28 }
 0x2f8   : > { %4993 = vst.msk [vmem:[%s7410_s9 + $0x78] sm:$0xf] %vm4962_vm10, %v4960_v62 }
 0x2f9   : > { %v4861_v7 = vld [vmem:[#allocation2 + $0xf8] sm:$0xff] }
 0x2fa   : > { %v4897_v19 = vadd.f32 %v7684_v16, %v4861_v7 }
 0x2fc   : > { %v4929_v6 = vmax.f32 %v4897_v19, 0.0 }
 0x2fe   : > { %v4961_v61 = vpack.c.bf16 %v4929_v6, %v4929_v6 }
 0x300   : > { %4994 = vst.msk [vmem:[%s7410_s9 + $0x7c] sm:$0xf] %vm4962_vm10, %v4961_v61 }
 0x301   : > { %5897 = shalt.err (!%p5894_p5)
}
 0x302   : > { %s5951_s7 = smov 64   ;;  %s5952_s9 = smov 4  }
 0x303   : > { %5810 = dma.vmem_to_hbm [thread:$0]  (%p6013_p4), %s5012_s26, 2048, %s5014_s27, %s4996_s15, %s5951_s7, %s5951_s7, %s5952_s9  }
 0x304 PF: > { %p5816_p6 = scmp.ge.s32.totalorder %s5948_s17, 2  ;;  %s5028_s10 = sand.u32 1, %s5928_s12  }
 0x305   : > { %s5029_s11 = scalar_lea.sflag [#allocation4], %s5028_s10 }
 0x306   : > { %p5813_p7 = pnand %p5816_p6, %p6020_p8 }
 0x308   : > { %p5814_p9 = pneg %p5813_p7 }
 0x30a   : > { %5923 = dma.done.wait (%p5814_p9), %s5029_s11, 2048  }
 0x30b   : > { %5925 = vsyncadd (%p5814_p9), %s5029_s11, 4294965248  ;;  %s16_s17 = sadd.s32 1, %s5948_s17   ;;  %s7864_s12 = smov %s5932_s13 }
 0x30c   : > { %p13_p10 = scmp.ge.s32.totalorder %s16_s17, 4   ;;  %s7865_s13 = smov %s5936_s14 }
 0x30d   : > { %s7866_s14 = smov %s6026_s25  ;;  %s7867_s15 = smov %s5944_s16 }
 0x30e   : > { %s7868_s16 = smov %s7870_s20  ;;  %15 = sbr.rel (!%p13_p10) target bundleno = 4 (0x4), region = 78 }
 0x313   :  { %5035 = vsyncpa [#allocation4], 1 }
 0x314   :  { %5037 = vsyncpa [#allocation4 + $0x1], 1 }

</bundles_post_ra>
